<compile_context>
chip_gen: v7x
topology: tpu7x:2x2x1
jax: 0.10.0
libtpu: 0.0.40
codegen_flags: <defaults>
</compile_context>

<pallas_src>
import math

import jax
import jax.numpy as jnp
import numpy as np
from jax.experimental import pallas as pl
from jax.experimental.pallas import tpu as pltpu

LATENT = 3
LATENT_PAD = 128        # latent padded to one full lane tile
D_IN = 784              # 28 * 28
H1 = 512
H2 = 128
D_DEC2 = 648
D_DEC2_PAD = 768        # 648 -> 6 * 128
D_OUT = 784
D_OUT_PAD = 896         # 784 -> 7 * 128


def _vae_kernel(
    x_ref, eps_ref,
    w1_ref, b1_ref, w2_ref, b2_ref,
    wms_ref, bms_ref,
    wd1_ref, bd1_ref, wd2_ref, bd2_ref, wd3_ref, bd3_ref,
    out_ref, kl_ref,
):
    f32 = jnp.float32
    bf16 = jnp.bfloat16

    x = x_ref[...]  # (B, 784) f32

    # ---- encoder (bf16 MXU inputs, f32 accumulation, f32 elementwise) ----
    h = jnp.dot(x.astype(bf16), w1_ref[...], preferred_element_type=f32) + b1_ref[...]
    h = jnp.maximum(h, 0.0)
    h = jnp.dot(h.astype(bf16), w2_ref[...], preferred_element_type=f32) + b2_ref[...]
    h = jnp.maximum(h, 0.0)

    # ---- fused mu / log_sigma projection: (B, 2*LATENT_PAD) ----
    ms = jnp.dot(h.astype(bf16), wms_ref[...], preferred_element_type=f32) + bms_ref[...]
    mu = ms[:, :LATENT_PAD]          # tile-aligned slices
    log_sigma = ms[:, LATENT_PAD:]
    sigma = jnp.exp(log_sigma)

    # ---- reparameterization ----
    # Padded latent columns: mu=0, sigma=exp(0)=1, eps=0  ->  sample=0.
    sample = mu + sigma * eps_ref[...]

    # ---- KL divergence (scalar, SMEM output) ----
    # Padded columns contribute 1 + 0 - 0 - 1 = 0.
    kl_ref[0, 0] = 0.5 * jnp.sum(sigma * sigma + mu * mu - log_sigma - 1.0)

    # ---- decoder ----
    d = jnp.dot(sample.astype(bf16), wd1_ref[...], preferred_element_type=f32) + bd1_ref[...]
    d = jnp.maximum(d, 0.0)
    d = jnp.dot(d.astype(bf16), wd2_ref[...], preferred_element_type=f32) + bd2_ref[...]
    d = jnp.maximum(d, 0.0)
    d = jnp.dot(d.astype(bf16), wd3_ref[...], preferred_element_type=f32) + bd3_ref[...]
    d = jnp.maximum(d, 0.0)

    out_ref[...] = d  # (B, 896) lane-dense store; pad stripped in wrapper


@jax.jit
def vae_forward(x, eps, params):
    """x: (B, 28, 28) f32; eps: (B, LATENT) f32 ~ N(0,1).

    params: output of prepare_params() (bf16 weights, padded/fused layouts).
    Returns (recon (B, 28, 28) f32, kl scalar f32).
    """
    B = x.shape[0]
    x2d = x.reshape(B, D_IN).astype(jnp.float32)
    eps_pad = jnp.zeros((B, LATENT_PAD), jnp.float32).at[:, :LATENT].set(eps)

    inputs = (
        x2d, eps_pad,
        params["w1"], params["b1"], params["w2"], params["b2"],
        params["wms"], params["bms"],
        params["wd1"], params["bd1"], params["wd2"], params["bd2"],
        params["wd3"], params["bd3"],
    )

    vmem = pl.BlockSpec(memory_space=pltpu.MemorySpace.VMEM)
    smem = pl.BlockSpec(memory_space=pltpu.MemorySpace.SMEM)

    out_pad, kl = pl.pallas_call(
        _vae_kernel,
        out_shape=(
            jax.ShapeDtypeStruct((B, D_OUT_PAD), jnp.float32),
            jax.ShapeDtypeStruct((1, 1), jnp.float32),
        ),
        in_specs=[vmem] * len(inputs),
        out_specs=(vmem, smem),
        compiler_params=pltpu.CompilerParams(vmem_limit_bytes=16 << 20),
    )(*inputs)

    # TODO(synk): if B grows, add a batch grid axis (dimension_semantics=("parallel",))
    # so v7x's second TensorCore is used; at B=8 a grid is pure overhead.
    return out_pad[:, :D_OUT].reshape(B, 28, 28), kl[0, 0]


def init_params(key, latent_size=LATENT):
    """PyTorch nn.Linear-style init. Weights stored (in, out), f32, unpadded."""
    dims = [
        ("w1", "b1", D_IN, H1),
        ("w2", "b2", H1, H2),
        ("wmu", "bmu", H2, latent_size),
        ("wsig", "bsig", H2, latent_size),
        ("wd1", "bd1", latent_size, H1),
        ("wd2", "bd2", H1, D_DEC2),
        ("wd3", "bd3", D_DEC2, D_OUT),
    ]
    raw = {}
    for wname, bname, fin, fout in dims:
        key, kw, kb = jax.random.split(key, 3)
        bound = 1.0 / math.sqrt(fin)  # nn.Linear default uniform bound
        raw[wname] = jax.random.uniform(kw, (fin, fout), jnp.float32, -bound, bound)
        raw[bname] = jax.random.uniform(kb, (1, fout), jnp.float32, -bound, bound)
    return raw


def prepare_params(raw):
    """One-time host-side packing: fuse mu/sigma, zero-pad lane dims to 128
    multiples, cast weights to bf16 (biases stay f32)."""
    def padded(a, shape):
        out = np.zeros(shape, np.float32)
        a = np.asarray(a, np.float32)
        out[: a.shape[0], : a.shape[1]] = a
        return out

    p = {}
    p["w1"] = jnp.asarray(raw["w1"], jnp.bfloat16)
    p["b1"] = jnp.asarray(raw["b1"], jnp.float32)
    p["w2"] = jnp.asarray(raw["w2"], jnp.bfloat16)
    p["b2"] = jnp.asarray(raw["b2"], jnp.float32)

    # Fused mu / log_sigma projection: cols [0, LATENT) = mu, [128, 128+LATENT) = log_sigma.
    wms = np.zeros((H2, 2 * LATENT_PAD), np.float32)
    wms[:, :LATENT] = np.asarray(raw["wmu"], np.float32)
    wms[:, LATENT_PAD:LATENT_PAD + LATENT] = np.asarray(raw["wsig"], np.float32)
    bms = np.zeros((1, 2 * LATENT_PAD), np.float32)
    bms[:, :LATENT] = np.asarray(raw["bmu"], np.float32)
    bms[:, LATENT_PAD:LATENT_PAD + LATENT] = np.asarray(raw["bsig"], np.float32)
    p["wms"] = jnp.asarray(wms, jnp.bfloat16)
    p["bms"] = jnp.asarray(bms, jnp.float32)

    p["wd1"] = jnp.asarray(padded(raw["wd1"], (LATENT_PAD, H1)), jnp.bfloat16)
    p["bd1"] = jnp.asarray(raw["bd1"], jnp.float32)
    p["wd2"] = jnp.asarray(padded(raw["wd2"], (H1, D_DEC2_PAD)), jnp.bfloat16)
    p["bd2"] = jnp.asarray(padded(raw["bd2"], (1, D_DEC2_PAD)), jnp.float32)
    p["wd3"] = jnp.asarray(padded(raw["wd3"], (D_DEC2_PAD, D_OUT_PAD)), jnp.bfloat16)
    p["bd3"] = jnp.asarray(padded(raw["bd3"], (1, D_OUT_PAD)), jnp.float32)
    return p


def reference_forward(x, eps, raw):
    """Pure-JAX reference mirroring the kernel's numerics (bf16 weights/inputs,
    f32 accumulation)."""
    bf16, f32 = jnp.bfloat16, jnp.float32

    def lin(a, w, b):
        return jnp.dot(a.astype(bf16), jnp.asarray(w, bf16),
                       preferred_element_type=f32) + b

    B = x.shape[0]
    h = jnp.maximum(lin(x.reshape(B, D_IN), raw["w1"], raw["b1"]), 0.0)
    h = jnp.maximum(lin(h, raw["w2"], raw["b2"]), 0.0)
    mu = lin(h, raw["wmu"], raw["bmu"])
    log_sigma = lin(h, raw["wsig"], raw["bsig"])
    sigma = jnp.exp(log_sigma)
    sample = mu + sigma * eps
    kl = 0.5 * jnp.sum(sigma * sigma + mu * mu - log_sigma - 1.0)
    d = jnp.maximum(lin(sample, raw["wd1"], raw["bd1"]), 0.0)
    d = jnp.maximum(lin(d, raw["wd2"], raw["bd2"]), 0.0)
    d = jnp.maximum(lin(d, raw["wd3"], raw["bd3"]), 0.0)
    return d.reshape(B, 28, 28), kl


if __name__ == "__main__":
    B = 8

    key = jax.random.PRNGKey(0)
    key, kx, keps, kparams = jax.random.split(key, 4)

    x = jax.random.uniform(kx, (B, 28, 28), jnp.float32)       # image batch
    eps = jax.random.normal(keps, (B, LATENT), jnp.float32)    # reparam noise
    raw_params = init_params(kparams, LATENT)
    params = prepare_params(raw_params)                        # one-time packing

    recon, kl = vae_forward(x, eps, params)
    jax.block_until_ready((recon, kl))

    assert recon.shape == (B, 28, 28)
    assert recon.dtype == jnp.float32
    assert bool(jnp.all(jnp.isfinite(recon)))
    assert bool(jnp.isfinite(kl))

    # Check against a numerics-matched pure-JAX reference.
    ref_recon, ref_kl = reference_forward(x, eps, raw_params)
    np.testing.assert_allclose(np.asarray(recon), np.asarray(ref_recon),
                               rtol=2e-2, atol=2e-2)
    np.testing.assert_allclose(float(kl), float(ref_kl), rtol=2e-2, atol=2e-2)

    print("KERNEL_OK")
</pallas_src>

<mosaic_0001>
module attributes {stable_mosaic.version = 11 : i64} {
  func.func @_vae_kernel(%arg0: memref<8x784xf32, #tpu.memory_space<vmem>>, %arg1: memref<8x128xf32, #tpu.memory_space<vmem>>, %arg2: memref<784x512xbf16, #tpu.memory_space<vmem>>, %arg3: memref<1x512xf32, #tpu.memory_space<vmem>>, %arg4: memref<512x128xbf16, #tpu.memory_space<vmem>>, %arg5: memref<1x128xf32, #tpu.memory_space<vmem>>, %arg6: memref<128x256xbf16, #tpu.memory_space<vmem>>, %arg7: memref<1x256xf32, #tpu.memory_space<vmem>>, %arg8: memref<128x512xbf16, #tpu.memory_space<vmem>>, %arg9: memref<1x512xf32, #tpu.memory_space<vmem>>, %arg10: memref<512x768xbf16, #tpu.memory_space<vmem>>, %arg11: memref<1x768xf32, #tpu.memory_space<vmem>>, %arg12: memref<768x896xbf16, #tpu.memory_space<vmem>>, %arg13: memref<1x896xf32, #tpu.memory_space<vmem>>, %arg14: memref<8x896xf32, #tpu.memory_space<vmem>>, %arg15: memref<1x1xf32, #tpu.memory_space<smem>>) attributes {dimension_semantics = [], scalar_prefetch = 0 : i64, scratch_operands = 0 : i64, tpu.core_type = #tpu.core_type<tc>} {
    %c0 = arith.constant 0 : index
    %c0_0 = arith.constant 0 : index
    %0 = vector.load %arg0[%c0, %c0_0] : memref<8x784xf32, #tpu.memory_space<vmem>>, vector<8x784xf32>
    %1 = arith.truncf %0 : vector<8x784xf32> to vector<8x784xbf16>
    %c0_1 = arith.constant 0 : index
    %c0_2 = arith.constant 0 : index
    %2 = vector.load %arg2[%c0_1, %c0_2] : memref<784x512xbf16, #tpu.memory_space<vmem>>, vector<784x512xbf16>
    %cst = arith.constant dense<0.000000e+00> : vector<8x512xf32>
    %3 = tpu.matmul %1, %2, %cst {dimension_numbers = #tpu.dot_dimension_numbers<[1], [0], [0], [1], [0, 0, 1, 1], [], []>} : vector<8x784xbf16>, vector<784x512xbf16>, vector<8x512xf32> -> vector<8x512xf32>
    %c0_3 = arith.constant 0 : index
    %c0_4 = arith.constant 0 : index
    %4 = vector.load %arg3[%c0_3, %c0_4] : memref<1x512xf32, #tpu.memory_space<vmem>>, vector<1x512xf32>
    %5 = vector.broadcast %4 : vector<1x512xf32> to vector<8x512xf32>
    %6 = arith.addf %3, %5 : vector<8x512xf32>
    %cst_5 = arith.constant 0.000000e+00 : f32
    %7 = vector.broadcast %cst_5 : f32 to vector<8x512xf32>
    %8 = arith.maximumf %6, %7 : vector<8x512xf32>
    %9 = arith.truncf %8 : vector<8x512xf32> to vector<8x512xbf16>
    %c0_6 = arith.constant 0 : index
    %c0_7 = arith.constant 0 : index
    %10 = vector.load %arg4[%c0_6, %c0_7] : memref<512x128xbf16, #tpu.memory_space<vmem>>, vector<512x128xbf16>
    %cst_8 = arith.constant dense<0.000000e+00> : vector<8x128xf32>
    %11 = tpu.matmul %9, %10, %cst_8 {dimension_numbers = #tpu.dot_dimension_numbers<[1], [0], [0], [1], [0, 0, 1, 1], [], []>} : vector<8x512xbf16>, vector<512x128xbf16>, vector<8x128xf32> -> vector<8x128xf32>
    %c0_9 = arith.constant 0 : index
    %c0_10 = arith.constant 0 : index
    %12 = vector.load %arg5[%c0_9, %c0_10] : memref<1x128xf32, #tpu.memory_space<vmem>>, vector<1x128xf32>
    %13 = vector.broadcast %12 : vector<1x128xf32> to vector<8x128xf32>
    %14 = arith.addf %11, %13 : vector<8x128xf32>
    %cst_11 = arith.constant 0.000000e+00 : f32
    %15 = vector.broadcast %cst_11 : f32 to vector<8x128xf32>
    %16 = arith.maximumf %14, %15 : vector<8x128xf32>
    %17 = arith.truncf %16 : vector<8x128xf32> to vector<8x128xbf16>
    %c0_12 = arith.constant 0 : index
    %c0_13 = arith.constant 0 : index
    %18 = vector.load %arg6[%c0_12, %c0_13] : memref<128x256xbf16, #tpu.memory_space<vmem>>, vector<128x256xbf16>
    %cst_14 = arith.constant dense<0.000000e+00> : vector<8x256xf32>
    %19 = tpu.matmul %17, %18, %cst_14 {dimension_numbers = #tpu.dot_dimension_numbers<[1], [0], [0], [1], [0, 0, 1, 1], [], []>} : vector<8x128xbf16>, vector<128x256xbf16>, vector<8x256xf32> -> vector<8x256xf32>
    %c0_15 = arith.constant 0 : index
    %c0_16 = arith.constant 0 : index
    %20 = vector.load %arg7[%c0_15, %c0_16] : memref<1x256xf32, #tpu.memory_space<vmem>>, vector<1x256xf32>
    %21 = vector.broadcast %20 : vector<1x256xf32> to vector<8x256xf32>
    %22 = arith.addf %19, %21 : vector<8x256xf32>
    %23 = vector.extract_strided_slice %22 {offsets = [0, 0], sizes = [8, 128], strides = [1, 1]} : vector<8x256xf32> to vector<8x128xf32>
    %24 = vector.extract_strided_slice %22 {offsets = [0, 128], sizes = [8, 128], strides = [1, 1]} : vector<8x256xf32> to vector<8x128xf32>
    %25 = math.exp %24 : vector<8x128xf32>
    %c0_17 = arith.constant 0 : index
    %c0_18 = arith.constant 0 : index
    %26 = vector.load %arg1[%c0_17, %c0_18] : memref<8x128xf32, #tpu.memory_space<vmem>>, vector<8x128xf32>
    %27 = arith.mulf %25, %26 : vector<8x128xf32>
    %28 = arith.addf %23, %27 : vector<8x128xf32>
    %29 = arith.mulf %25, %25 : vector<8x128xf32>
    %30 = arith.mulf %23, %23 : vector<8x128xf32>
    %31 = arith.addf %29, %30 : vector<8x128xf32>
    %32 = arith.subf %31, %24 : vector<8x128xf32>
    %cst_19 = arith.constant 1.000000e+00 : f32
    %33 = vector.broadcast %cst_19 : f32 to vector<8x128xf32>
    %34 = arith.subf %32, %33 : vector<8x128xf32>
    %35 = vector.shape_cast %34 : vector<8x128xf32> to vector<1x8x128xf32>
    %cst_20 = arith.constant dense<0.000000e+00> : vector<1xf32>
    %36 = vector.multi_reduction <add>, %35, %cst_20 [1, 2] : vector<1x8x128xf32> to vector<1xf32>
    %37 = vector.shape_cast %36 : vector<1xf32> to vector<1x1x1xf32>
    %38 = vector.extract %37[0, 0, 0] : f32 from vector<1x1x1xf32>
    %cst_21 = arith.constant 5.000000e-01 : f32
    %39 = arith.mulf %cst_21, %38 : f32
    %c0_22 = arith.constant 0 : index
    %c0_23 = arith.constant 0 : index
    %40 = memref.load %arg15[%c0_22, %c0_23] : memref<1x1xf32, #tpu.memory_space<smem>>
    memref.store %39, %arg15[%c0_22, %c0_23] : memref<1x1xf32, #tpu.memory_space<smem>>
    %41 = arith.truncf %28 : vector<8x128xf32> to vector<8x128xbf16>
    %c0_24 = arith.constant 0 : index
    %c0_25 = arith.constant 0 : index
    %42 = vector.load %arg8[%c0_24, %c0_25] : memref<128x512xbf16, #tpu.memory_space<vmem>>, vector<128x512xbf16>
    %cst_26 = arith.constant dense<0.000000e+00> : vector<8x512xf32>
    %43 = tpu.matmul %41, %42, %cst_26 {dimension_numbers = #tpu.dot_dimension_numbers<[1], [0], [0], [1], [0, 0, 1, 1], [], []>} : vector<8x128xbf16>, vector<128x512xbf16>, vector<8x512xf32> -> vector<8x512xf32>
    %c0_27 = arith.constant 0 : index
    %c0_28 = arith.constant 0 : index
    %44 = vector.load %arg9[%c0_27, %c0_28] : memref<1x512xf32, #tpu.memory_space<vmem>>, vector<1x512xf32>
    %45 = vector.broadcast %44 : vector<1x512xf32> to vector<8x512xf32>
    %46 = arith.addf %43, %45 : vector<8x512xf32>
    %cst_29 = arith.constant 0.000000e+00 : f32
    %47 = vector.broadcast %cst_29 : f32 to vector<8x512xf32>
    %48 = arith.maximumf %46, %47 : vector<8x512xf32>
    %49 = arith.truncf %48 : vector<8x512xf32> to vector<8x512xbf16>
    %c0_30 = arith.constant 0 : index
    %c0_31 = arith.constant 0 : index
    %50 = vector.load %arg10[%c0_30, %c0_31] : memref<512x768xbf16, #tpu.memory_space<vmem>>, vector<512x768xbf16>
    %cst_32 = arith.constant dense<0.000000e+00> : vector<8x768xf32>
    %51 = tpu.matmul %49, %50, %cst_32 {dimension_numbers = #tpu.dot_dimension_numbers<[1], [0], [0], [1], [0, 0, 1, 1], [], []>} : vector<8x512xbf16>, vector<512x768xbf16>, vector<8x768xf32> -> vector<8x768xf32>
    %c0_33 = arith.constant 0 : index
    %c0_34 = arith.constant 0 : index
    %52 = vector.load %arg11[%c0_33, %c0_34] : memref<1x768xf32, #tpu.memory_space<vmem>>, vector<1x768xf32>
    %53 = vector.broadcast %52 : vector<1x768xf32> to vector<8x768xf32>
    %54 = arith.addf %51, %53 : vector<8x768xf32>
    %cst_35 = arith.constant 0.000000e+00 : f32
    %55 = vector.broadcast %cst_35 : f32 to vector<8x768xf32>
    %56 = arith.maximumf %54, %55 : vector<8x768xf32>
    %57 = arith.truncf %56 : vector<8x768xf32> to vector<8x768xbf16>
    %c0_36 = arith.constant 0 : index
    %c0_37 = arith.constant 0 : index
    %58 = vector.load %arg12[%c0_36, %c0_37] : memref<768x896xbf16, #tpu.memory_space<vmem>>, vector<768x896xbf16>
    %cst_38 = arith.constant dense<0.000000e+00> : vector<8x896xf32>
    %59 = tpu.matmul %57, %58, %cst_38 {dimension_numbers = #tpu.dot_dimension_numbers<[1], [0], [0], [1], [0, 0, 1, 1], [], []>} : vector<8x768xbf16>, vector<768x896xbf16>, vector<8x896xf32> -> vector<8x896xf32>
    %c0_39 = arith.constant 0 : index
    %c0_40 = arith.constant 0 : index
    %60 = vector.load %arg13[%c0_39, %c0_40] : memref<1x896xf32, #tpu.memory_space<vmem>>, vector<1x896xf32>
    %61 = vector.broadcast %60 : vector<1x896xf32> to vector<8x896xf32>
    %62 = arith.addf %59, %61 : vector<8x896xf32>
    %cst_41 = arith.constant 0.000000e+00 : f32
    %63 = vector.broadcast %cst_41 : f32 to vector<8x896xf32>
    %64 = arith.maximumf %62, %63 : vector<8x896xf32>
    %c0_42 = arith.constant 0 : index
    %c0_43 = arith.constant 0 : index
    %65 = vector.load %arg14[%c0_42, %c0_43] : memref<8x896xf32, #tpu.memory_space<vmem>>, vector<8x896xf32>
    tpu.vector_store %arg14[%c0_42, %c0_43], %64 {strides = array<i32>} : memref<8x896xf32, #tpu.memory_space<vmem>>, vector<8x896xf32>,
    return
  }
}

</mosaic_0001>

<bundles_post_ra>
// kernel: vae_forward.1
= control target key start
LH: loop header
LB: loop body
LE: loop exit
PB: predicated region body
PF: predicated region fallthrough
CT: control target
= control target key end

     0   :  { %21 = vsyncpa [#allocation3], 0  ;;  %s9614_s0 = inlined_call_operand.vmem [shape: f32[8,784], index: 0, kind: input, shape index: {}]   ;;  %s9615_s1 = inlined_call_operand.vmem [shape: f32[8,128], index: 1, kind: input, shape index: {}]   ;;  %s9616_s2 = inlined_call_operand.hbm [shape: bf16[784,512], index: 2, kind: input, shape index: {}]   ;;  %s9617_s3 = inlined_call_operand.hbm [shape: f32[1,512], index: 3, kind: input, shape index: {}]   ;;  %s9618_s4 = inlined_call_operand.hbm [shape: bf16[512,128], index: 4, kind: input, shape index: {}]   ;;  %s9619_s5 = inlined_call_operand.hbm [shape: f32[1,128], index: 5, kind: input, shape index: {}]   ;;  %s9620_s6 = inlined_call_operand.hbm [shape: bf16[128,256], index: 6, kind: input, shape index: {}]   ;;  %s9621_s7 = inlined_call_operand.hbm [shape: f32[1,256], index: 7, kind: input, shape index: {}]   ;;  %s9622_s8 = inlined_call_operand.hbm [shape: bf16[128,512], index: 8, kind: input, shape index: {}]   ;;  %s9623_s9 = inlined_call_operand.hbm [shape: f32[1,512], index: 9, kind: input, shape index: {}]   ;;  %s9624_s10 = inlined_call_operand.hbm [shape: bf16[512,768], index: 10, kind: input, shape index: {}]   ;;  %s9625_s11 = inlined_call_operand.hbm [shape: f32[1,768], index: 11, kind: input, shape index: {}]   ;;  %s9626_s12 = inlined_call_operand.hbm [shape: bf16[768,896], index: 12, kind: input, shape index: {}]   ;;  %s9627_s13 = inlined_call_operand.hbm [shape: f32[1,896], index: 13, kind: input, shape index: {}]   ;;  %s9628_s14 = inlined_call_operand.vmem [shape: f32[8,896], index: 14, kind: output, shape index: {0}]   ;;  %s9629_s15 = inlined_call_operand.hbm [shape: f32[1,1], index: 15, kind: output, shape index: {1}]  }
   0x1   :  { %22 = vsyncpa [#allocation6], 0 }
   0x2   :  { %23 = vsyncpa [#allocation9], 0 }
   0x3   :  { %24 = vsyncpa [#allocation12], 0 }
   0x4   :  { %25 = vsyncpa [#allocation15], 0 }
   0x5   :  { %26 = vsyncpa [#allocation18], 0 }
   0x6   :  { %27 = vsyncpa [#allocation21], 0 }
   0x7   :  { %28 = vsyncpa [#allocation4], 0  ;;  %s9171_s18 = smov [#allocation5]   ;;  %s9172_s20 = smov [#allocation8]  }
   0x8   :  { %s51_s19 = sshll.u32 %s9171_s18, 4  ;;  %s73_s21 = sshll.u32 %s9172_s20, 4  ;;  %s52_s19 = int_to_ptr.vmem [resolvable:$true] %s51_s19  ;;  %s74_s21 = int_to_ptr.vmem [resolvable:$true] %s73_s21 }
   0x9   :  { %s8881_s24 = scalar_lea.hbm %s9617_s3, 64 }
   0xa   :  { %p8882_p0 = scmp.ne.s32.totalorder %s9617_s3, %s8881_s24  ;;  %p8885_p1 = scmp.lt.u32.totalorder %s8881_s24, %s9617_s3 }
   0xc   :  { %p8887_p2 = pnand %p8885_p1, %p8882_p0 }
   0xe   :  { %8890 = shalt.err (!%p8887_p2)
}
   0xf   :  { %s8891_s29 = scalar_lea.vmem %s52_s19, 64  ;;  %p8896_p4 = scmp.lt.s32.totalorder %s52_s19, %s52_s19 }
  0x10   :  { %p8892_p3 = scmp.ne.s32.totalorder %s52_s19, %s8891_s29  ;;  %p8897_p5 = scmp.lt.s32.totalorder %s8891_s29, %s8891_s29 }
  0x12   :  { %p8898_p6 = por %p8897_p5, %p8896_p4 }
  0x14   :  { %p8899_p7 = pnand %p8898_p6, %p8892_p3 }
  0x16   :  { %8902 = shalt.err (!%p8899_p7)
}
  0x17   :  { %54 = dma.hbm_to_vmem [thread:$0]  %s9617_s3, 64, %s52_s19, [#allocation6]  }
  0x18   :  { %s8903_s20 = scalar_lea.hbm %s9619_s5, 16 }
  0x19   :  { %p8904_p8 = scmp.ne.s32.totalorder %s9619_s5, %s8903_s20  ;;  %p8907_p9 = scmp.lt.u32.totalorder %s8903_s20, %s9619_s5 }
  0x1b   :  { %p8909_p10 = pnand %p8907_p9, %p8904_p8 }
  0x1d   :  { %8912 = shalt.err (!%p8909_p10)
}
  0x1e   :  { %s8913_s26 = scalar_lea.vmem %s74_s21, 16  ;;  %s8917_s27 = scalar_lea.vmem %s74_s21, 32 }
  0x1f   :  { %p8914_p11 = scmp.ne.s32.totalorder %s74_s21, %s8913_s26  ;;  %p8918_p12 = scmp.lt.s32.totalorder %s74_s21, %s74_s21 }
  0x20   :  { %p8919_p13 = scmp.lt.s32.totalorder %s8917_s27, %s8913_s26 }
  0x22   :  { %p8920_p0 = por %p8919_p13, %p8918_p12 }
  0x24   :  { %p8921_p1 = pnand %p8920_p0, %p8914_p11 }
  0x26   :  { %8924 = shalt.err (!%p8921_p1)
}
  0x27   :  { %76 = dma.hbm_to_vmem [thread:$0]  %s9619_s5, 16, %s74_s21, [#allocation9]  }
  0x28   :  { %s9173_s28 = smov [#allocation11]   ;;  %s9174_s30 = smov [#allocation14]  }
  0x29   :  { %s95_s29 = sshll.u32 %s9173_s28, 4  ;;  %s117_s16 = sshll.u32 %s9174_s30, 4  ;;  %s96_s29 = int_to_ptr.vmem [resolvable:$true] %s95_s29  ;;  %s118_s16 = int_to_ptr.vmem [resolvable:$true] %s117_s16 }
  0x2a   :  { %s8925_s20 = scalar_lea.hbm %s9621_s7, 32 }
  0x2b   :  { %p8926_p2 = scmp.ne.s32.totalorder %s9621_s7, %s8925_s20  ;;  %p8929_p3 = scmp.lt.u32.totalorder %s8925_s20, %s9621_s7 }
  0x2d   :  { %p8931_p4 = pnand %p8929_p3, %p8926_p2 }
  0x2f   :  { %8934 = shalt.err (!%p8931_p4)
}
  0x30   :  { %s8935_s5 = scalar_lea.vmem %s96_s29, 32  ;;  %p8940_p6 = scmp.lt.s32.totalorder %s96_s29, %s96_s29 }
  0x31   :  { %p8936_p5 = scmp.ne.s32.totalorder %s96_s29, %s8935_s5  ;;  %p8941_p7 = scmp.lt.s32.totalorder %s8935_s5, %s8935_s5 }
  0x33   :  { %p8942_p8 = por %p8941_p7, %p8940_p6 }
  0x35   :  { %p8943_p9 = pnand %p8942_p8, %p8936_p5 }
  0x37   :  { %8946 = shalt.err (!%p8943_p9)
}
  0x38   :  { %98 = dma.hbm_to_vmem [thread:$0]  %s9621_s7, 32, %s96_s29, [#allocation12]  }
  0x39   :  { %s8947_s19 = scalar_lea.hbm %s9623_s9, 64 }
  0x3a   :  { %p8948_p10 = scmp.ne.s32.totalorder %s9623_s9, %s8947_s19  ;;  %p8951_p11 = scmp.lt.u32.totalorder %s8947_s19, %s9623_s9 }
  0x3c   :  { %p8953_p12 = pnand %p8951_p11, %p8948_p10 }
  0x3e   :  { %8956 = shalt.err (!%p8953_p12)
}
  0x3f   :  { %s8957_s20 = scalar_lea.vmem %s118_s16, 64  ;;  %p8962_p0 = scmp.lt.s32.totalorder %s118_s16, %s118_s16 }
  0x40   :  { %p8958_p13 = scmp.ne.s32.totalorder %s118_s16, %s8957_s20  ;;  %p8963_p1 = scmp.lt.s32.totalorder %s8957_s20, %s8957_s20 }
  0x42   :  { %p8964_p2 = por %p8963_p1, %p8962_p0 }
  0x44   :  { %p8965_p3 = pnand %p8964_p2, %p8958_p13 }
  0x46   :  { %8968 = shalt.err (!%p8965_p3)
}
  0x47   :  { %120 = dma.hbm_to_vmem [thread:$0]  %s9623_s9, 64, %s118_s16, [#allocation15]  }
  0x48   :  { %s9175_s22 = smov [#allocation17]   ;;  %s9176_s24 = smov [#allocation2]  }
  0x49   :  { %s139_s23 = sshll.u32 %s9175_s22, 4  ;;  %s38_s25 = sshll.u32 %s9176_s24, 4  ;;  %s140_s23 = int_to_ptr.vmem [resolvable:$true] %s139_s23  ;;  %s9323_s25 = int_to_ptr.vmem [resolvable:$true] %s38_s25 }
  0x4a   :  { %s8969_s26 = scalar_lea.hbm %s9625_s11, 96 }
  0x4b   :  { %p8970_p4 = scmp.ne.s32.totalorder %s9625_s11, %s8969_s26  ;;  %p8973_p5 = scmp.lt.u32.totalorder %s8969_s26, %s9625_s11 }
  0x4d   :  { %p8975_p6 = pnand %p8973_p5, %p8970_p4 }
  0x4f   :  { %8978 = shalt.err (!%p8975_p6)
}
  0x50   :  { %s8979_s9 = scalar_lea.vmem %s140_s23, 96  ;;  %p8984_p8 = scmp.lt.s32.totalorder %s140_s23, %s140_s23 }
  0x51   :  { %p8980_p7 = scmp.ne.s32.totalorder %s140_s23, %s8979_s9  ;;  %p8985_p9 = scmp.lt.s32.totalorder %s8979_s9, %s8979_s9 }
  0x53   :  { %p8986_p10 = por %p8985_p9, %p8984_p8 }
  0x55   :  { %p8987_p11 = pnand %p8986_p10, %p8980_p7 }
  0x57   :  { %8990 = shalt.err (!%p8987_p11)
}
  0x58   :  { %142 = dma.hbm_to_vmem [thread:$0]  %s9625_s11, 96, %s140_s23, [#allocation18]  }
  0x59   :  { %s8991_s20 = scalar_lea.hbm %s9616_s2, 25088 }
  0x5a   :  { %p8992_p12 = scmp.ne.s32.totalorder %s9616_s2, %s8991_s20  ;;  %p8995_p13 = scmp.lt.u32.totalorder %s8991_s20, %s9616_s2 }
  0x5c   :  { %p8997_p0 = pnand %p8995_p13, %p8992_p12 }
  0x5e   :  { %9000 = shalt.err (!%p8997_p0)
}
  0x5f   :  { %s9001_s5 = scalar_lea.vmem %s9323_s25, 25088  ;;  %p9006_p2 = scmp.lt.s32.totalorder %s9323_s25, %s9323_s25 }
  0x60   :  { %p9002_p1 = scmp.ne.s32.totalorder %s9323_s25, %s9001_s5  ;;  %p9007_p3 = scmp.lt.s32.totalorder %s9001_s5, %s9001_s5 }
  0x62   :  { %p9008_p4 = por %p9007_p3, %p9006_p2 }
  0x64   :  { %p9009_p5 = pnand %p9008_p4, %p9002_p1 }
  0x66   :  { %9012 = shalt.err (!%p9009_p5)
}
  0x67   :  { %s9177_s11 = smov 256   ;;  %s9178_s23 = smov 16  }
  0x68   :  { %44 = dma.hbm_to_vmem [thread:$0]  %s9616_s2, 25088, %s9323_s25, [#allocation3], %s9177_s11, %s9177_s11, %s9178_s23  }
  0x69   :  { %s9179_s27 = smov [#allocation7]   ;;  %s9013_s9 = scalar_lea.hbm %s9618_s4, 4096 }
  0x6a   :  { %s60_s3 = sshll.u32 %s9179_s27, 4  ;;  %p9014_p6 = scmp.ne.s32.totalorder %s9618_s4, %s9013_s9  ;;  %s61_s3 = int_to_ptr.vmem [resolvable:$true] %s60_s3 }
  0x6b   :  { %p9017_p7 = scmp.lt.u32.totalorder %s9013_s9, %s9618_s4 }
  0x6d   :  { %p9019_p8 = pnand %p9017_p7, %p9014_p6 }
  0x6f   :  { %9022 = shalt.err (!%p9019_p8)
}
  0x70   :  { %s9023_s20 = scalar_lea.vmem %s61_s3, 4096  ;;  %p9028_p10 = scmp.lt.s32.totalorder %s61_s3, %s61_s3 }
  0x71   :  { %p9024_p9 = scmp.ne.s32.totalorder %s61_s3, %s9023_s20  ;;  %p9029_p11 = scmp.lt.s32.totalorder %s9023_s20, %s9023_s20 }
  0x73   :  { %p9030_p12 = por %p9029_p11, %p9028_p10 }
  0x75   :  { %p9031_p13 = pnand %p9030_p12, %p9024_p9 }
  0x77   :  { %9034 = shalt.err (!%p9031_p13)
}
  0x78   :  { %s9180_s2 = smov 64   ;;  %s9181_s25 = smov 4  }
  0x79   :  { %66 = dma.hbm_to_vmem [thread:$0]  %s9618_s4, 4096, %s61_s3, [#allocation6], %s9180_s2, %s9180_s2, %s9181_s25  }
  0x7a   :  { %s9182_s22 = smov [#allocation10]   ;;  %s9035_s26 = scalar_lea.hbm %s9620_s6, 2048 }
  0x7b   :  { %s82_s24 = sshll.u32 %s9182_s22, 4  ;;  %p9036_p0 = scmp.ne.s32.totalorder %s9620_s6, %s9035_s26  ;;  %s83_s24 = int_to_ptr.vmem [resolvable:$true] %s82_s24 }
  0x7c   :  { %p9039_p1 = scmp.lt.u32.totalorder %s9035_s26, %s9620_s6 }
  0x7e   :  { %p9041_p2 = pnand %p9039_p1, %p9036_p0 }
  0x80   :  { %9044 = shalt.err (!%p9041_p2)
}
  0x81   :  { %s9045_s16 = scalar_lea.vmem %s83_s24, 2048  ;;  %p9050_p4 = scmp.lt.s32.totalorder %s83_s24, %s83_s24 }
  0x82   :  { %p9046_p3 = scmp.ne.s32.totalorder %s83_s24, %s9045_s16  ;;  %p9051_p5 = scmp.lt.s32.totalorder %s9045_s16, %s9045_s16 }
  0x84   :  { %p9052_p6 = por %p9051_p5, %p9050_p4 }
  0x86   :  { %p9053_p7 = pnand %p9052_p6, %p9046_p3 }
  0x88   :  { %9056 = shalt.err (!%p9053_p7)
}
  0x89   :  { %s9183_s4 = smov 128   ;;  %s9184_s3 = smov 8  }
  0x8a   :  { %88 = dma.hbm_to_vmem [thread:$0]  %s9620_s6, 2048, %s83_s24, [#allocation9], %s9183_s4, %s9183_s4, %s9184_s3  }
  0x8b   :  { %s9185_s18 = smov [#allocation13]   ;;  %s9186_s2 = smov [#allocation16]  }
  0x8c   :  { %s104_s20 = sshll.u32 %s9185_s18, 4  ;;  %s126_s25 = sshll.u32 %s9186_s2, 4  ;;  %s105_s20 = int_to_ptr.vmem [resolvable:$true] %s104_s20  ;;  %s9381_s25 = int_to_ptr.vmem [resolvable:$true] %s126_s25 }
  0x8d   :  { %s9057_s22 = scalar_lea.hbm %s9622_s8, 4096 }
  0x8e   :  { %p9058_p8 = scmp.ne.s32.totalorder %s9622_s8, %s9057_s22  ;;  %p9061_p9 = scmp.lt.u32.totalorder %s9057_s22, %s9622_s8 }
  0x90   :  { %p9063_p10 = pnand %p9061_p9, %p9058_p8 }
  0x92   :  { %9066 = shalt.err (!%p9063_p10)
}
  0x93   :  { %s9067_s6 = scalar_lea.vmem %s105_s20, 4096  ;;  %p9072_p12 = scmp.lt.s32.totalorder %s105_s20, %s105_s20 }
  0x94   :  { %p9068_p11 = scmp.ne.s32.totalorder %s105_s20, %s9067_s6  ;;  %p9073_p13 = scmp.lt.s32.totalorder %s9067_s6, %s9067_s6 }
  0x96   :  { %p9074_p0 = por %p9073_p13, %p9072_p12 }
  0x98   :  { %p9075_p1 = pnand %p9074_p0, %p9068_p11 }
  0x9a   :  { %9078 = shalt.err (!%p9075_p1)
}
  0x9b   :  { %110 = dma.hbm_to_vmem [thread:$0]  %s9622_s8, 4096, %s105_s20, [#allocation12], %s9177_s11, %s9177_s11, %s9178_s23  }
  0x9c   :  { %s9079_s16 = scalar_lea.hbm %s9624_s10, 24576 }
  0x9d   :  { %p9080_p2 = scmp.ne.s32.totalorder %s9624_s10, %s9079_s16  ;;  %p9083_p3 = scmp.lt.u32.totalorder %s9079_s16, %s9624_s10 }
  0x9f   :  { %p9085_p4 = pnand %p9083_p3, %p9080_p2 }
  0xa1   :  { %9088 = shalt.err (!%p9085_p4)
}
  0xa2   :  { %s9089_s18 = scalar_lea.vmem %s9381_s25, 24576  ;;  %p9094_p6 = scmp.lt.s32.totalorder %s9381_s25, %s9381_s25 }
  0xa3   :  { %p9090_p5 = scmp.ne.s32.totalorder %s9381_s25, %s9089_s18  ;;  %p9095_p7 = scmp.lt.s32.totalorder %s9089_s18, %s9089_s18 }
  0xa5   :  { %p9096_p8 = por %p9095_p7, %p9094_p6 }
  0xa7   :  { %p9097_p9 = pnand %p9096_p8, %p9090_p5 }
  0xa9   :  { %9100 = shalt.err (!%p9097_p9)
}
  0xaa   :  { %s9187_s8 = smov 384   ;;  %s9188_s11 = smov 24  }
  0xab   :  { %132 = dma.hbm_to_vmem [thread:$0]  %s9624_s10, 24576, %s9381_s25, [#allocation15], %s9187_s8, %s9187_s8, %s9188_s11  }
  0xac   :  { %s9189_s2 = smov [#allocation19]   ;;  %s9101_s5 = scalar_lea.hbm %s9626_s12, 43008 }
  0xad   :  { %s148_s7 = sshll.u32 %s9189_s2, 4  ;;  %p9102_p10 = scmp.ne.s32.totalorder %s9626_s12, %s9101_s5  ;;  %s149_s7 = int_to_ptr.vmem [resolvable:$true] %s148_s7 }
  0xae   :  { %p9105_p11 = scmp.lt.u32.totalorder %s9101_s5, %s9626_s12 }
  0xb0   :  { %p9107_p12 = pnand %p9105_p11, %p9102_p10 }
  0xb2   :  { %9110 = shalt.err (!%p9107_p12)
}
  0xb3   :  { %s9111_s24 = scalar_lea.vmem %s149_s7, 43008  ;;  %p9116_p0 = scmp.lt.s32.totalorder %s149_s7, %s149_s7 }
  0xb4   :  { %p9112_p13 = scmp.ne.s32.totalorder %s149_s7, %s9111_s24  ;;  %p9117_p1 = scmp.lt.s32.totalorder %s9111_s24, %s9111_s24 }
  0xb6   :  { %p9118_p2 = por %p9117_p1, %p9116_p0 }
  0xb8   :  { %p9119_p3 = pnand %p9118_p2, %p9112_p13 }
  0xba   :  { %9122 = shalt.err (!%p9119_p3)
}
  0xbb   :  { %s9190_s10 = smov 448   ;;  %s9191_s25 = smov 28  }
  0xbc   :  { %154 = dma.hbm_to_vmem [thread:$0]  %s9626_s12, 43008, %s149_s7, [#allocation18], %s9190_s10, %s9190_s10, %s9191_s25  }
  0xbd   :  { %s9192_s9 = smov [#allocation20]   ;;  %s9123_s30 = scalar_lea.hbm %s9627_s13, 112 }
  0xbe   :  { %s161_s16 = sshll.u32 %s9192_s9, 4  ;;  %p9124_p4 = scmp.ne.s32.totalorder %s9627_s13, %s9123_s30  ;;  %s162_s16 = int_to_ptr.vmem [resolvable:$true] %s161_s16 }
  0xbf   :  { %p9127_p5 = scmp.lt.u32.totalorder %s9123_s30, %s9627_s13 }
  0xc1   :  { %p9129_p6 = pnand %p9127_p5, %p9124_p4 }
  0xc3   :  { %9132 = shalt.err (!%p9129_p6)
}
  0xc4   :  { %s9133_s23 = scalar_lea.vmem %s162_s16, 112  ;;  %s9137_s12 = scalar_lea.vmem %s162_s16, 128 }
  0xc5   :  { %p9134_p7 = scmp.ne.s32.totalorder %s162_s16, %s9133_s23  ;;  %p9138_p8 = scmp.lt.s32.totalorder %s162_s16, %s162_s16 }
  0xc6   :  { %p9139_p9 = scmp.lt.s32.totalorder %s9137_s12, %s9133_s23 }
  0xc8   :  { %p9140_p10 = por %p9139_p9, %p9138_p8 }
  0xca   :  { %p9141_p11 = pnand %p9140_p10, %p9134_p7 }
  0xcc   :  { %9144 = shalt.err (!%p9141_p11)
}
  0xcd   :  { %164 = dma.hbm_to_vmem [thread:$0]  %s9627_s13, 112, %s162_s16, [#allocation21]  }
  0xce   :  { %9155 = dma.done.wait [#allocation3], 25088  }
  0xcf   :  { %9156 = vsyncadd [#allocation3], 4294942208 }
  0xd0   :  { %9157 = dma.done.wait [#allocation6], 4160  }
  0xd1   :  { %9158 = vsyncadd [#allocation6], 4294963136 }
  0xd2   :  { %9159 = dma.done.wait [#allocation9], 2064  }
  0xd3   :  { %9160 = vsyncadd [#allocation9], 4294965232 }
  0xd4   :  { %9161 = dma.done.wait [#allocation12], 4128  }
  0xd5   :  { %9162 = vsyncadd [#allocation12], 4294963168 }
  0xd6   :  { %9163 = dma.done.wait [#allocation15], 24640  }
  0xd7   :  { %9164 = vsyncadd [#allocation15], 4294942656 }
  0xd8   :  { %9165 = dma.done.wait [#allocation18], 43104  }
  0xd9   :  { %9166 = vsyncadd [#allocation18], 4294924192 }
  0xda   :  { %9167 = dma.done.wait [#allocation21], 112  }
  0xdb   :  { %9168 = vsyncadd [#allocation21], 4294967184  ;;  %v7713_v0 = vld [vmem:[#allocation2 + $0x4] ss:$16 sps:$4 sm:$0xff]   ;;  %v7715_v1 = vld [vmem:[#allocation2 + $0xc] ss:$16 sps:$4 sm:$0xff]  }
  0xdc   :  { %1418 = vmatprep.subr.bf16.mxu0 %v7713_v0  ;;  %v7717_v2 = vld [vmem:[#allocation2] ss:$16 sps:$4 sm:$0xff]   ;;  %v7718_v3 = vld [vmem:[#allocation2 + $0x8] ss:$16 sps:$4 sm:$0xff]   ;;  %1582 = vmatprep.subr.bf16.mxu1 %v7715_v1  ;;  %v7719_v4 = vld [vmem:[#allocation2 + $0x24] ss:$16 sps:$4 sm:$0xff]  }
  0xdd   :  { %1419 = vmatpush1.bf16.msra.mxu0 %v7717_v2  ;;  %1583 = vmatpush1.bf16.msra.mxu1 %v7718_v3  ;;  %v7721_v5 = vld [vmem:[#allocation2 + $0x2c] ss:$16 sps:$4 sm:$0xff]   ;;  %v7723_v6 = vld [vmem:[#allocation2 + $0x20] ss:$16 sps:$4 sm:$0xff]   ;;  %v7724_v7 = vld [vmem:[#allocation2 + $0x28] ss:$16 sps:$4 sm:$0xff]  }
  0xde   :  { %1420 = vmatprep.subr.bf16.mxu0 %v7719_v4  ;;  %1584 = vmatprep.subr.bf16.mxu1 %v7721_v5  ;;  %v7725_v8 = vld [vmem:[#allocation2 + $0x44] ss:$16 sps:$4 sm:$0xff]   ;;  %v7727_v9 = vld [vmem:[#allocation2 + $0x4c] ss:$16 sps:$4 sm:$0xff]   ;;  %v7729_v10 = vld [vmem:[#allocation2 + $0x40] ss:$16 sps:$4 sm:$0xff]  }
  0xdf   :  { %v7730_v11 = vld [vmem:[#allocation2 + $0x48] ss:$16 sps:$4 sm:$0xff]   ;;  %v7731_v12 = vld [vmem:[#allocation2 + $0x64] ss:$16 sps:$4 sm:$0xff]   ;;  %v7733_v13 = vld [vmem:[#allocation2 + $0x6c] ss:$16 sps:$4 sm:$0xff]  }
  0xe0   :  { %v7735_v14 = vld [vmem:[#allocation2 + $0x60] ss:$16 sps:$4 sm:$0xff]   ;;  %v7736_v15 = vld [vmem:[#allocation2 + $0x68] ss:$16 sps:$4 sm:$0xff]   ;;  %v7737_v16 = vld [vmem:[#allocation2 + $0x84] ss:$16 sps:$4 sm:$0xff]  }
  0xe1   :  { %1421 = vmatpush1.bf16.msra.mxu0 %v7723_v6  ;;  %1585 = vmatpush1.bf16.msra.mxu1 %v7724_v7  ;;  %v7739_v17 = vld [vmem:[#allocation2 + $0x8c] ss:$16 sps:$4 sm:$0xff]   ;;  %v7741_v18 = vld [vmem:[#allocation2 + $0x80] ss:$16 sps:$4 sm:$0xff]   ;;  %v7742_v19 = vld [vmem:[#allocation2 + $0x88] ss:$16 sps:$4 sm:$0xff]  }
  0xe2   :  { %1422 = vmatprep.subr.bf16.mxu0 %v7725_v8  ;;  %1586 = vmatprep.subr.bf16.mxu1 %v7727_v9  ;;  %v7743_v20 = vld [vmem:[#allocation2 + $0xa4] ss:$16 sps:$4 sm:$0xff]   ;;  %v7745_v21 = vld [vmem:[#allocation2 + $0xac] ss:$16 sps:$4 sm:$0xff]   ;;  %v7747_v22 = vld [vmem:[#allocation2 + $0xa0] ss:$16 sps:$4 sm:$0xff]  }
  0xe3   :  { %v7748_v23 = vld [vmem:[#allocation2 + $0xa8] ss:$16 sps:$4 sm:$0xff]   ;;  %v7749_v24 = vld [vmem:[#allocation2 + $0xc4] ss:$16 sps:$4 sm:$0xff]   ;;  %v7751_v25 = vld [vmem:[#allocation2 + $0xcc] ss:$16 sps:$4 sm:$0xff]  }
  0xe4   :  { %v7753_v26 = vld [vmem:[#allocation2 + $0xc0] ss:$16 sps:$4 sm:$0xff]   ;;  %v7754_v27 = vld [vmem:[#allocation2 + $0xc8] ss:$16 sps:$4 sm:$0xff]   ;;  %v7755_v28 = vld [vmem:[#allocation2 + $0xe4] ss:$16 sps:$4 sm:$0xff]  }
  0xe5   :  { %1423 = vmatpush1.bf16.msra.mxu0 %v7729_v10  ;;  %1587 = vmatpush1.bf16.msra.mxu1 %v7730_v11  ;;  %v7757_v29 = vld [vmem:[#allocation2 + $0xec] ss:$16 sps:$4 sm:$0xff]   ;;  %v7759_v30 = vld [vmem:[#allocation2 + $0xe0] ss:$16 sps:$4 sm:$0xff]   ;;  %v7760_v31 = vld [vmem:[#allocation2 + $0xe8] ss:$16 sps:$4 sm:$0xff]  }
  0xe6   :  { %1424 = vmatprep.subr.bf16.mxu0 %v7731_v12  ;;  %1588 = vmatprep.subr.bf16.mxu1 %v7733_v13  ;;  %v7761_v32 = vld [vmem:[#allocation2 + $0x104] ss:$16 sps:$4 sm:$0xff]   ;;  %v7763_v33 = vld [vmem:[#allocation2 + $0x10c] ss:$16 sps:$4 sm:$0xff]   ;;  %v7765_v34 = vld [vmem:[#allocation2 + $0x100] ss:$16 sps:$4 sm:$0xff]  }
  0xe7   :  { %v7766_v35 = vld [vmem:[#allocation2 + $0x108] ss:$16 sps:$4 sm:$0xff]   ;;  %v7767_v36 = vld [vmem:[#allocation2 + $0x124] ss:$16 sps:$4 sm:$0xff]   ;;  %v7769_v37 = vld [vmem:[#allocation2 + $0x12c] ss:$16 sps:$4 sm:$0xff]  }
  0xe8   :  { %v7771_v38 = vld [vmem:[#allocation2 + $0x120] ss:$16 sps:$4 sm:$0xff]   ;;  %v7772_v39 = vld [vmem:[#allocation2 + $0x128] ss:$16 sps:$4 sm:$0xff]   ;;  %v7773_v40 = vld [vmem:[#allocation2 + $0x144] ss:$16 sps:$4 sm:$0xff]  }
  0xe9   :  { %1425 = vmatpush1.bf16.msra.mxu0 %v7735_v14  ;;  %1589 = vmatpush1.bf16.msra.mxu1 %v7736_v15  ;;  %v7775_v41 = vld [vmem:[#allocation2 + $0x14c] ss:$16 sps:$4 sm:$0xff]   ;;  %v7777_v42 = vld [vmem:[#allocation2 + $0x140] ss:$16 sps:$4 sm:$0xff]   ;;  %v7778_v43 = vld [vmem:[#allocation2 + $0x148] ss:$16 sps:$4 sm:$0xff]  }
  0xea   :  { %1426 = vmatprep.subr.bf16.mxu0 %v7737_v16  ;;  %1590 = vmatprep.subr.bf16.mxu1 %v7739_v17  ;;  %v7779_v44 = vld [vmem:[#allocation2 + $0x164] ss:$16 sps:$4 sm:$0xff]   ;;  %v7781_v45 = vld [vmem:[#allocation2 + $0x16c] ss:$16 sps:$4 sm:$0xff]   ;;  %v7783_v47 = vld [vmem:[#allocation2 + $0x160] ss:$16 sps:$4 sm:$0xff]  }
  0xeb   :  { %v203_v46 = vld [vmem:[%s9614_s0 + $0x8] sm:$0xff]  ;;  %v7785_v50 = vld [vmem:[#allocation2 + $0x184] ss:$16 sps:$4 sm:$0xff]   ;;  %v7789_v52 = vld [vmem:[#allocation2 + $0x180] ss:$16 sps:$4 sm:$0xff]   ;;  %vm1414_vm0 = vcmask 130048  }
  0xec   :  { %v210_v48 = vpack.c.bf16 %v203_v46, %v203_v46  ;;  %v7784_v49 = vld [vmem:[#allocation2 + $0x168] ss:$16 sps:$4 sm:$0xff]   ;;  %v7787_v51 = vld [vmem:[#allocation2 + $0x18c] ss:$16 sps:$4 sm:$0xff]   ;;  %v7791_v54 = vld [vmem:[#allocation2 + $0x1a4] ss:$16 sps:$4 sm:$0xff]  }
  0xed   :  { %1427 = vmatpush1.bf16.msra.mxu0 %v7741_v18  ;;  %1591 = vmatpush1.bf16.msra.mxu1 %v7742_v19  ;;  %v7790_v53 = vld [vmem:[#allocation2 + $0x188] ss:$16 sps:$4 sm:$0xff]   ;;  %v7793_v55 = vld [vmem:[#allocation2 + $0x1ac] ss:$16 sps:$4 sm:$0xff]   ;;  %v7795_v56 = vld [vmem:[#allocation2 + $0x1a0] ss:$16 sps:$4 sm:$0xff]  }
  0xee   :  { %1428 = vmatprep.subr.bf16.mxu0 %v7743_v20  ;;  %1592 = vmatprep.subr.bf16.mxu1 %v7745_v21  ;;  %v7796_v57 = vld [vmem:[#allocation2 + $0x1a8] ss:$16 sps:$4 sm:$0xff]   ;;  %v7797_v58 = vld [vmem:[#allocation2 + $0x1c4] ss:$16 sps:$4 sm:$0xff]   ;;  %v7799_v59 = vld [vmem:[#allocation2 + $0x1cc] ss:$16 sps:$4 sm:$0xff]  }
  0xef   :  { %1450 = vmatprep.mubr.bf16.mxu0 %v210_v48  ;;  %1614 = vmatprep.mubr.bf16.mxu1 %v210_v48  ;;  %v7801_v60 = vld [vmem:[#allocation2 + $0x1c0] ss:$16 sps:$4 sm:$0xff]   ;;  %v7802_v61 = vld [vmem:[#allocation2 + $0x1c8] ss:$16 sps:$4 sm:$0xff]   ;;  %v7803_v62 = vld [vmem:[#allocation2 + $0x1e4] ss:$16 sps:$4 sm:$0xff]  }
  0xf0   :  { %v7805_v63 = vld [vmem:[#allocation2 + $0x1ec] ss:$16 sps:$4 sm:$0xff]   ;;  %v7807_v0 = vld [vmem:[#allocation2 + $0x1e0] ss:$16 sps:$4 sm:$0xff]   ;;  %v7808_v1 = vld [vmem:[#allocation2 + $0x1e8] ss:$16 sps:$4 sm:$0xff]  }
  0xf1   :  { %1429 = vmatpush1.bf16.msra.mxu0 %v7747_v22  ;;  %1593 = vmatpush1.bf16.msra.mxu1 %v7748_v23  ;;  %v202_v2 = vld [vmem:[%s9614_s0] sm:$0xff]  ;;  %v7814_v4 = vld [vmem:[#allocation2 + $0x20c] ss:$16 sps:$4 sm:$0xff]   ;;  %v7812_v7 = vld [vmem:[#allocation2 + $0x208] ss:$16 sps:$4 sm:$0xff]   ;;  %s9145_s2 = scalar_lea.hbm %s9629_s15, 16 }
  0xf2   :  { %1430 = vmatprep.subr.bf16.mxu0 %v7749_v24  ;;  %1594 = vmatprep.subr.bf16.mxu1 %v7751_v25  ;;  %v7811_v3 = vld [vmem:[#allocation2 + $0x204] ss:$16 sps:$4 sm:$0xff]   ;;  %v209_v5 = vpack.c.bf16 %v202_v2, %v202_v2  ;;  %v7809_v6 = vld [vmem:[#allocation2 + $0x200] ss:$16 sps:$4 sm:$0xff]   ;;  %v7820_v9 = vld [vmem:[#allocation2 + $0x22c] ss:$16 sps:$4 sm:$0xff]   ;;  %p9146_p12 = scmp.ne.s32.totalorder %s9629_s15, %s9145_s2  ;;  %p9149_p13 = scmp.lt.u32.totalorder %s9145_s2, %s9629_s15 }
  0xf3   :  { %v7817_v8 = vld [vmem:[#allocation2 + $0x224] ss:$16 sps:$4 sm:$0xff]   ;;  %v7815_v10 = vld [vmem:[#allocation2 + $0x220] ss:$16 sps:$4 sm:$0xff]   ;;  %v7818_v11 = vld [vmem:[#allocation2 + $0x228] ss:$16 sps:$4 sm:$0xff]  }
  0xf4   :  { %v7823_v12 = vld [vmem:[#allocation2 + $0x244] ss:$16 sps:$4 sm:$0xff]   ;;  %v7826_v13 = vld [vmem:[#allocation2 + $0x24c] ss:$16 sps:$4 sm:$0xff]   ;;  %v7821_v14 = vld [vmem:[#allocation2 + $0x240] ss:$16 sps:$4 sm:$0xff]   ;;  %p9151_p0 = pnand %p9149_p13, %p9146_p12 }
  0xf5   :  { %1431 = vmatpush1.bf16.msra.mxu0 %v7753_v26  ;;  %1595 = vmatpush1.bf16.msra.mxu1 %v7754_v27  ;;  %v7824_v15 = vld [vmem:[#allocation2 + $0x248] ss:$16 sps:$4 sm:$0xff]   ;;  %v7829_v16 = vld [vmem:[#allocation2 + $0x264] ss:$16 sps:$4 sm:$0xff]   ;;  %v7832_v17 = vld [vmem:[#allocation2 + $0x26c] ss:$16 sps:$4 sm:$0xff]  }
  0xf6   :  { %1432 = vmatprep.subr.bf16.mxu0 %v7755_v28  ;;  %1596 = vmatprep.subr.bf16.mxu1 %v7757_v29  ;;  %v7827_v18 = vld [vmem:[#allocation2 + $0x260] ss:$16 sps:$4 sm:$0xff]   ;;  %v7830_v19 = vld [vmem:[#allocation2 + $0x268] ss:$16 sps:$4 sm:$0xff]   ;;  %v7835_v20 = vld [vmem:[#allocation2 + $0x284] ss:$16 sps:$4 sm:$0xff]  }
  0xf7   :  { %v7838_v21 = vld [vmem:[#allocation2 + $0x28c] ss:$16 sps:$4 sm:$0xff]   ;;  %v7833_v22 = vld [vmem:[#allocation2 + $0x280] ss:$16 sps:$4 sm:$0xff]   ;;  %v7836_v23 = vld [vmem:[#allocation2 + $0x288] ss:$16 sps:$4 sm:$0xff]  }
  0xf8   :  { %v7841_v24 = vld [vmem:[#allocation2 + $0x2a4] ss:$16 sps:$4 sm:$0xff]   ;;  %v7844_v25 = vld [vmem:[#allocation2 + $0x2ac] ss:$16 sps:$4 sm:$0xff]   ;;  %v7839_v26 = vld [vmem:[#allocation2 + $0x2a0] ss:$16 sps:$4 sm:$0xff]  }
  0xf9   :  { %1433 = vmatpush1.bf16.msra.mxu0 %v7759_v30  ;;  %1597 = vmatpush1.bf16.msra.mxu1 %v7760_v31  ;;  %v7842_v27 = vld [vmem:[#allocation2 + $0x2a8] ss:$16 sps:$4 sm:$0xff]   ;;  %v7847_v28 = vld [vmem:[#allocation2 + $0x2c4] ss:$16 sps:$4 sm:$0xff]   ;;  %v7850_v29 = vld [vmem:[#allocation2 + $0x2cc] ss:$16 sps:$4 sm:$0xff]  }
  0xfa   :  { %1434 = vmatprep.subr.bf16.mxu0 %v7761_v32  ;;  %1598 = vmatprep.subr.bf16.mxu1 %v7763_v33  ;;  %v205_v30 = vld [vmem:[%s9614_s0 + $0x18] sm:$0xff]  ;;  %v7845_v31 = vld [vmem:[#allocation2 + $0x2c0] ss:$16 sps:$4 sm:$0xff]   ;;  %v7871_v46 = vld [vmem:[#allocation2 + $0x344] ss:$16 sps:$4 sm:$0xff]  }
  0xfb   :  { %v212_v32 = vpack.c.bf16 %v205_v30, %v205_v30  ;;  %v7848_v33 = vld [vmem:[#allocation2 + $0x2c8] ss:$16 sps:$4 sm:$0xff]   ;;  %v7869_v48 = vld [vmem:[#allocation2 + $0x340] ss:$16 sps:$4 sm:$0xff]   ;;  %v7901_v2 = vld [vmem:[#allocation2 + $0x3e4] ss:$16 sps:$4 sm:$0xff]  }
  0xfc   :  { %v7937_v30 = vld [vmem:[#allocation2 + $0x4a4] ss:$16 sps:$4 sm:$0xff]  }
  0xfd   :  { %1435 = vmatpush1.bf16.msra.mxu0 %v7765_v34  ;;  %1599 = vmatpush1.bf16.msra.mxu1 %v7766_v35  ;;  %v7853_v34 = vld [vmem:[#allocation2 + $0x2e4] ss:$16 sps:$4 sm:$0xff]   ;;  %v7856_v35 = vld [vmem:[#allocation2 + $0x2ec] ss:$16 sps:$4 sm:$0xff]  }
  0xfe   :  { %1436 = vmatprep.subr.bf16.mxu0 %v7767_v36  ;;  %1600 = vmatprep.subr.bf16.mxu1 %v7769_v37  ;;  %v7851_v36 = vld [vmem:[#allocation2 + $0x2e0] ss:$16 sps:$4 sm:$0xff]   ;;  %v7854_v37 = vld [vmem:[#allocation2 + $0x2e8] ss:$16 sps:$4 sm:$0xff]  }
 0x101   :  { %1437 = vmatpush1.bf16.msra.mxu0 %v7771_v38  ;;  %1601 = vmatpush1.bf16.msra.mxu1 %v7772_v39  ;;  %v7859_v38 = vld [vmem:[#allocation2 + $0x304] ss:$16 sps:$4 sm:$0xff]   ;;  %v7862_v39 = vld [vmem:[#allocation2 + $0x30c] ss:$16 sps:$4 sm:$0xff]  }
 0x102   :  { %1438 = vmatprep.subr.bf16.mxu0 %v7773_v40  ;;  %1602 = vmatprep.subr.bf16.mxu1 %v7775_v41  ;;  %v7857_v40 = vld [vmem:[#allocation2 + $0x300] ss:$16 sps:$4 sm:$0xff]   ;;  %v7860_v41 = vld [vmem:[#allocation2 + $0x308] ss:$16 sps:$4 sm:$0xff]  }
 0x105   :  { %1439 = vmatpush1.bf16.msra.mxu0 %v7777_v42  ;;  %1603 = vmatpush1.bf16.msra.mxu1 %v7778_v43  ;;  %v7865_v42 = vld [vmem:[#allocation2 + $0x324] ss:$16 sps:$4 sm:$0xff]   ;;  %v7868_v43 = vld [vmem:[#allocation2 + $0x32c] ss:$16 sps:$4 sm:$0xff]  }
 0x106   :  { %1440 = vmatprep.subr.bf16.mxu0 %v7779_v44  ;;  %1604 = vmatprep.subr.bf16.mxu1 %v7781_v45  ;;  %v7863_v44 = vld [vmem:[#allocation2 + $0x320] ss:$16 sps:$4 sm:$0xff]   ;;  %v7866_v45 = vld [vmem:[#allocation2 + $0x328] ss:$16 sps:$4 sm:$0xff]  }
 0x109   :  { %1441 = vmatpush1.bf16.msra.mxu0 %v7783_v47  ;;  %1605 = vmatpush1.bf16.msra.mxu1 %v7784_v49  ;;  %v7874_v47 = vld [vmem:[#allocation2 + $0x34c] ss:$16 sps:$4 sm:$0xff]   ;;  %v7872_v49 = vld [vmem:[#allocation2 + $0x348] ss:$16 sps:$4 sm:$0xff]  }
 0x10a   :  { %1442 = vmatprep.subr.bf16.mxu0 %v7785_v50  ;;  %1606 = vmatprep.subr.bf16.mxu1 %v7787_v51  ;;  %v7877_v50 = vld [vmem:[#allocation2 + $0x364] ss:$16 sps:$4 sm:$0xff]   ;;  %v7880_v51 = vld [vmem:[#allocation2 + $0x36c] ss:$16 sps:$4 sm:$0xff]  }
 0x10d   :  { %1443 = vmatpush1.bf16.msra.mxu0 %v7789_v52  ;;  %1607 = vmatpush1.bf16.msra.mxu1 %v7790_v53  ;;  %v7875_v52 = vld [vmem:[#allocation2 + $0x360] ss:$16 sps:$4 sm:$0xff]   ;;  %v7878_v53 = vld [vmem:[#allocation2 + $0x368] ss:$16 sps:$4 sm:$0xff]  }
 0x10e   :  { %1444 = vmatprep.subr.bf16.mxu0 %v7791_v54  ;;  %1608 = vmatprep.subr.bf16.mxu1 %v7793_v55  ;;  %v7883_v54 = vld [vmem:[#allocation2 + $0x384] ss:$16 sps:$4 sm:$0xff]   ;;  %v7886_v55 = vld [vmem:[#allocation2 + $0x38c] ss:$16 sps:$4 sm:$0xff]  }
 0x111   :  { %1445 = vmatpush1.bf16.msra.mxu0 %v7795_v56  ;;  %1609 = vmatpush1.bf16.msra.mxu1 %v7796_v57  ;;  %v7881_v56 = vld [vmem:[#allocation2 + $0x380] ss:$16 sps:$4 sm:$0xff]   ;;  %v7884_v57 = vld [vmem:[#allocation2 + $0x388] ss:$16 sps:$4 sm:$0xff]  }
 0x112   :  { %1446 = vmatprep.subr.bf16.mxu0 %v7797_v58  ;;  %1610 = vmatprep.subr.bf16.mxu1 %v7799_v59  ;;  %v7889_v58 = vld [vmem:[#allocation2 + $0x3a4] ss:$16 sps:$4 sm:$0xff]   ;;  %v7892_v59 = vld [vmem:[#allocation2 + $0x3ac] ss:$16 sps:$4 sm:$0xff]  }
 0x115   :  { %1447 = vmatpush1.bf16.msra.mxu0 %v7801_v60  ;;  %1611 = vmatpush1.bf16.msra.mxu1 %v7802_v61  ;;  %v7887_v60 = vld [vmem:[#allocation2 + $0x3a0] ss:$16 sps:$4 sm:$0xff]   ;;  %v7890_v61 = vld [vmem:[#allocation2 + $0x3a8] ss:$16 sps:$4 sm:$0xff]  }
 0x116   :  { %1448 = vmatprep.subr.bf16.mxu0 %v7803_v62  ;;  %1612 = vmatprep.subr.bf16.mxu1 %v7805_v63  ;;  %v7895_v62 = vld [vmem:[#allocation2 + $0x3c4] ss:$16 sps:$4 sm:$0xff]   ;;  %v7898_v63 = vld [vmem:[#allocation2 + $0x3cc] ss:$16 sps:$4 sm:$0xff]  }
 0x119   :  { %1449 = vmatpush1.bf16.msra.mxu0 %v7807_v0  ;;  %1613 = vmatpush1.bf16.msra.mxu1 %v7808_v1  ;;  %v7893_v0 = vld [vmem:[#allocation2 + $0x3c0] ss:$16 sps:$4 sm:$0xff]   ;;  %v7896_v1 = vld [vmem:[#allocation2 + $0x3c8] ss:$16 sps:$4 sm:$0xff]  }
 0x11a   :  { %1459 = vmatprep.subr.bf16.mxu0 %v7811_v3  ;;  %1623 = vmatprep.subr.bf16.mxu1 %v7814_v4  ;;  %v7904_v3 = vld [vmem:[#allocation2 + $0x3ec] ss:$16 sps:$4 sm:$0xff]   ;;  %v7899_v4 = vld [vmem:[#allocation2 + $0x3e0] ss:$16 sps:$4 sm:$0xff]  }
 0x11c   :  { %1451 = vmatmul.mubr.bf16.vlgmr.msra.gmra.mrb[0].mxu0 %v209_v5  ;;  %1615 = vmatmul.mubr.bf16.vlgmr.msra.gmra.mrb[0].mxu1 %v209_v5  ;;  %v7902_v5 = vld [vmem:[#allocation2 + $0x3e8] ss:$16 sps:$4 sm:$0xff]  }
 0x11d   :  { %1460 = vmatpush1.bf16.msra.mxu0 %v7809_v6  ;;  %1624 = vmatpush1.bf16.msra.mxu1 %v7812_v7  ;;  %v7907_v6 = vld [vmem:[#allocation2 + $0x404] ss:$16 sps:$4 sm:$0xff]  }
 0x11e   :  { %1461 = vmatprep.subr.bf16.mxu0 %v7817_v8  ;;  %1625 = vmatprep.subr.bf16.mxu1 %v7820_v9  ;;  %v204_v7 = vld [vmem:[%s9614_s0 + $0x10] sm:$0xff]  ;;  %v7910_v8 = vld [vmem:[#allocation2 + $0x40c] ss:$16 sps:$4 sm:$0xff]  }
 0x11f   :  { %1491 = vmatprep.mubr.bf16.mxu0 %v212_v32  ;;  %1655 = vmatprep.mubr.bf16.mxu1 %v212_v32  ;;  %v7905_v9 = vld [vmem:[#allocation2 + $0x400] ss:$16 sps:$4 sm:$0xff]  }
 0x120   :  { %v7935_v32 = vld [vmem:[#allocation2 + $0x4a0] ss:$16 sps:$4 sm:$0xff]  }
 0x121   :  { %1462 = vmatpush1.bf16.msra.mxu0 %v7815_v10  ;;  %1626 = vmatpush1.bf16.msra.mxu1 %v7818_v11  ;;  %v211_v10 = vpack.c.bf16 %v204_v7, %v204_v7  ;;  %v7908_v11 = vld [vmem:[#allocation2 + $0x408] ss:$16 sps:$4 sm:$0xff]   ;;  %v8000_v7 = vld [vmem:[#allocation2 + $0x5ec] ss:$16 sps:$4 sm:$0xff]  }
 0x122   :  { %1463 = vmatprep.subr.bf16.mxu0 %v7823_v12  ;;  %1627 = vmatprep.subr.bf16.mxu1 %v7826_v13  ;;  %v7913_v12 = vld [vmem:[#allocation2 + $0x424] ss:$16 sps:$4 sm:$0xff]   ;;  %v7916_v13 = vld [vmem:[#allocation2 + $0x42c] ss:$16 sps:$4 sm:$0xff]  }
 0x125   :  { %1464 = vmatpush1.bf16.msra.mxu0 %v7821_v14  ;;  %1628 = vmatpush1.bf16.msra.mxu1 %v7824_v15  ;;  %v207_v14 = vld [vmem:[%s9614_s0 + $0x28] sm:$0xff] }
 0x126   :  { %1465 = vmatprep.subr.bf16.mxu0 %v7829_v16  ;;  %1629 = vmatprep.subr.bf16.mxu1 %v7832_v17  ;;  %v214_v15 = vpack.c.bf16 %v207_v14, %v207_v14  ;;  %v7911_v16 = vld [vmem:[#allocation2 + $0x420] ss:$16 sps:$4 sm:$0xff]   ;;  %v7914_v17 = vld [vmem:[#allocation2 + $0x428] ss:$16 sps:$4 sm:$0xff]  }
 0x127   :  { %v8004_v14 = vld [vmem:[#allocation2 + $0x608] ss:$16 sps:$4 sm:$0xff]  }
 0x129   :  { %1466 = vmatpush1.bf16.msra.mxu0 %v7827_v18  ;;  %1630 = vmatpush1.bf16.msra.mxu1 %v7830_v19  ;;  %v7919_v18 = vld [vmem:[#allocation2 + $0x444] ss:$16 sps:$4 sm:$0xff]   ;;  %v7922_v19 = vld [vmem:[#allocation2 + $0x44c] ss:$16 sps:$4 sm:$0xff]  }
 0x12a   :  { %1467 = vmatprep.subr.bf16.mxu0 %v7835_v20  ;;  %1631 = vmatprep.subr.bf16.mxu1 %v7838_v21  ;;  %v7917_v20 = vld [vmem:[#allocation2 + $0x440] ss:$16 sps:$4 sm:$0xff]   ;;  %v7920_v21 = vld [vmem:[#allocation2 + $0x448] ss:$16 sps:$4 sm:$0xff]  }
 0x12d   :  { %1468 = vmatpush1.bf16.msra.mxu0 %v7833_v22  ;;  %1632 = vmatpush1.bf16.msra.mxu1 %v7836_v23  ;;  %v7925_v22 = vld [vmem:[#allocation2 + $0x464] ss:$16 sps:$4 sm:$0xff]   ;;  %v7928_v23 = vld [vmem:[#allocation2 + $0x46c] ss:$16 sps:$4 sm:$0xff]  }
 0x12e   :  { %1469 = vmatprep.subr.bf16.mxu0 %v7841_v24  ;;  %1633 = vmatprep.subr.bf16.mxu1 %v7844_v25  ;;  %v7923_v24 = vld [vmem:[#allocation2 + $0x460] ss:$16 sps:$4 sm:$0xff]   ;;  %v7926_v25 = vld [vmem:[#allocation2 + $0x468] ss:$16 sps:$4 sm:$0xff]  }
 0x131   :  { %1470 = vmatpush1.bf16.msra.mxu0 %v7839_v26  ;;  %1634 = vmatpush1.bf16.msra.mxu1 %v7842_v27  ;;  %v7931_v26 = vld [vmem:[#allocation2 + $0x484] ss:$16 sps:$4 sm:$0xff]   ;;  %v7934_v27 = vld [vmem:[#allocation2 + $0x48c] ss:$16 sps:$4 sm:$0xff]  }
 0x132   :  { %1471 = vmatprep.subr.bf16.mxu0 %v7847_v28  ;;  %1635 = vmatprep.subr.bf16.mxu1 %v7850_v29  ;;  %v7929_v28 = vld [vmem:[#allocation2 + $0x480] ss:$16 sps:$4 sm:$0xff]   ;;  %v7932_v29 = vld [vmem:[#allocation2 + $0x488] ss:$16 sps:$4 sm:$0xff]  }
 0x135   :  { %1472 = vmatpush1.bf16.msra.mxu0 %v7845_v31  ;;  %1636 = vmatpush1.bf16.msra.mxu1 %v7848_v33  ;;  %v7940_v31 = vld [vmem:[#allocation2 + $0x4ac] ss:$16 sps:$4 sm:$0xff]   ;;  %v7938_v33 = vld [vmem:[#allocation2 + $0x4a8] ss:$16 sps:$4 sm:$0xff]  }
 0x136   :  { %1473 = vmatprep.subr.bf16.mxu0 %v7853_v34  ;;  %1637 = vmatprep.subr.bf16.mxu1 %v7856_v35  ;;  %v7943_v34 = vld [vmem:[#allocation2 + $0x4c4] ss:$16 sps:$4 sm:$0xff]   ;;  %v7946_v35 = vld [vmem:[#allocation2 + $0x4cc] ss:$16 sps:$4 sm:$0xff]  }
 0x139   :  { %1474 = vmatpush1.bf16.msra.mxu0 %v7851_v36  ;;  %1638 = vmatpush1.bf16.msra.mxu1 %v7854_v37  ;;  %v7941_v36 = vld [vmem:[#allocation2 + $0x4c0] ss:$16 sps:$4 sm:$0xff]   ;;  %v7944_v37 = vld [vmem:[#allocation2 + $0x4c8] ss:$16 sps:$4 sm:$0xff]  }
 0x13a   :  { %1475 = vmatprep.subr.bf16.mxu0 %v7859_v38  ;;  %1639 = vmatprep.subr.bf16.mxu1 %v7862_v39  ;;  %v7949_v38 = vld [vmem:[#allocation2 + $0x4e4] ss:$16 sps:$4 sm:$0xff]   ;;  %v7952_v39 = vld [vmem:[#allocation2 + $0x4ec] ss:$16 sps:$4 sm:$0xff]  }
 0x13d   :  { %1476 = vmatpush1.bf16.msra.mxu0 %v7857_v40  ;;  %1640 = vmatpush1.bf16.msra.mxu1 %v7860_v41  ;;  %v7947_v40 = vld [vmem:[#allocation2 + $0x4e0] ss:$16 sps:$4 sm:$0xff]   ;;  %v7950_v41 = vld [vmem:[#allocation2 + $0x4e8] ss:$16 sps:$4 sm:$0xff]  }
 0x13e   :  { %1477 = vmatprep.subr.bf16.mxu0 %v7865_v42  ;;  %1641 = vmatprep.subr.bf16.mxu1 %v7868_v43  ;;  %v7955_v42 = vld [vmem:[#allocation2 + $0x504] ss:$16 sps:$4 sm:$0xff]   ;;  %v7958_v43 = vld [vmem:[#allocation2 + $0x50c] ss:$16 sps:$4 sm:$0xff]  }
 0x141   :  { %1478 = vmatpush1.bf16.msra.mxu0 %v7863_v44  ;;  %1642 = vmatpush1.bf16.msra.mxu1 %v7866_v45  ;;  %v7953_v44 = vld [vmem:[#allocation2 + $0x500] ss:$16 sps:$4 sm:$0xff]   ;;  %v7956_v45 = vld [vmem:[#allocation2 + $0x508] ss:$16 sps:$4 sm:$0xff]  }
 0x142   :  { %1479 = vmatprep.subr.bf16.mxu0 %v7871_v46  ;;  %1643 = vmatprep.subr.bf16.mxu1 %v7874_v47  ;;  %v7961_v46 = vld [vmem:[#allocation2 + $0x524] ss:$16 sps:$4 sm:$0xff]   ;;  %v7964_v47 = vld [vmem:[#allocation2 + $0x52c] ss:$16 sps:$4 sm:$0xff]  }
 0x145   :  { %1480 = vmatpush1.bf16.msra.mxu0 %v7869_v48  ;;  %1644 = vmatpush1.bf16.msra.mxu1 %v7872_v49  ;;  %v7959_v48 = vld [vmem:[#allocation2 + $0x520] ss:$16 sps:$4 sm:$0xff]   ;;  %v7962_v49 = vld [vmem:[#allocation2 + $0x528] ss:$16 sps:$4 sm:$0xff]  }
 0x146   :  { %1481 = vmatprep.subr.bf16.mxu0 %v7877_v50  ;;  %1645 = vmatprep.subr.bf16.mxu1 %v7880_v51  ;;  %v7967_v50 = vld [vmem:[#allocation2 + $0x544] ss:$16 sps:$4 sm:$0xff]   ;;  %v7970_v51 = vld [vmem:[#allocation2 + $0x54c] ss:$16 sps:$4 sm:$0xff]  }
 0x149   :  { %1482 = vmatpush1.bf16.msra.mxu0 %v7875_v52  ;;  %1646 = vmatpush1.bf16.msra.mxu1 %v7878_v53  ;;  %v7965_v52 = vld [vmem:[#allocation2 + $0x540] ss:$16 sps:$4 sm:$0xff]   ;;  %v7968_v53 = vld [vmem:[#allocation2 + $0x548] ss:$16 sps:$4 sm:$0xff]  }
 0x14a   :  { %1483 = vmatprep.subr.bf16.mxu0 %v7883_v54  ;;  %1647 = vmatprep.subr.bf16.mxu1 %v7886_v55  ;;  %v7973_v54 = vld [vmem:[#allocation2 + $0x564] ss:$16 sps:$4 sm:$0xff]   ;;  %v7976_v55 = vld [vmem:[#allocation2 + $0x56c] ss:$16 sps:$4 sm:$0xff]  }
 0x14d   :  { %1484 = vmatpush1.bf16.msra.mxu0 %v7881_v56  ;;  %1648 = vmatpush1.bf16.msra.mxu1 %v7884_v57  ;;  %v7971_v56 = vld [vmem:[#allocation2 + $0x560] ss:$16 sps:$4 sm:$0xff]   ;;  %v7974_v57 = vld [vmem:[#allocation2 + $0x568] ss:$16 sps:$4 sm:$0xff]  }
 0x14e   :  { %1485 = vmatprep.subr.bf16.mxu0 %v7889_v58  ;;  %1649 = vmatprep.subr.bf16.mxu1 %v7892_v59  ;;  %v7979_v58 = vld [vmem:[#allocation2 + $0x584] ss:$16 sps:$4 sm:$0xff]   ;;  %v7982_v59 = vld [vmem:[#allocation2 + $0x58c] ss:$16 sps:$4 sm:$0xff]  }
 0x151   :  { %1486 = vmatpush1.bf16.msra.mxu0 %v7887_v60  ;;  %1650 = vmatpush1.bf16.msra.mxu1 %v7890_v61  ;;  %v7977_v60 = vld [vmem:[#allocation2 + $0x580] ss:$16 sps:$4 sm:$0xff]   ;;  %v7980_v61 = vld [vmem:[#allocation2 + $0x588] ss:$16 sps:$4 sm:$0xff]  }
 0x152   :  { %1487 = vmatprep.subr.bf16.mxu0 %v7895_v62  ;;  %1651 = vmatprep.subr.bf16.mxu1 %v7898_v63  ;;  %v7985_v62 = vld [vmem:[#allocation2 + $0x5a4] ss:$16 sps:$4 sm:$0xff]   ;;  %v7988_v63 = vld [vmem:[#allocation2 + $0x5ac] ss:$16 sps:$4 sm:$0xff]  }
 0x155   :  { %1488 = vmatpush1.bf16.msra.mxu0 %v7893_v0  ;;  %1652 = vmatpush1.bf16.msra.mxu1 %v7896_v1  ;;  %v7983_v0 = vld [vmem:[#allocation2 + $0x5a0] ss:$16 sps:$4 sm:$0xff]   ;;  %v7986_v1 = vld [vmem:[#allocation2 + $0x5a8] ss:$16 sps:$4 sm:$0xff]  }
 0x156   :  { %1489 = vmatprep.subr.bf16.mxu0 %v7901_v2  ;;  %1653 = vmatprep.subr.bf16.mxu1 %v7904_v3  ;;  %v7991_v2 = vld [vmem:[#allocation2 + $0x5c4] ss:$16 sps:$4 sm:$0xff]   ;;  %v7994_v3 = vld [vmem:[#allocation2 + $0x5cc] ss:$16 sps:$4 sm:$0xff]  }
 0x159   :  { %1490 = vmatpush1.bf16.msra.mxu0 %v7899_v4  ;;  %1654 = vmatpush1.bf16.msra.mxu1 %v7902_v5  ;;  %v7989_v4 = vld [vmem:[#allocation2 + $0x5c0] ss:$16 sps:$4 sm:$0xff]   ;;  %v7992_v5 = vld [vmem:[#allocation2 + $0x5c8] ss:$16 sps:$4 sm:$0xff]  }
 0x15a   :  { %1500 = vmatprep.subr.bf16.mxu0 %v7907_v6  ;;  %1664 = vmatprep.subr.bf16.mxu1 %v7910_v8  ;;  %v7997_v6 = vld [vmem:[#allocation2 + $0x5e4] ss:$16 sps:$4 sm:$0xff]   ;;  %v7995_v8 = vld [vmem:[#allocation2 + $0x5e0] ss:$16 sps:$4 sm:$0xff]  }
 0x15c   :  { %1492 = vmatmul.mubr.bf16.vlgmr.msra.gmra.mrb[0].mxu0 %v211_v10  ;;  %1656 = vmatmul.mubr.bf16.vlgmr.msra.gmra.mrb[0].mxu1 %v211_v10  ;;  %v206_v10 = vld [vmem:[%s9614_s0 + $0x20] sm:$0xff] }
 0x15d   :  { %1501 = vmatpush1.bf16.msra.mxu0 %v7905_v9  ;;  %1665 = vmatpush1.bf16.msra.mxu1 %v7908_v11  ;;  %v7998_v9 = vld [vmem:[#allocation2 + $0x5e8] ss:$16 sps:$4 sm:$0xff]   ;;  %v8003_v11 = vld [vmem:[#allocation2 + $0x604] ss:$16 sps:$4 sm:$0xff]  }
 0x15e   :  { %1502 = vmatprep.subr.bf16.mxu0 %v7913_v12  ;;  %1666 = vmatprep.subr.bf16.mxu1 %v7916_v13  ;;  %v8006_v12 = vld [vmem:[#allocation2 + $0x60c] ss:$16 sps:$4 sm:$0xff]   ;;  %v8001_v13 = vld [vmem:[#allocation2 + $0x600] ss:$16 sps:$4 sm:$0xff]  }
 0x15f   :  { %1532 = vmatprep.mubr.bf16.mxu0 %v214_v15  ;;  %1696 = vmatprep.mubr.bf16.mxu1 %v214_v15  ;;  %v213_v15 = vpack.c.bf16 %v206_v10, %v206_v10 }
 0x161   :  { %1503 = vmatpush1.bf16.msra.mxu0 %v7911_v16  ;;  %1667 = vmatpush1.bf16.msra.mxu1 %v7914_v17  ;;  %v8007_v16 = vld [vmem:[#allocation7 + $0x40] sm:$0xff]  }
 0x162   :  { %1504 = vmatprep.subr.bf16.mxu0 %v7919_v18  ;;  %1668 = vmatprep.subr.bf16.mxu1 %v7922_v19  ;;  %v8008_v17 = vld [vmem:[#allocation7 + $0xc0] sm:$0xff]   ;;  %v9193_v18 = vmov 0   ;;  %v208_v19 = vld [vmem:[%s9614_s0 + $0x30] sm:$0xff] }
 0x165   :  { %1505 = vmatpush1.bf16.msra.mxu0 %v7917_v20  ;;  %1669 = vmatpush1.bf16.msra.mxu1 %v7920_v21  ;;  %v8009_v20 = vld [vmem:[#allocation7] sm:$0xff]  }
 0x166   :  { %1506 = vmatprep.subr.bf16.mxu0 %v7925_v22  ;;  %1670 = vmatprep.subr.bf16.mxu1 %v7928_v23  ;;  %v8010_v21 = vld [vmem:[#allocation7 + $0x80] sm:$0xff]   ;;  %v215_v22 = vpack.c.bf16 %v208_v19, %v208_v19  ;;  %v8011_v23 = vld [vmem:[#allocation7 + $0x48] sm:$0xff]  }
 0x169   :  { %1507 = vmatpush1.bf16.msra.mxu0 %v7923_v24  ;;  %1671 = vmatpush1.bf16.msra.mxu1 %v7926_v25  ;;  %v8012_v24 = vld [vmem:[#allocation7 + $0xc8] sm:$0xff]  }
 0x16a   :  { %1508 = vmatprep.subr.bf16.mxu0 %v7931_v26  ;;  %1672 = vmatprep.subr.bf16.mxu1 %v7934_v27  ;;  %v8013_v25 = vld [vmem:[#allocation7 + $0x8] sm:$0xff]   ;;  %v8015_v27 = vld [vmem:[#allocation7 + $0x50] sm:$0xff]  }
 0x16b   :  { %v8014_v26 = vld [vmem:[#allocation7 + $0x88] sm:$0xff]  }
 0x16d   :  { %1509 = vmatpush1.bf16.msra.mxu0 %v7929_v28  ;;  %1673 = vmatpush1.bf16.msra.mxu1 %v7932_v29  ;;  %v8016_v28 = vld [vmem:[#allocation7 + $0xd0] sm:$0xff]  }
 0x16e   :  { %1510 = vmatprep.subr.bf16.mxu0 %v7937_v30  ;;  %1674 = vmatprep.subr.bf16.mxu1 %v7940_v31  ;;  %v8017_v29 = vld [vmem:[#allocation7 + $0x10] sm:$0xff]   ;;  %v8019_v31 = vld [vmem:[#allocation7 + $0x58] sm:$0xff]  }
 0x16f   :  { %v8018_v30 = vld [vmem:[#allocation7 + $0x90] sm:$0xff]  }
 0x171   :  { %1511 = vmatpush1.bf16.msra.mxu0 %v7935_v32  ;;  %1675 = vmatpush1.bf16.msra.mxu1 %v7938_v33  ;;  %v8020_v32 = vld [vmem:[#allocation7 + $0xd8] sm:$0xff]  }
 0x172   :  { %1512 = vmatprep.subr.bf16.mxu0 %v7943_v34  ;;  %1676 = vmatprep.subr.bf16.mxu1 %v7946_v35  ;;  %v8021_v33 = vld [vmem:[#allocation7 + $0x18] sm:$0xff]   ;;  %v8023_v35 = vld [vmem:[#allocation7 + $0x60] sm:$0xff]  }
 0x173   :  { %v8022_v34 = vld [vmem:[#allocation7 + $0x98] sm:$0xff]  }
 0x175   :  { %1513 = vmatpush1.bf16.msra.mxu0 %v7941_v36  ;;  %1677 = vmatpush1.bf16.msra.mxu1 %v7944_v37  ;;  %v8024_v36 = vld [vmem:[#allocation7 + $0xe0] sm:$0xff]  }
 0x176   :  { %1514 = vmatprep.subr.bf16.mxu0 %v7949_v38  ;;  %1678 = vmatprep.subr.bf16.mxu1 %v7952_v39  ;;  %v8025_v37 = vld [vmem:[#allocation7 + $0x20] sm:$0xff]   ;;  %v8027_v39 = vld [vmem:[#allocation7 + $0x68] sm:$0xff]  }
 0x177   :  { %v8026_v38 = vld [vmem:[#allocation7 + $0xa0] sm:$0xff]  }
 0x179   :  { %1515 = vmatpush1.bf16.msra.mxu0 %v7947_v40  ;;  %1679 = vmatpush1.bf16.msra.mxu1 %v7950_v41  ;;  %v8028_v40 = vld [vmem:[#allocation7 + $0xe8] sm:$0xff]  }
 0x17a   :  { %1516 = vmatprep.subr.bf16.mxu0 %v7955_v42  ;;  %1680 = vmatprep.subr.bf16.mxu1 %v7958_v43  ;;  %v8029_v41 = vld [vmem:[#allocation7 + $0x28] sm:$0xff]   ;;  %v8031_v43 = vld [vmem:[#allocation7 + $0x70] sm:$0xff]  }
 0x17b   :  { %v8030_v42 = vld [vmem:[#allocation7 + $0xa8] sm:$0xff]  }
 0x17d   :  { %1517 = vmatpush1.bf16.msra.mxu0 %v7953_v44  ;;  %1681 = vmatpush1.bf16.msra.mxu1 %v7956_v45  ;;  %v8032_v44 = vld [vmem:[#allocation7 + $0xf0] sm:$0xff]  }
 0x17e   :  { %1518 = vmatprep.subr.bf16.mxu0 %v7961_v46  ;;  %1682 = vmatprep.subr.bf16.mxu1 %v7964_v47  ;;  %v8033_v45 = vld [vmem:[#allocation7 + $0x30] sm:$0xff]   ;;  %v8035_v47 = vld [vmem:[#allocation7 + $0x78] sm:$0xff]  }
 0x17f   :  { %v8034_v46 = vld [vmem:[#allocation7 + $0xb0] sm:$0xff]  }
 0x181   :  { %1519 = vmatpush1.bf16.msra.mxu0 %v7959_v48  ;;  %1683 = vmatpush1.bf16.msra.mxu1 %v7962_v49  ;;  %v8036_v48 = vld [vmem:[#allocation7 + $0xf8] sm:$0xff]  }
 0x182   :  { %1520 = vmatprep.subr.bf16.mxu0 %v7967_v50  ;;  %1684 = vmatprep.subr.bf16.mxu1 %v7970_v51  ;;  %v8037_v49 = vld [vmem:[#allocation7 + $0x38] sm:$0xff]   ;;  %v8041_v51 = vld [vmem:[#allocation10 + $0x4] ss:$8 sps:$4 sm:$0xff]  }
 0x183   :  { %v8038_v50 = vld [vmem:[#allocation7 + $0xb8] sm:$0xff]  }
 0x185   :  { %1521 = vmatpush1.bf16.msra.mxu0 %v7965_v52  ;;  %1685 = vmatpush1.bf16.msra.mxu1 %v7968_v53  ;;  %v414_v52 = vlaneseq }
 0x186   :  { %1522 = vmatprep.subr.bf16.mxu0 %v7973_v54  ;;  %1686 = vmatprep.subr.bf16.mxu1 %v7976_v55 }
 0x187   :  { %v9462_v53 = vshrl.u32 %v414_v52, 7 }
 0x189   :  { %1523 = vmatpush1.bf16.msra.mxu0 %v7971_v56  ;;  %1687 = vmatpush1.bf16.msra.mxu1 %v7974_v57  ;;  %v9465_v54 = vsub.s32 0, %v9462_v53  ;;  %v9468_v55 = vsub.s32 2, %v9462_v53  ;;  %v412_v56 = vld [vmem:[#allocation5] sm:$0xf]  ;;  %v9471_v57 = vsub.s32 1, %v9462_v53 }
 0x18a   :  { %1524 = vmatprep.subr.bf16.mxu0 %v7979_v58  ;;  %1688 = vmatprep.subr.bf16.mxu1 %v7982_v59  ;;  %v9474_v58 = vsub.s32 3, %v9462_v53 }
 0x18b   :  { %v417_v59 = vrot.slane %v412_v56, %v9465_v54 }
 0x18d   :  { %1525 = vmatpush1.bf16.msra.mxu0 %v7977_v60  ;;  %1689 = vmatpush1.bf16.msra.mxu1 %v7980_v61  ;;  %v425_v60 = vrot.slane %v412_v56, %v9468_v55  ;;  %v421_v61 = vrot.slane %v412_v56, %v9471_v57 }
 0x18e   :  { %1526 = vmatprep.subr.bf16.mxu0 %v7985_v62  ;;  %1690 = vmatprep.subr.bf16.mxu1 %v7988_v63  ;;  %v429_v62 = vrot.slane %v412_v56, %v9474_v58 }
 0x191   :  { %1527 = vmatpush1.bf16.msra.mxu0 %v7983_v0  ;;  %1691 = vmatpush1.bf16.msra.mxu1 %v7986_v1 }
 0x192   :  { %1528 = vmatprep.subr.bf16.mxu0 %v7991_v2  ;;  %1692 = vmatprep.subr.bf16.mxu1 %v7994_v3 }
 0x195   :  { %1529 = vmatpush1.bf16.msra.mxu0 %v7989_v4  ;;  %1693 = vmatpush1.bf16.msra.mxu1 %v7992_v5 }
 0x196   :  { %1530 = vmatprep.subr.bf16.mxu0 %v7997_v6  ;;  %1694 = vmatprep.subr.bf16.mxu1 %v8000_v7 }
 0x199   :  { %1531 = vmatpush1.bf16.msra.mxu0 %v7995_v8  ;;  %1695 = vmatpush1.bf16.msra.mxu1 %v7998_v9 }
 0x19a   :  { %1541 = vmatprep.subr.bf16.mxu0 %v8003_v11  ;;  %1705 = vmatprep.subr.bf16.mxu1 %v8006_v12 }
 0x19c   :  { %1533 = vmatmul.mubr.bf16.vlgmr.msra.gmra.mrb[0].mxu0 %v213_v15  ;;  %1697 = vmatmul.mubr.bf16.vlgmr.msra.gmra.mrb[0].mxu1 %v213_v15 }
 0x19d   :  { %1542 = vmatpush1.bf16.msra.mxu0 %v8001_v13  ;;  %1706 = vmatpush1.bf16.msra.mxu1 %v8004_v14 }
 0x19e   :  { %1573 = vmatprep.mubr.bf16.mxu0 %v9193_v18  ;;  %1737 = vmatprep.mubr.bf16.mxu1 %v9193_v18 }
 0x19f   :  { %7501 = vmatprep.subr.bf16.mxu0 %v8007_v16  ;;  %7523 = vmatprep.subr.bf16.mxu1 %v8008_v17  ;;  %v8039_v17 = vld [vmem:[#allocation10] ss:$8 sps:$4 sm:$0xff]  }
 0x1a8   :  { %6889 = vmatmul.mubr.msk.bf16.vlgmr.msra.gmra.mrb[0].mxu0 %vm1414_vm0, %v215_v22  ;;  %6890 = vmatmul.mubr.msk.bf16.vlgmr.msra.gmra.mrb[0].mxu1 %vm1414_vm0, %v215_v22  ;;  %v8042_v22 = vld [vmem:[#allocation10 + $0x10] ss:$8 sps:$4 sm:$0xff]  }
 0x1a9   :  { %7502 = vmatpush3.bf16.msra.mxu0 %v8009_v20  ;;  %7524 = vmatpush3.bf16.msra.mxu1 %v8010_v21  ;;  %v8044_v21 = vld [vmem:[#allocation10 + $0x14] ss:$8 sps:$4 sm:$0xff]  }
 0x1aa   :  { %7503 = vmatprep.subr.bf16.mxu0 %v8011_v23  ;;  %7525 = vmatprep.subr.bf16.mxu1 %v8012_v24  ;;  %v8047_v23 = vld [vmem:[#allocation10 + $0x24] ss:$8 sps:$4 sm:$0xff]   ;;  %v8045_v24 = vld [vmem:[#allocation10 + $0x20] ss:$8 sps:$4 sm:$0xff]  }
 0x1ad   :  { %7504 = vmatpush3.bf16.msra.mxu0 %v8013_v25  ;;  %7526 = vmatpush3.bf16.msra.mxu1 %v8014_v26  ;;  %v8050_v25 = vld [vmem:[#allocation10 + $0x34] ss:$8 sps:$4 sm:$0xff]   ;;  %v8048_v26 = vld [vmem:[#allocation10 + $0x30] ss:$8 sps:$4 sm:$0xff]  }
 0x1ae   :  { %7505 = vmatprep.subr.bf16.mxu0 %v8015_v27  ;;  %7527 = vmatprep.subr.bf16.mxu1 %v8016_v28  ;;  %v8053_v27 = vld [vmem:[#allocation10 + $0x44] ss:$8 sps:$4 sm:$0xff]   ;;  %v8051_v28 = vld [vmem:[#allocation10 + $0x40] ss:$8 sps:$4 sm:$0xff]  }
 0x1b1   :  { %7506 = vmatpush3.bf16.msra.mxu0 %v8017_v29  ;;  %7528 = vmatpush3.bf16.msra.mxu1 %v8018_v30  ;;  %v8056_v29 = vld [vmem:[#allocation10 + $0x54] ss:$8 sps:$4 sm:$0xff]   ;;  %v8054_v30 = vld [vmem:[#allocation10 + $0x50] ss:$8 sps:$4 sm:$0xff]  }
 0x1b2   :  { %7507 = vmatprep.subr.bf16.mxu0 %v8019_v31  ;;  %7529 = vmatprep.subr.bf16.mxu1 %v8020_v32  ;;  %v8059_v31 = vld [vmem:[#allocation10 + $0x64] ss:$8 sps:$4 sm:$0xff]   ;;  %v8057_v32 = vld [vmem:[#allocation10 + $0x60] ss:$8 sps:$4 sm:$0xff]  }
 0x1b5   :  { %7508 = vmatpush3.bf16.msra.mxu0 %v8021_v33  ;;  %7530 = vmatpush3.bf16.msra.mxu1 %v8022_v34  ;;  %v8062_v33 = vld [vmem:[#allocation10 + $0x74] ss:$8 sps:$4 sm:$0xff]   ;;  %v8060_v34 = vld [vmem:[#allocation10 + $0x70] ss:$8 sps:$4 sm:$0xff]  }
 0x1b6   :  { %7509 = vmatprep.subr.bf16.mxu0 %v8023_v35  ;;  %7531 = vmatprep.subr.bf16.mxu1 %v8024_v36  ;;  %v8063_v35 = vld [vmem:[#allocation13] ss:$16 sps:$4 sm:$0xff]   ;;  %v8065_v36 = vld [vmem:[#allocation13 + $0x4] ss:$16 sps:$4 sm:$0xff]  }
 0x1b9   :  { %7510 = vmatpush3.bf16.msra.mxu0 %v8025_v37  ;;  %7532 = vmatpush3.bf16.msra.mxu1 %v8026_v38  ;;  %v8068_v37 = vld [vmem:[#allocation13 + $0xc] ss:$16 sps:$4 sm:$0xff]   ;;  %v8071_v38 = vld [vmem:[#allocation13 + $0x24] ss:$16 sps:$4 sm:$0xff]  }
 0x1ba   :  { %7511 = vmatprep.subr.bf16.mxu0 %v8027_v39  ;;  %7533 = vmatprep.subr.bf16.mxu1 %v8028_v40  ;;  %v8069_v39 = vld [vmem:[#allocation13 + $0x20] ss:$16 sps:$4 sm:$0xff]   ;;  %v8077_v40 = vld [vmem:[#allocation13 + $0x44] ss:$16 sps:$4 sm:$0xff]  }
 0x1bd   :  { %7512 = vmatpush3.bf16.msra.mxu0 %v8029_v41  ;;  %7534 = vmatpush3.bf16.msra.mxu1 %v8030_v42  ;;  %v8075_v41 = vld [vmem:[#allocation13 + $0x40] ss:$16 sps:$4 sm:$0xff]  }
 0x1be   :  { %7513 = vmatprep.subr.bf16.mxu0 %v8031_v43  ;;  %7535 = vmatprep.subr.bf16.mxu1 %v8032_v44  ;;  %v6891_v44 = vld [vmem:[#allocation8] ss:$0 sm:$0xff] }
 0x1c1   :  { %7514 = vmatpush3.bf16.msra.mxu0 %v8033_v45  ;;  %7536 = vmatpush3.bf16.msra.mxu1 %v8034_v46 }
 0x1c2   :  { %7515 = vmatprep.subr.bf16.mxu0 %v8035_v47  ;;  %7537 = vmatprep.subr.bf16.mxu1 %v8036_v48 }
 0x1c5   :  { %7516 = vmatpush3.bf16.msra.mxu0 %v8037_v49  ;;  %7538 = vmatpush3.bf16.msra.mxu1 %v8038_v50 }
 0x1c6   :  { %2207 = vmatprep.subr.bf16.mxu0 %v8041_v51  ;;  %2485 = vmatprep.subr.bf16.mxu1 %v8065_v36 }
 0x27b   :  { %v1575_v63 = vpop.f32.mrb[0].mxu0  ;;  %v1739_v0 = vpop.f32.mrb[0].mxu1 }
 0x27c   :  { %v7611_v1 = vadd.f32 %v1575_v63, %v417_v59  ;;  %v7613_v2 = vadd.f32 %v1739_v0, %v425_v60  ;;  %v1577_v3 = vpop.f32.mrb[1].mxu0  ;;  %v1741_v4 = vpop.f32.mrb[1].mxu1  ;;  %v8074_v63 = vld [vmem:[#allocation13 + $0x2c] ss:$16 sps:$4 sm:$0xff]   ;;  %v8072_v0 = vld [vmem:[#allocation13 + $0x28] ss:$16 sps:$4 sm:$0xff]  }
 0x27d   :  { %v7612_v5 = vadd.f32 %v1577_v3, %v421_v61  ;;  %v7614_v6 = vadd.f32 %v1741_v4, %v429_v62  ;;  %v1579_v7 = vpop.f32.mrb[2].mxu0  ;;  %v1743_v8 = vpop.f32.mrb[2].mxu1  ;;  %v8066_v61 = vld [vmem:[#allocation13 + $0x8] ss:$16 sps:$4 sm:$0xff]   ;;  %v8083_v3 = vld [vmem:[#allocation13 + $0x64] ss:$16 sps:$4 sm:$0xff]  }
 0x27e   :  { %v1746_v9 = vmax.f32 %v7611_v1, 0.0  ;;  %v1748_v10 = vmax.f32 %v7613_v2, 0.0  ;;  %v1580_v11 = vpop.f32.mrb[3].mxu0  ;;  %v1744_v12 = vpop.f32.mrb[3].mxu1  ;;  %v8080_v1 = vld [vmem:[#allocation13 + $0x4c] ss:$16 sps:$4 sm:$0xff]  }
 0x27f   :  { %v1747_v13 = vmax.f32 %v7612_v5, 0.0  ;;  %v1749_v14 = vmax.f32 %v7614_v6, 0.0  ;;  %v8078_v2 = vld [vmem:[#allocation13 + $0x48] ss:$16 sps:$4 sm:$0xff]   ;;  %v8086_v4 = vld [vmem:[#allocation13 + $0x6c] ss:$16 sps:$4 sm:$0xff]  }
 0x280   :  { %v1750_v19 = vpack.c.bf16 %v1746_v9, %v1746_v9  ;;  %v1752_v20 = vpack.c.bf16 %v1748_v10, %v1748_v10  ;;  %v8081_v5 = vld [vmem:[#allocation13 + $0x60] ss:$16 sps:$4 sm:$0xff]   ;;  %v8084_v6 = vld [vmem:[#allocation13 + $0x68] ss:$16 sps:$4 sm:$0xff]   ;;  %v8089_v7 = vld [vmem:[#allocation13 + $0x84] ss:$16 sps:$4 sm:$0xff]  }
 0x281   :  { %v1751_v15 = vpack.c.bf16 %v1747_v13, %v1747_v13  ;;  %v1753_v16 = vpack.c.bf16 %v1749_v14, %v1749_v14  ;;  %v8092_v8 = vld [vmem:[#allocation13 + $0x8c] ss:$16 sps:$4 sm:$0xff]   ;;  %v8087_v9 = vld [vmem:[#allocation13 + $0x80] ss:$16 sps:$4 sm:$0xff]   ;;  %v8090_v10 = vld [vmem:[#allocation13 + $0x88] ss:$16 sps:$4 sm:$0xff]  }
 0x282   :  { %v8098_v11 = vld [vmem:[#allocation13 + $0xac] ss:$16 sps:$4 sm:$0xff]   ;;  %v8093_v12 = vld [vmem:[#allocation13 + $0xa0] ss:$16 sps:$4 sm:$0xff]   ;;  %v8096_v13 = vld [vmem:[#allocation13 + $0xa8] ss:$16 sps:$4 sm:$0xff]  }
 0x283   :  { %2049 = vmatprep.mubr.bf16.mxu0 %v1751_v15  ;;  %2089 = vmatprep.mubr.bf16.mxu1 %v1753_v16  ;;  %v8101_v14 = vld [vmem:[#allocation13 + $0xc4] ss:$16 sps:$4 sm:$0xff]   ;;  %v8104_v15 = vld [vmem:[#allocation13 + $0xcc] ss:$16 sps:$4 sm:$0xff]   ;;  %v8099_v16 = vld [vmem:[#allocation13 + $0xc0] ss:$16 sps:$4 sm:$0xff]  }
 0x284   :  { %2050 = vmatmul.mubr.bf16.vlgmr.msra.gmra.mrb[4].mxu0 %v1750_v19  ;;  %2090 = vmatmul.mubr.bf16.vlgmr.msra.gmra.mrb[4].mxu1 %v1752_v20  ;;  %v8107_v19 = vld [vmem:[#allocation13 + $0xe4] ss:$16 sps:$4 sm:$0xff]   ;;  %v8110_v20 = vld [vmem:[#allocation13 + $0xec] ss:$16 sps:$4 sm:$0xff]  }
 0x285   :  { %2208 = vmatpush1.bf16.msra.mxu0 %v8039_v17  ;;  %2239 = vmatprep.mubr.bf16.mxu0 %v9193_v18  ;;  %v8102_v17 = vld [vmem:[#allocation13 + $0xc8] ss:$16 sps:$4 sm:$0xff]  }
 0x286   :  { %2209 = vmatprep.subr.bf16.mxu0 %v8044_v21  ;;  %2517 = vmatprep.mubr.bf16.mxu1 %v9193_v18  ;;  %v8105_v21 = vld [vmem:[#allocation13 + $0xe0] ss:$16 sps:$4 sm:$0xff]  }
 0x287   :  { %2486 = vmatpush1.bf16.msra.mxu1 %v8063_v35 }
 0x288   :  { %2487 = vmatprep.subr.bf16.mxu1 %v8071_v38 }
 0x289   :  { %2210 = vmatpush1.bf16.msra.mxu0 %v8042_v22  ;;  %v8108_v22 = vld [vmem:[#allocation13 + $0xe8] ss:$16 sps:$4 sm:$0xff]  }
 0x28a   :  { %2211 = vmatprep.subr.bf16.mxu0 %v8047_v23  ;;  %v2115_v23 = vld [vmem:[#allocation11] sm:$0x3] }
 0x28b   :  { %2488 = vmatpush1.bf16.msra.mxu1 %v8069_v39 }
 0x28c   :  { %2489 = vmatprep.subr.bf16.mxu1 %v8077_v40 }
 0x28d   :  { %2212 = vmatpush1.bf16.msra.mxu0 %v8045_v24  ;;  %v2124_v24 = vrot.slane %v2115_v23, %v9471_v57 }
 0x28e   :  { %2213 = vmatprep.subr.bf16.mxu0 %v8050_v25 }
 0x28f   :  { %2490 = vmatpush1.bf16.msra.mxu1 %v8075_v41 }
 0x290   :  { %2491 = vmatprep.subr.bf16.mxu1 %v8083_v3  ;;  %v8138_v3 = vld [vmem:[#allocation16 + $0xc8] ss:$24 sps:$4 sm:$0xff]  }
 0x291   :  { %2214 = vmatpush1.bf16.msra.mxu0 %v8048_v26 }
 0x292   :  { %2215 = vmatprep.subr.bf16.mxu0 %v8053_v27 }
 0x293   :  { %2492 = vmatpush1.bf16.msra.mxu1 %v8081_v5  ;;  %v8146_v5 = vld [vmem:[#allocation16 + $0xfc] ss:$24 sps:$4 sm:$0xff]  }
 0x294   :  { %2493 = vmatprep.subr.bf16.mxu1 %v8089_v7  ;;  %v8144_v7 = vld [vmem:[#allocation16 + $0xf8] ss:$24 sps:$4 sm:$0xff]  }
 0x295   :  { %2216 = vmatpush1.bf16.msra.mxu0 %v8051_v28 }
 0x296   :  { %2217 = vmatprep.subr.bf16.mxu0 %v8056_v29 }
 0x297   :  { %2494 = vmatpush1.bf16.msra.mxu1 %v8087_v9  ;;  %v8152_v9 = vld [vmem:[#allocation16 + $0x12c] ss:$24 sps:$4 sm:$0xff]  }
 0x299   :  { %2218 = vmatpush1.bf16.msra.mxu0 %v8054_v30 }
 0x29a   :  { %2219 = vmatprep.subr.bf16.mxu0 %v8059_v31  ;;  %v2120_v31 = vrot.slane %v2115_v23, %v9465_v54  ;;  %v8168_v23 = vld [vmem:[#allocation16 + $0x1b8] ss:$24 sps:$4 sm:$0xff]  }
 0x29d   :  { %2220 = vmatpush1.bf16.msra.mxu0 %v8057_v32 }
 0x29e   :  { %2221 = vmatprep.subr.bf16.mxu0 %v8062_v33  ;;  %v2250_v33 = vld [vmem:[%s9615_s1] sm:$0xff] }
 0x2a1   :  { %2222 = vmatpush1.bf16.msra.mxu0 %v8060_v34 }
 0x2a2   :  { %2526 = vmatprep.subr.bf16.mxu0 %v8068_v37 }
 0x357   :  { %v7517_v42 = vpop.f32.mrb[4].mxu0  ;;  %v7539_v43 = vpop.f32.mrb[4].mxu1 }
 0x358   :  { %v7518_v45 = vpop.f32.mrb[5].mxu0  ;;  %v7540_v46 = vpop.f32.mrb[5].mxu1 }
 0x359   :  { %v7519_v47 = vadd.f32 %v7518_v45, %v7517_v42  ;;  %v7541_v48 = vadd.f32 %v7540_v46, %v7539_v43  ;;  %v7520_v49 = vpop.f32.mrb[6].mxu0  ;;  %v7542_v50 = vpop.f32.mrb[6].mxu1  ;;  %v8111_v43 = vld [vmem:[#allocation16] ss:$24 sps:$4 sm:$0xff]   ;;  %v8116_v46 = vld [vmem:[#allocation16 + $0xc] ss:$24 sps:$4 sm:$0xff]  }
 0x35a   :  { %v7521_v51 = vpop.f32.mrb[7].mxu0  ;;  %v7543_v52 = vpop.f32.mrb[7].mxu1  ;;  %v8114_v45 = vld [vmem:[#allocation16 + $0x8] ss:$24 sps:$4 sm:$0xff]   ;;  %v8120_v49 = vld [vmem:[#allocation16 + $0x38] ss:$24 sps:$4 sm:$0xff]  }
 0x35b   :  { %v2052_v56 = vadd.f32 %v7519_v47, %v6891_v44  ;;  %v8113_v44 = vld [vmem:[#allocation16 + $0x4] ss:$24 sps:$4 sm:$0xff]   ;;  %v8117_v47 = vld [vmem:[#allocation16 + $0x30] ss:$24 sps:$4 sm:$0xff]  }
 0x35c   :  { %v8122_v50 = vld [vmem:[#allocation16 + $0x3c] ss:$24 sps:$4 sm:$0xff]   ;;  %v8128_v52 = vld [vmem:[#allocation16 + $0x6c] ss:$24 sps:$4 sm:$0xff]  }
 0x35d   :  { %v2092_v59 = vadd.f32 %v7541_v48, %v2052_v56  ;;  %v8119_v48 = vld [vmem:[#allocation16 + $0x34] ss:$24 sps:$4 sm:$0xff]   ;;  %v8125_v51 = vld [vmem:[#allocation16 + $0x64] ss:$24 sps:$4 sm:$0xff]   ;;  %v8123_v56 = vld [vmem:[#allocation16 + $0x60] ss:$24 sps:$4 sm:$0xff]  }
 0x35f   :  { %v2097_v60 = vmax.f32 %v2092_v59, 0.0  ;;  %v8126_v59 = vld [vmem:[#allocation16 + $0x68] ss:$24 sps:$4 sm:$0xff]  }
 0x361   :  { %v2098_v62 = vpack.c.bf16 %v2097_v60, %v2097_v60  ;;  %v8131_v60 = vld [vmem:[#allocation16 + $0x94] ss:$24 sps:$4 sm:$0xff]  }
 0x363   :  { %2240 = vmatmul.mubr.bf16.vlgmr.msra.gmra.mrb[8].mxu0 %v2098_v62  ;;  %v8129_v62 = vld [vmem:[#allocation16 + $0x90] ss:$24 sps:$4 sm:$0xff]  }
 0x364   :  { %2527 = vmatpush1.bf16.msra.mxu0 %v8066_v61  ;;  %2558 = vmatprep.mubr.bf16.mxu0 %v9193_v18  ;;  %v8095_v18 = vld [vmem:[#allocation13 + $0xa4] ss:$16 sps:$4 sm:$0xff]   ;;  %v8134_v61 = vld [vmem:[#allocation16 + $0x9c] ss:$24 sps:$4 sm:$0xff]  }
 0x365   :  { %2528 = vmatprep.subr.bf16.mxu0 %v8074_v63  ;;  %2495 = vmatprep.subr.bf16.mxu1 %v8095_v18  ;;  %v8132_v63 = vld [vmem:[#allocation16 + $0x98] ss:$24 sps:$4 sm:$0xff]   ;;  %v8150_v18 = vld [vmem:[#allocation16 + $0x128] ss:$24 sps:$4 sm:$0xff]  }
 0x366   :  { %2496 = vmatpush1.bf16.msra.mxu1 %v8093_v12  ;;  %v8158_v12 = vld [vmem:[#allocation16 + $0x15c] ss:$24 sps:$4 sm:$0xff]  }
 0x367   :  { %2497 = vmatprep.subr.bf16.mxu1 %v8101_v14  ;;  %v8156_v14 = vld [vmem:[#allocation16 + $0x158] ss:$24 sps:$4 sm:$0xff]  }
 0x368   :  { %2529 = vmatpush1.bf16.msra.mxu0 %v8072_v0  ;;  %v8137_v0 = vld [vmem:[#allocation16 + $0xc4] ss:$24 sps:$4 sm:$0xff]  }
 0x369   :  { %2530 = vmatprep.subr.bf16.mxu0 %v8080_v1  ;;  %v8140_v1 = vld [vmem:[#allocation16 + $0xcc] ss:$24 sps:$4 sm:$0xff]  }
 0x36a   :  { %2498 = vmatpush1.bf16.msra.mxu1 %v8099_v16  ;;  %v8164_v16 = vld [vmem:[#allocation16 + $0x18c] ss:$24 sps:$4 sm:$0xff]  }
 0x36b   :  { %2499 = vmatprep.subr.bf16.mxu1 %v8107_v19  ;;  %v8162_v19 = vld [vmem:[#allocation16 + $0x188] ss:$24 sps:$4 sm:$0xff]  }
 0x36c   :  { %2531 = vmatpush1.bf16.msra.mxu0 %v8078_v2  ;;  %v8135_v2 = vld [vmem:[#allocation16 + $0xc0] ss:$24 sps:$4 sm:$0xff]  }
 0x36d   :  { %2532 = vmatprep.subr.bf16.mxu0 %v8086_v4  ;;  %v8143_v4 = vld [vmem:[#allocation16 + $0xf4] ss:$24 sps:$4 sm:$0xff]  }
 0x36e   :  { %2500 = vmatpush1.bf16.msra.mxu1 %v8105_v21  ;;  %v8170_v21 = vld [vmem:[#allocation16 + $0x1bc] ss:$24 sps:$4 sm:$0xff]  }
 0x36f   :  { %3759 = vmatprep.subr.bf16.mxu1 %v8113_v44  ;;  %v8203_v44 = vld [vmem:[#allocation16 + $0x2d4] ss:$24 sps:$4 sm:$0xff]  }
 0x370   :  { %2533 = vmatpush1.bf16.msra.mxu0 %v8084_v6  ;;  %v8141_v6 = vld [vmem:[#allocation16 + $0xf0] ss:$24 sps:$4 sm:$0xff]  }
 0x371   :  { %2534 = vmatprep.subr.bf16.mxu0 %v8092_v8  ;;  %v8149_v8 = vld [vmem:[#allocation16 + $0x124] ss:$24 sps:$4 sm:$0xff]  }
 0x374   :  { %2535 = vmatpush1.bf16.msra.mxu0 %v8090_v10  ;;  %v8147_v10 = vld [vmem:[#allocation16 + $0x120] ss:$24 sps:$4 sm:$0xff]  }
 0x375   :  { %2536 = vmatprep.subr.bf16.mxu0 %v8098_v11  ;;  %v8155_v11 = vld [vmem:[#allocation16 + $0x154] ss:$24 sps:$4 sm:$0xff]  }
 0x378   :  { %2537 = vmatpush1.bf16.msra.mxu0 %v8096_v13  ;;  %v8153_v13 = vld [vmem:[#allocation16 + $0x150] ss:$24 sps:$4 sm:$0xff]  }
 0x379   :  { %2538 = vmatprep.subr.bf16.mxu0 %v8104_v15  ;;  %v8161_v15 = vld [vmem:[#allocation16 + $0x184] ss:$24 sps:$4 sm:$0xff]  }
 0x37c   :  { %2539 = vmatpush1.bf16.msra.mxu0 %v8102_v17  ;;  %v8159_v17 = vld [vmem:[#allocation16 + $0x180] ss:$24 sps:$4 sm:$0xff]  }
 0x37d   :  { %2540 = vmatprep.subr.bf16.mxu0 %v8110_v20  ;;  %v8167_v20 = vld [vmem:[#allocation16 + $0x1b4] ss:$24 sps:$4 sm:$0xff]  }
 0x380   :  { %2541 = vmatpush1.bf16.msra.mxu0 %v8108_v22  ;;  %v8165_v22 = vld [vmem:[#allocation16 + $0x1b0] ss:$24 sps:$4 sm:$0xff]  }
 0x381   :  { %3841 = vmatprep.subr.bf16.mxu0 %v8116_v46  ;;  %v8201_v46 = vld [vmem:[#allocation16 + $0x2d0] ss:$24 sps:$4 sm:$0xff]  }
 0x436   :  { %v2241_v25 = vpop.f32.mrb[8].mxu0 }
 0x437   :  { %v2243_v26 = vpop.f32.mrb[9].mxu0  ;;  %v2242_v32 = vadd.f32 %v2241_v25, %v2120_v31  ;;  %v8176_v25 = vld [vmem:[#allocation16 + $0x1ec] ss:$24 sps:$4 sm:$0xff]   ;;  %v8180_v31 = vld [vmem:[#allocation16 + $0x218] ss:$24 sps:$4 sm:$0xff]  }
 0x438   :  { %v2244_v27 = vadd.f32 %v2243_v26, %v2124_v24  ;;  %v2245_v28 = vpop.f32.mrb[10].mxu0  ;;  %v8173_v24 = vld [vmem:[#allocation16 + $0x1e4] ss:$24 sps:$4 sm:$0xff]   ;;  %v8171_v26 = vld [vmem:[#allocation16 + $0x1e0] ss:$24 sps:$4 sm:$0xff]  }
 0x439   :  { %v2246_v29 = vpop.f32.mrb[11].mxu0  ;;  %v2254_v35 = vmul.f32 %v2242_v32, %v2242_v32  ;;  %v8179_v28 = vld [vmem:[#allocation16 + $0x214] ss:$24 sps:$4 sm:$0xff]  }
 0x43a   :  { %v2248_v30 = vmul.f32 1.442695, %v2244_v27  ;;  %v8182_v29 = vld [vmem:[#allocation16 + $0x21c] ss:$24 sps:$4 sm:$0xff]  }
 0x43c   :  { %8879 = vpow2.f32 %v2248_v30  ;;  %v8177_v30 = vld [vmem:[#allocation16 + $0x210] ss:$24 sps:$4 sm:$0xff]  }
 0x446   :  { %v8880_v34 = vpop.eup %8879 }
 0x447   :  { %v2251_v36 = vmul.f32 %v8880_v34, %v2250_v33  ;;  %v2253_v37 = vmul.f32 %v8880_v34, %v8880_v34  ;;  %v8188_v33 = vld [vmem:[#allocation16 + $0x24c] ss:$24 sps:$4 sm:$0xff]   ;;  %v8183_v34 = vld [vmem:[#allocation16 + $0x240] ss:$24 sps:$4 sm:$0xff]  }
 0x449   :  { %v2252_v38 = vadd.f32 %v2251_v36, %v2242_v32  ;;  %v2255_v39 = vadd.f32 %v2254_v35, %v2253_v37  ;;  %v8185_v32 = vld [vmem:[#allocation16 + $0x244] ss:$24 sps:$4 sm:$0xff]   ;;  %v8186_v35 = vld [vmem:[#allocation16 + $0x248] ss:$24 sps:$4 sm:$0xff]   ;;  %v8191_v36 = vld [vmem:[#allocation16 + $0x274] ss:$24 sps:$4 sm:$0xff]  }
 0x44a   :  { %v8194_v37 = vld [vmem:[#allocation16 + $0x27c] ss:$24 sps:$4 sm:$0xff]  }
 0x44b   :  { %v2270_v40 = vpack.c.bf16 %v2252_v38, %v2252_v38  ;;  %v2256_v41 = vsub.f32 %v2255_v39, %v2244_v27  ;;  %v8174_v27 = vld [vmem:[#allocation16 + $0x1e8] ss:$24 sps:$4 sm:$0xff]   ;;  %v8192_v39 = vld [vmem:[#allocation16 + $0x278] ss:$24 sps:$4 sm:$0xff]  }
 0x44c   :  { %v8189_v38 = vld [vmem:[#allocation16 + $0x270] ss:$24 sps:$4 sm:$0xff]  }
 0x44d   :  { %2518 = vmatmul.mubr.bf16.vlgmr.msra.gmra.mrb[8].mxu1 %v2270_v40  ;;  %2559 = vmatmul.mubr.bf16.vlgmr.msra.gmra.mrb[12].mxu0 %v2270_v40  ;;  %v6940_v42 = vadd.f32 -1.0, %v2256_v41  ;;  %v8197_v40 = vld [vmem:[#allocation16 + $0x2a4] ss:$24 sps:$4 sm:$0xff]  }
 0x44e   :  { %3760 = vmatpush1.bf16.msra.mxu1 %v8111_v43  ;;  %3842 = vmatpush1.bf16.msra.mxu0 %v8114_v45  ;;  %v8200_v41 = vld [vmem:[#allocation16 + $0x2ac] ss:$24 sps:$4 sm:$0xff]   ;;  %v8198_v43 = vld [vmem:[#allocation16 + $0x2a8] ss:$24 sps:$4 sm:$0xff]   ;;  %v8206_v45 = vld [vmem:[#allocation16 + $0x2dc] ss:$24 sps:$4 sm:$0xff]  }
 0x44f   :  { %2258 = vadd.xlane.f32.xlu0 %v6940_v42  ;;  %3761 = vmatprep.subr.bf16.mxu1 %v8119_v48  ;;  %v8195_v42 = vld [vmem:[#allocation16 + $0x2a0] ss:$24 sps:$4 sm:$0xff]   ;;  %v8209_v48 = vld [vmem:[#allocation16 + $0x304] ss:$24 sps:$4 sm:$0xff]  }
 0x450   :  { %3843 = vmatprep.subr.bf16.mxu0 %v8122_v50 }
 0x452   :  { %3762 = vmatpush1.bf16.msra.mxu1 %v8117_v47  ;;  %3844 = vmatpush1.bf16.msra.mxu0 %v8120_v49  ;;  %v8204_v47 = vld [vmem:[#allocation16 + $0x2d8] ss:$24 sps:$4 sm:$0xff]   ;;  %v8212_v49 = vld [vmem:[#allocation16 + $0x30c] ss:$24 sps:$4 sm:$0xff]  }
 0x453   :  { %3763 = vmatprep.subr.bf16.mxu1 %v8125_v51  ;;  %3845 = vmatprep.subr.bf16.mxu0 %v8128_v52 }
 0x456   :  { %3764 = vmatpush1.bf16.msra.mxu1 %v8123_v56  ;;  %3846 = vmatpush1.bf16.msra.mxu0 %v8126_v59 }
 0x457   :  { %3765 = vmatprep.subr.bf16.mxu1 %v8131_v60  ;;  %3847 = vmatprep.subr.bf16.mxu0 %v8134_v61 }
 0x45a   :  { %3766 = vmatpush1.bf16.msra.mxu1 %v8129_v62  ;;  %3848 = vmatpush1.bf16.msra.mxu0 %v8132_v63  ;;  %v2303_v62 = vld [vmem:[#allocation14] sm:$0xf] }
 0x45b   :  { %3767 = vmatprep.subr.bf16.mxu1 %v8137_v0  ;;  %3849 = vmatprep.subr.bf16.mxu0 %v8140_v1  ;;  %v2308_v63 = vrot.slane %v2303_v62, %v9465_v54  ;;  %v2316_v0 = vrot.slane %v2303_v62, %v9468_v55  ;;  %v2312_v1 = vrot.slane %v2303_v62, %v9471_v57 }
 0x45e   :  { %3768 = vmatpush1.bf16.msra.mxu1 %v8135_v2  ;;  %3850 = vmatpush1.bf16.msra.mxu0 %v8138_v3  ;;  %v2320_v2 = vrot.slane %v2303_v62, %v9474_v58  ;;  %v8261_v62 = vld [vmem:[#allocation16 + $0x4b0] ss:$24 sps:$4 sm:$0xff]  }
 0x45f   :  { %3769 = vmatprep.subr.bf16.mxu1 %v8143_v4  ;;  %3851 = vmatprep.subr.bf16.mxu0 %v8146_v5 }
 0x462   :  { %3770 = vmatpush1.bf16.msra.mxu1 %v8141_v6  ;;  %3852 = vmatpush1.bf16.msra.mxu0 %v8144_v7 }
 0x463   :  { %3771 = vmatprep.subr.bf16.mxu1 %v8149_v8  ;;  %3853 = vmatprep.subr.bf16.mxu0 %v8152_v9 }
 0x466   :  { %3772 = vmatpush1.bf16.msra.mxu1 %v8147_v10  ;;  %3854 = vmatpush1.bf16.msra.mxu0 %v8150_v18 }
 0x467   :  { %3773 = vmatprep.subr.bf16.mxu1 %v8155_v11  ;;  %3855 = vmatprep.subr.bf16.mxu0 %v8158_v12 }
 0x46a   :  { %3774 = vmatpush1.bf16.msra.mxu1 %v8153_v13  ;;  %3856 = vmatpush1.bf16.msra.mxu0 %v8156_v14 }
 0x46b   :  { %3775 = vmatprep.subr.bf16.mxu1 %v8161_v15  ;;  %3857 = vmatprep.subr.bf16.mxu0 %v8164_v16 }
 0x46e   :  { %3776 = vmatpush1.bf16.msra.mxu1 %v8159_v17  ;;  %3858 = vmatpush1.bf16.msra.mxu0 %v8162_v19  ;;  %v8207_v19 = vld [vmem:[#allocation16 + $0x300] ss:$24 sps:$4 sm:$0xff]  }
 0x46f   :  { %3777 = vmatprep.subr.bf16.mxu1 %v8167_v20  ;;  %3859 = vmatprep.subr.bf16.mxu0 %v8170_v21  ;;  %v8210_v20 = vld [vmem:[#allocation16 + $0x308] ss:$24 sps:$4 sm:$0xff]  }
 0x472   :  { %3778 = vmatpush1.bf16.msra.mxu1 %v8165_v22  ;;  %3860 = vmatpush1.bf16.msra.mxu0 %v8168_v23  ;;  %v8215_v22 = vld [vmem:[#allocation16 + $0x334] ss:$24 sps:$4 sm:$0xff]  }
 0x473   :  { %3779 = vmatprep.subr.bf16.mxu1 %v8173_v24  ;;  %3861 = vmatprep.subr.bf16.mxu0 %v8176_v25  ;;  %v8218_v23 = vld [vmem:[#allocation16 + $0x33c] ss:$24 sps:$4 sm:$0xff]   ;;  %v8213_v25 = vld [vmem:[#allocation16 + $0x330] ss:$24 sps:$4 sm:$0xff]  }
 0x476   :  { %3780 = vmatpush1.bf16.msra.mxu1 %v8171_v26  ;;  %3862 = vmatpush1.bf16.msra.mxu0 %v8174_v27  ;;  %v8216_v26 = vld [vmem:[#allocation16 + $0x338] ss:$24 sps:$4 sm:$0xff]   ;;  %v8221_v27 = vld [vmem:[#allocation16 + $0x364] ss:$24 sps:$4 sm:$0xff]  }
 0x477   :  { %3781 = vmatprep.subr.bf16.mxu1 %v8179_v28  ;;  %3863 = vmatprep.subr.bf16.mxu0 %v8182_v29  ;;  %v8224_v28 = vld [vmem:[#allocation16 + $0x36c] ss:$24 sps:$4 sm:$0xff]   ;;  %v8219_v29 = vld [vmem:[#allocation16 + $0x360] ss:$24 sps:$4 sm:$0xff]  }
 0x47a   :  { %3782 = vmatpush1.bf16.msra.mxu1 %v8177_v30  ;;  %3864 = vmatpush1.bf16.msra.mxu0 %v8180_v31  ;;  %v8222_v30 = vld [vmem:[#allocation16 + $0x368] ss:$24 sps:$4 sm:$0xff]   ;;  %v8227_v31 = vld [vmem:[#allocation16 + $0x394] ss:$24 sps:$4 sm:$0xff]  }
 0x47b   :  { %3783 = vmatprep.subr.bf16.mxu1 %v8185_v32  ;;  %3865 = vmatprep.subr.bf16.mxu0 %v8188_v33  ;;  %v8230_v32 = vld [vmem:[#allocation16 + $0x39c] ss:$24 sps:$4 sm:$0xff]   ;;  %v8225_v33 = vld [vmem:[#allocation16 + $0x390] ss:$24 sps:$4 sm:$0xff]  }
 0x47e   :  { %3784 = vmatpush1.bf16.msra.mxu1 %v8183_v34  ;;  %3866 = vmatpush1.bf16.msra.mxu0 %v8186_v35  ;;  %v8228_v34 = vld [vmem:[#allocation16 + $0x398] ss:$24 sps:$4 sm:$0xff]   ;;  %v8233_v35 = vld [vmem:[#allocation16 + $0x3c4] ss:$24 sps:$4 sm:$0xff]  }
 0x47f   :  { %3785 = vmatprep.subr.bf16.mxu1 %v8191_v36  ;;  %3867 = vmatprep.subr.bf16.mxu0 %v8194_v37  ;;  %v8236_v36 = vld [vmem:[#allocation16 + $0x3cc] ss:$24 sps:$4 sm:$0xff]   ;;  %v8231_v37 = vld [vmem:[#allocation16 + $0x3c0] ss:$24 sps:$4 sm:$0xff]  }
 0x482   :  { %3786 = vmatpush1.bf16.msra.mxu1 %v8189_v38  ;;  %3868 = vmatpush1.bf16.msra.mxu0 %v8192_v39  ;;  %v8234_v38 = vld [vmem:[#allocation16 + $0x3c8] ss:$24 sps:$4 sm:$0xff]   ;;  %v8239_v39 = vld [vmem:[#allocation16 + $0x3f4] ss:$24 sps:$4 sm:$0xff]  }
 0x483   :  { %3787 = vmatprep.subr.bf16.mxu1 %v8197_v40  ;;  %3869 = vmatprep.subr.bf16.mxu0 %v8200_v41  ;;  %v8242_v40 = vld [vmem:[#allocation16 + $0x3fc] ss:$24 sps:$4 sm:$0xff]   ;;  %v8237_v41 = vld [vmem:[#allocation16 + $0x3f0] ss:$24 sps:$4 sm:$0xff]  }
 0x486   :  { %3788 = vmatpush1.bf16.msra.mxu1 %v8195_v42  ;;  %3870 = vmatpush1.bf16.msra.mxu0 %v8198_v43  ;;  %v8240_v42 = vld [vmem:[#allocation16 + $0x3f8] ss:$24 sps:$4 sm:$0xff]   ;;  %v8245_v43 = vld [vmem:[#allocation16 + $0x424] ss:$24 sps:$4 sm:$0xff]  }
 0x487   :  { %3789 = vmatprep.subr.bf16.mxu1 %v8203_v44  ;;  %3871 = vmatprep.subr.bf16.mxu0 %v8206_v45  ;;  %v8248_v44 = vld [vmem:[#allocation16 + $0x42c] ss:$24 sps:$4 sm:$0xff]   ;;  %v8243_v45 = vld [vmem:[#allocation16 + $0x420] ss:$24 sps:$4 sm:$0xff]  }
 0x48a   :  { %3790 = vmatpush1.bf16.msra.mxu1 %v8201_v46  ;;  %3872 = vmatpush1.bf16.msra.mxu0 %v8204_v47  ;;  %v8246_v46 = vld [vmem:[#allocation16 + $0x428] ss:$24 sps:$4 sm:$0xff]   ;;  %v8251_v47 = vld [vmem:[#allocation16 + $0x454] ss:$24 sps:$4 sm:$0xff]  }
 0x48b   :  { %3800 = vmatprep.subr.bf16.mxu1 %v8209_v48  ;;  %3882 = vmatprep.subr.bf16.mxu0 %v8212_v49  ;;  %v8254_v48 = vld [vmem:[#allocation16 + $0x45c] ss:$24 sps:$4 sm:$0xff]   ;;  %v8249_v49 = vld [vmem:[#allocation16 + $0x450] ss:$24 sps:$4 sm:$0xff]  }
 0x4dc   :  { %v2259_v50 = vpop.xlane.xlu0 %2258 }
 0x4dd   :  { %v2260_v51 = vrot.slane %v2259_v50, 4 }
 0x4df   :  { %v2261_v52 = vadd.f32 %v2260_v51, %v2259_v50  ;;  %v8252_v50 = vld [vmem:[#allocation16 + $0x458] ss:$24 sps:$4 sm:$0xff]   ;;  %v8257_v51 = vld [vmem:[#allocation16 + $0x484] ss:$24 sps:$4 sm:$0xff]  }
 0x4e1   :  { %v2262_v56 = vrot.slane %v2261_v52, 2 }
 0x4e3   :  { %v2263_v59 = vadd.f32 %v2262_v56, %v2261_v52  ;;  %v8260_v52 = vld [vmem:[#allocation16 + $0x48c] ss:$24 sps:$4 sm:$0xff]   ;;  %v8255_v56 = vld [vmem:[#allocation16 + $0x480] ss:$24 sps:$4 sm:$0xff]  }
 0x4e5   :  { %v2264_v60 = vrot.slane %v2263_v59, 1 }
 0x4e7   :  { %v2265_v61 = vadd.f32 %v2264_v60, %v2263_v59  ;;  %v8258_v59 = vld [vmem:[#allocation16 + $0x488] ss:$24 sps:$4 sm:$0xff]   ;;  %v8263_v60 = vld [vmem:[#allocation16 + $0x4b4] ss:$24 sps:$4 sm:$0xff]  }
 0x4e9   :  { %7687 = vpush %v2265_v61  ;;  %v8266_v61 = vld [vmem:[#allocation16 + $0x4bc] ss:$24 sps:$4 sm:$0xff]  }
 0x51a   :  { %s7688_s1 = spop %7687 }
 0x51b   :  { %s2267_s16 = smul.f32 0.5, %s7688_s1 }
 0x51d   :  { %2269 = sst [smem:[#allocation22]] %s2267_s16 }
 0x520   :  { %v2519_v3 = vpop.f32.mrb[8].mxu1  ;;  %v2560_v4 = vpop.f32.mrb[12].mxu0 }
 0x521   :  { %v2520_v5 = vadd.f32 %v2519_v3, %v2308_v63  ;;  %v9492_v6 = vadd.f32 %v2560_v4, %v2316_v0  ;;  %v2521_v7 = vpop.f32.mrb[9].mxu1  ;;  %v2562_v8 = vpop.f32.mrb[13].mxu0  ;;  %v8264_v63 = vld [vmem:[#allocation16 + $0x4b8] ss:$24 sps:$4 sm:$0xff]   ;;  %v8269_v0 = vld [vmem:[#allocation16 + $0x4e4] ss:$24 sps:$4 sm:$0xff]  }
 0x522   :  { %v2522_v9 = vadd.f32 %v2521_v7, %v2312_v1  ;;  %v2563_v10 = vadd.f32 %v2562_v8, %v2320_v2  ;;  %v2523_v18 = vpop.f32.mrb[10].mxu1  ;;  %v2564_v11 = vpop.f32.mrb[14].mxu0  ;;  %v8272_v1 = vld [vmem:[#allocation16 + $0x4ec] ss:$24 sps:$4 sm:$0xff]   ;;  %v8267_v2 = vld [vmem:[#allocation16 + $0x4e0] ss:$24 sps:$4 sm:$0xff]  }
 0x523   :  { %v2567_v12 = vmax.f32 %v2520_v5, 0.0  ;;  %v2524_v13 = vpop.f32.mrb[11].mxu1  ;;  %v2565_v14 = vpop.f32.mrb[15].mxu0  ;;  %v8270_v3 = vld [vmem:[#allocation16 + $0x4e8] ss:$24 sps:$4 sm:$0xff]  }
 0x524   :  { %v2568_v15 = vmax.f32 %v2522_v9, 0.0  ;;  %v2570_v16 = vmax.f32 %v2563_v10, 0.0  ;;  %v8275_v4 = vld [vmem:[#allocation16 + $0x514] ss:$24 sps:$4 sm:$0xff]   ;;  %v8273_v7 = vld [vmem:[#allocation16 + $0x510] ss:$24 sps:$4 sm:$0xff]  }
 0x525   :  { %v9496_v21 = vpack.c.bf16 %v2567_v12, %v2567_v12  ;;  %v8278_v5 = vld [vmem:[#allocation16 + $0x51c] ss:$24 sps:$4 sm:$0xff]   ;;  %v8276_v8 = vld [vmem:[#allocation16 + $0x518] ss:$24 sps:$4 sm:$0xff]   ;;  %v8284_v10 = vld [vmem:[#allocation16 + $0x54c] ss:$24 sps:$4 sm:$0xff]  }
 0x526   :  { %v9494_v17 = vpack.c.bf16 %v2568_v15, %v2568_v15  ;;  %v9500_v24 = vpack.c.bf16 %v2570_v16, %v2570_v16  ;;  %v8281_v9 = vld [vmem:[#allocation16 + $0x544] ss:$24 sps:$4 sm:$0xff]   ;;  %v8279_v18 = vld [vmem:[#allocation16 + $0x540] ss:$24 sps:$4 sm:$0xff]   ;;  %v8287_v12 = vld [vmem:[#allocation16 + $0x574] ss:$24 sps:$4 sm:$0xff]  }
 0x527   :  { %v8282_v11 = vld [vmem:[#allocation16 + $0x548] ss:$24 sps:$4 sm:$0xff]   ;;  %v8290_v13 = vld [vmem:[#allocation16 + $0x57c] ss:$24 sps:$4 sm:$0xff]   ;;  %v8288_v15 = vld [vmem:[#allocation16 + $0x578] ss:$24 sps:$4 sm:$0xff]  }
 0x528   :  { %3791 = vmatprep.mubr.bf16.mxu1 %v9494_v17  ;;  %3873 = vmatprep.mubr.bf16.mxu0 %v9494_v17  ;;  %v8285_v14 = vld [vmem:[#allocation16 + $0x570] ss:$24 sps:$4 sm:$0xff]   ;;  %v8293_v16 = vld [vmem:[#allocation16 + $0x5a4] ss:$24 sps:$4 sm:$0xff]  }
 0x529   :  { %3792 = vmatmul.mubr.bf16.vlgmr.msra.gmra.mrb[12].mxu1 %v9496_v21  ;;  %3874 = vmatmul.mubr.bf16.vlgmr.msra.gmra.mrb[16].mxu0 %v9496_v21 }
 0x52a   :  { %3801 = vmatpush1.bf16.msra.mxu1 %v8207_v19  ;;  %3883 = vmatpush1.bf16.msra.mxu0 %v8210_v20  ;;  %v8296_v19 = vld [vmem:[#allocation16 + $0x5ac] ss:$24 sps:$4 sm:$0xff]   ;;  %v8291_v20 = vld [vmem:[#allocation16 + $0x5a0] ss:$24 sps:$4 sm:$0xff]  }
 0x52b   :  { %3832 = vmatprep.mubr.bf16.mxu1 %v9500_v24  ;;  %3914 = vmatprep.mubr.bf16.mxu0 %v9500_v24 }
 0x52c   :  { %3802 = vmatprep.subr.bf16.mxu1 %v8215_v22  ;;  %3884 = vmatprep.subr.bf16.mxu0 %v8218_v23  ;;  %v8294_v22 = vld [vmem:[#allocation16 + $0x5a8] ss:$24 sps:$4 sm:$0xff]   ;;  %v8299_v23 = vld [vmem:[#allocation16 + $0x5d4] ss:$24 sps:$4 sm:$0xff]  }
 0x52e   :  { %3803 = vmatpush1.bf16.msra.mxu1 %v8213_v25  ;;  %3885 = vmatpush1.bf16.msra.mxu0 %v8216_v26  ;;  %v8302_v25 = vld [vmem:[#allocation16 + $0x5dc] ss:$24 sps:$4 sm:$0xff]   ;;  %v8297_v26 = vld [vmem:[#allocation16 + $0x5d0] ss:$24 sps:$4 sm:$0xff]  }
 0x52f   :  { %3804 = vmatprep.subr.bf16.mxu1 %v8221_v27  ;;  %3886 = vmatprep.subr.bf16.mxu0 %v8224_v28  ;;  %v8300_v27 = vld [vmem:[#allocation16 + $0x5d8] ss:$24 sps:$4 sm:$0xff]   ;;  %v2569_v28 = vmax.f32 %v9492_v6, 0.0 }
 0x530   :  { %v8306_v6 = vld [vmem:[#allocation16 + $0x40] ss:$24 sps:$4 sm:$0xff]  }
 0x532   :  { %3805 = vmatpush1.bf16.msra.mxu1 %v8219_v29  ;;  %3887 = vmatpush1.bf16.msra.mxu0 %v8222_v30  ;;  %v8305_v29 = vld [vmem:[#allocation16 + $0x14] ss:$24 sps:$4 sm:$0xff]   ;;  %v8303_v30 = vld [vmem:[#allocation16 + $0x10] ss:$24 sps:$4 sm:$0xff]  }
 0x533   :  { %3806 = vmatprep.subr.bf16.mxu1 %v8227_v31  ;;  %3888 = vmatprep.subr.bf16.mxu0 %v8230_v32  ;;  %v9507_v31 = vpack.c.bf16 %v2569_v28, %v2569_v28  ;;  %v8308_v32 = vld [vmem:[#allocation16 + $0x44] ss:$24 sps:$4 sm:$0xff]   ;;  %v8347_v28 = vld [vmem:[#allocation16 + $0x2b4] ss:$24 sps:$4 sm:$0xff]  }
 0x536   :  { %3807 = vmatpush1.bf16.msra.mxu1 %v8225_v33  ;;  %3889 = vmatpush1.bf16.msra.mxu0 %v8228_v34  ;;  %v8399_v33 = vld [vmem:[#allocation19] ss:$28 sps:$4 sm:$0xff]  }
 0x537   :  { %3808 = vmatprep.subr.bf16.mxu1 %v8233_v35  ;;  %3890 = vmatprep.subr.bf16.mxu0 %v8236_v36  ;;  %v8401_v34 = vld [vmem:[#allocation19 + $0x4] ss:$28 sps:$4 sm:$0xff]   ;;  %v8407_v35 = vld [vmem:[#allocation19 + $0x3c] ss:$28 sps:$4 sm:$0xff]  }
 0x538   :  { %v8311_v36 = vld [vmem:[#allocation16 + $0x74] ss:$24 sps:$4 sm:$0xff]  }
 0x53a   :  { %3809 = vmatpush1.bf16.msra.mxu1 %v8231_v37  ;;  %3891 = vmatpush1.bf16.msra.mxu0 %v8234_v38  ;;  %v8405_v37 = vld [vmem:[#allocation19 + $0x38] ss:$28 sps:$4 sm:$0xff]   ;;  %v8309_v38 = vld [vmem:[#allocation16 + $0x70] ss:$24 sps:$4 sm:$0xff]  }
 0x53b   :  { %3810 = vmatprep.subr.bf16.mxu1 %v8239_v39  ;;  %3892 = vmatprep.subr.bf16.mxu0 %v8242_v40  ;;  %v8413_v39 = vld [vmem:[#allocation19 + $0x74] ss:$28 sps:$4 sm:$0xff]  }
 0x53c   :  { %v8314_v40 = vld [vmem:[#allocation16 + $0xa4] ss:$24 sps:$4 sm:$0xff]  }
 0x53e   :  { %3811 = vmatpush1.bf16.msra.mxu1 %v8237_v41  ;;  %3893 = vmatpush1.bf16.msra.mxu0 %v8240_v42  ;;  %v8411_v41 = vld [vmem:[#allocation19 + $0x70] ss:$28 sps:$4 sm:$0xff]  }
 0x53f   :  { %3812 = vmatprep.subr.bf16.mxu1 %v8245_v43  ;;  %3894 = vmatprep.subr.bf16.mxu0 %v8248_v44  ;;  %v8312_v42 = vld [vmem:[#allocation16 + $0xa0] ss:$24 sps:$4 sm:$0xff]   ;;  %v8419_v43 = vld [vmem:[#allocation19 + $0xac] ss:$28 sps:$4 sm:$0xff]  }
 0x540   :  { %v8417_v44 = vld [vmem:[#allocation19 + $0xa8] ss:$28 sps:$4 sm:$0xff]  }
 0x542   :  { %3813 = vmatpush1.bf16.msra.mxu1 %v8243_v45  ;;  %3895 = vmatpush1.bf16.msra.mxu0 %v8246_v46  ;;  %v8315_v45 = vld [vmem:[#allocation16 + $0xd0] ss:$24 sps:$4 sm:$0xff]  }
 0x543   :  { %3814 = vmatprep.subr.bf16.mxu1 %v8251_v47  ;;  %3896 = vmatprep.subr.bf16.mxu0 %v8254_v48  ;;  %v8425_v46 = vld [vmem:[#allocation19 + $0xe4] ss:$28 sps:$4 sm:$0xff]  }
 0x544   :  { %v8320_v47 = vld [vmem:[#allocation16 + $0x104] ss:$24 sps:$4 sm:$0xff]  }
 0x545   :  { %v8423_v48 = vld [vmem:[#allocation19 + $0xe0] ss:$28 sps:$4 sm:$0xff]  }
 0x546   :  { %3815 = vmatpush1.bf16.msra.mxu1 %v8249_v49  ;;  %3897 = vmatpush1.bf16.msra.mxu0 %v8252_v50  ;;  %v8318_v49 = vld [vmem:[#allocation16 + $0x100] ss:$24 sps:$4 sm:$0xff]  }
 0x547   :  { %3816 = vmatprep.subr.bf16.mxu1 %v8257_v51  ;;  %3898 = vmatprep.subr.bf16.mxu0 %v8260_v52  ;;  %v8431_v50 = vld [vmem:[#allocation19 + $0x11c] ss:$28 sps:$4 sm:$0xff]   ;;  %v8323_v51 = vld [vmem:[#allocation16 + $0x134] ss:$24 sps:$4 sm:$0xff]  }
 0x548   :  { %v8429_v52 = vld [vmem:[#allocation19 + $0x118] ss:$28 sps:$4 sm:$0xff]  }
 0x54a   :  { %3817 = vmatpush1.bf16.msra.mxu1 %v8255_v56  ;;  %3899 = vmatpush1.bf16.msra.mxu0 %v8258_v59  ;;  %v8321_v56 = vld [vmem:[#allocation16 + $0x130] ss:$24 sps:$4 sm:$0xff]   ;;  %v8437_v59 = vld [vmem:[#allocation19 + $0x154] ss:$28 sps:$4 sm:$0xff]  }
 0x54b   :  { %3818 = vmatprep.subr.bf16.mxu1 %v8263_v60  ;;  %3900 = vmatprep.subr.bf16.mxu0 %v8266_v61  ;;  %v8326_v60 = vld [vmem:[#allocation16 + $0x164] ss:$24 sps:$4 sm:$0xff]   ;;  %v8435_v61 = vld [vmem:[#allocation19 + $0x150] ss:$28 sps:$4 sm:$0xff]  }
 0x54e   :  { %3819 = vmatpush1.bf16.msra.mxu1 %v8261_v62  ;;  %3901 = vmatpush1.bf16.msra.mxu0 %v8264_v63  ;;  %v8324_v62 = vld [vmem:[#allocation16 + $0x160] ss:$24 sps:$4 sm:$0xff]   ;;  %v8443_v63 = vld [vmem:[#allocation19 + $0x18c] ss:$28 sps:$4 sm:$0xff]  }
 0x54f   :  { %3820 = vmatprep.subr.bf16.mxu1 %v8269_v0  ;;  %3902 = vmatprep.subr.bf16.mxu0 %v8272_v1  ;;  %v8329_v0 = vld [vmem:[#allocation16 + $0x194] ss:$24 sps:$4 sm:$0xff]  }
 0x550   :  { %v8441_v1 = vld [vmem:[#allocation19 + $0x188] ss:$28 sps:$4 sm:$0xff]  }
 0x552   :  { %3821 = vmatpush1.bf16.msra.mxu1 %v8267_v2  ;;  %3903 = vmatpush1.bf16.msra.mxu0 %v8270_v3  ;;  %v8327_v2 = vld [vmem:[#allocation16 + $0x190] ss:$24 sps:$4 sm:$0xff]  }
 0x553   :  { %3822 = vmatprep.subr.bf16.mxu1 %v8275_v4  ;;  %3904 = vmatprep.subr.bf16.mxu0 %v8278_v5  ;;  %v8449_v3 = vld [vmem:[#allocation19 + $0x1c4] ss:$28 sps:$4 sm:$0xff]  }
 0x554   :  { %v8332_v4 = vld [vmem:[#allocation16 + $0x1c4] ss:$24 sps:$4 sm:$0xff]  }
 0x555   :  { %v8447_v5 = vld [vmem:[#allocation19 + $0x1c0] ss:$28 sps:$4 sm:$0xff]  }
 0x556   :  { %3823 = vmatpush1.bf16.msra.mxu1 %v8273_v7  ;;  %3905 = vmatpush1.bf16.msra.mxu0 %v8276_v8  ;;  %v8330_v7 = vld [vmem:[#allocation16 + $0x1c0] ss:$24 sps:$4 sm:$0xff]  }
 0x557   :  { %3824 = vmatprep.subr.bf16.mxu1 %v8281_v9  ;;  %3906 = vmatprep.subr.bf16.mxu0 %v8284_v10  ;;  %v8455_v8 = vld [vmem:[#allocation19 + $0x1fc] ss:$28 sps:$4 sm:$0xff]   ;;  %v8335_v9 = vld [vmem:[#allocation16 + $0x1f4] ss:$24 sps:$4 sm:$0xff]  }
 0x558   :  { %v8453_v10 = vld [vmem:[#allocation19 + $0x1f8] ss:$28 sps:$4 sm:$0xff]  }
 0x55a   :  { %3825 = vmatpush1.bf16.msra.mxu1 %v8279_v18  ;;  %3907 = vmatpush1.bf16.msra.mxu0 %v8282_v11  ;;  %v8333_v18 = vld [vmem:[#allocation16 + $0x1f0] ss:$24 sps:$4 sm:$0xff]   ;;  %v8461_v11 = vld [vmem:[#allocation19 + $0x234] ss:$28 sps:$4 sm:$0xff]  }
 0x55b   :  { %3826 = vmatprep.subr.bf16.mxu1 %v8287_v12  ;;  %3908 = vmatprep.subr.bf16.mxu0 %v8290_v13  ;;  %v8338_v12 = vld [vmem:[#allocation16 + $0x224] ss:$24 sps:$4 sm:$0xff]   ;;  %v8459_v13 = vld [vmem:[#allocation19 + $0x230] ss:$28 sps:$4 sm:$0xff]  }
 0x55e   :  { %3827 = vmatpush1.bf16.msra.mxu1 %v8285_v14  ;;  %3909 = vmatpush1.bf16.msra.mxu0 %v8288_v15  ;;  %v8336_v14 = vld [vmem:[#allocation16 + $0x220] ss:$24 sps:$4 sm:$0xff]   ;;  %v8467_v15 = vld [vmem:[#allocation19 + $0x26c] ss:$28 sps:$4 sm:$0xff]  }
 0x55f   :  { %3828 = vmatprep.subr.bf16.mxu1 %v8293_v16  ;;  %3910 = vmatprep.subr.bf16.mxu0 %v8296_v19  ;;  %v8341_v16 = vld [vmem:[#allocation16 + $0x254] ss:$24 sps:$4 sm:$0xff]  }
 0x560   :  { %v8465_v19 = vld [vmem:[#allocation19 + $0x268] ss:$28 sps:$4 sm:$0xff]  }
 0x562   :  { %3829 = vmatpush1.bf16.msra.mxu1 %v8291_v20  ;;  %3911 = vmatpush1.bf16.msra.mxu0 %v8294_v22  ;;  %v8339_v20 = vld [vmem:[#allocation16 + $0x250] ss:$24 sps:$4 sm:$0xff]  }
 0x563   :  { %3830 = vmatprep.subr.bf16.mxu1 %v8299_v23  ;;  %3912 = vmatprep.subr.bf16.mxu0 %v8302_v25  ;;  %v8473_v22 = vld [vmem:[#allocation19 + $0x2a4] ss:$28 sps:$4 sm:$0xff]  }
 0x564   :  { %v8344_v23 = vld [vmem:[#allocation16 + $0x284] ss:$24 sps:$4 sm:$0xff]  }
 0x565   :  { %v8471_v25 = vld [vmem:[#allocation19 + $0x2a0] ss:$28 sps:$4 sm:$0xff]  }
 0x566   :  { %3831 = vmatpush1.bf16.msra.mxu1 %v8297_v26  ;;  %3913 = vmatpush1.bf16.msra.mxu0 %v8300_v27  ;;  %v8342_v26 = vld [vmem:[#allocation16 + $0x280] ss:$24 sps:$4 sm:$0xff]  }
 0x567   :  { %3923 = vmatprep.subr.bf16.mxu1 %v8305_v29  ;;  %6166 = vmatprep.subr.bf16.mxu0 %v8401_v34  ;;  %v8479_v27 = vld [vmem:[#allocation19 + $0x2dc] ss:$28 sps:$4 sm:$0xff]   ;;  %v8353_v34 = vld [vmem:[#allocation16 + $0x314] ss:$24 sps:$4 sm:$0xff]  }
 0x568   :  { %v8477_v29 = vld [vmem:[#allocation19 + $0x2d8] ss:$28 sps:$4 sm:$0xff]  }
 0x569   :  { %3833 = vmatmul.mubr.bf16.vlgmr.msra.gmra.mrb[12].mxu1 %v9507_v31  ;;  %3915 = vmatmul.mubr.bf16.vlgmr.msra.gmra.mrb[16].mxu0 %v9507_v31 }
 0x56a   :  { %3924 = vmatpush1.bf16.msra.mxu1 %v8303_v30  ;;  %3955 = vmatprep.mubr.bf16.mxu1 %v9494_v17  ;;  %v8317_v17 = vld [vmem:[#allocation16 + $0xd4] ss:$24 sps:$4 sm:$0xff]   ;;  %v8345_v30 = vld [vmem:[#allocation16 + $0x2b0] ss:$24 sps:$4 sm:$0xff]  }
 0x56b   :  { %3925 = vmatprep.subr.bf16.mxu1 %v8308_v32  ;;  %6167 = vmatpush1.bf16.msra.mxu0 %v8399_v33  ;;  %v8350_v32 = vld [vmem:[#allocation16 + $0x2e4] ss:$24 sps:$4 sm:$0xff]   ;;  %v8348_v33 = vld [vmem:[#allocation16 + $0x2e0] ss:$24 sps:$4 sm:$0xff]  }
 0x56c   :  { %6168 = vmatprep.subr.bf16.mxu0 %v8407_v35  ;;  %v8356_v35 = vld [vmem:[#allocation16 + $0x344] ss:$24 sps:$4 sm:$0xff]  }
 0x56e   :  { %3926 = vmatpush1.bf16.msra.mxu1 %v8306_v6  ;;  %v8351_v6 = vld [vmem:[#allocation16 + $0x310] ss:$24 sps:$4 sm:$0xff]  }
 0x56f   :  { %3927 = vmatprep.subr.bf16.mxu1 %v8311_v36  ;;  %6169 = vmatpush1.bf16.msra.mxu0 %v8405_v37  ;;  %v8354_v36 = vld [vmem:[#allocation16 + $0x340] ss:$24 sps:$4 sm:$0xff]   ;;  %v8359_v37 = vld [vmem:[#allocation16 + $0x374] ss:$24 sps:$4 sm:$0xff]  }
 0x570   :  { %6170 = vmatprep.subr.bf16.mxu0 %v8413_v39  ;;  %v8362_v39 = vld [vmem:[#allocation16 + $0x3a4] ss:$24 sps:$4 sm:$0xff]  }
 0x572   :  { %3928 = vmatpush1.bf16.msra.mxu1 %v8309_v38  ;;  %v8357_v38 = vld [vmem:[#allocation16 + $0x370] ss:$24 sps:$4 sm:$0xff]  }
 0x573   :  { %3929 = vmatprep.subr.bf16.mxu1 %v8314_v40  ;;  %6171 = vmatpush1.bf16.msra.mxu0 %v8411_v41  ;;  %v8360_v40 = vld [vmem:[#allocation16 + $0x3a0] ss:$24 sps:$4 sm:$0xff]   ;;  %v8365_v41 = vld [vmem:[#allocation16 + $0x3d4] ss:$24 sps:$4 sm:$0xff]  }
 0x574   :  { %6172 = vmatprep.subr.bf16.mxu0 %v8419_v43  ;;  %v8368_v43 = vld [vmem:[#allocation16 + $0x404] ss:$24 sps:$4 sm:$0xff]  }
 0x576   :  { %3930 = vmatpush1.bf16.msra.mxu1 %v8312_v42  ;;  %v8363_v42 = vld [vmem:[#allocation16 + $0x3d0] ss:$24 sps:$4 sm:$0xff]  }
 0x577   :  { %3931 = vmatprep.subr.bf16.mxu1 %v8317_v17  ;;  %6173 = vmatpush1.bf16.msra.mxu0 %v8417_v44  ;;  %v8485_v17 = vld [vmem:[#allocation19 + $0x314] ss:$28 sps:$4 sm:$0xff]  }
 0x578   :  { %6174 = vmatprep.subr.bf16.mxu0 %v8425_v46  ;;  %v8483_v44 = vld [vmem:[#allocation19 + $0x310] ss:$28 sps:$4 sm:$0xff]  }
 0x579   :  { %v8491_v46 = vld [vmem:[#allocation19 + $0x34c] ss:$28 sps:$4 sm:$0xff]  }
 0x57a   :  { %3932 = vmatpush1.bf16.msra.mxu1 %v8315_v45  ;;  %v8369_v45 = vld [vmem:[#allocation16 + $0x430] ss:$24 sps:$4 sm:$0xff]  }
 0x57b   :  { %3933 = vmatprep.subr.bf16.mxu1 %v8320_v47  ;;  %6175 = vmatpush1.bf16.msra.mxu0 %v8423_v48  ;;  %v8374_v47 = vld [vmem:[#allocation16 + $0x464] ss:$24 sps:$4 sm:$0xff]   ;;  %v8489_v48 = vld [vmem:[#allocation19 + $0x348] ss:$28 sps:$4 sm:$0xff]  }
 0x57c   :  { %6176 = vmatprep.subr.bf16.mxu0 %v8431_v50  ;;  %v8497_v50 = vld [vmem:[#allocation19 + $0x384] ss:$28 sps:$4 sm:$0xff]  }
 0x57e   :  { %3934 = vmatpush1.bf16.msra.mxu1 %v8318_v49  ;;  %v8372_v49 = vld [vmem:[#allocation16 + $0x460] ss:$24 sps:$4 sm:$0xff]  }
 0x57f   :  { %3935 = vmatprep.subr.bf16.mxu1 %v8323_v51  ;;  %6177 = vmatpush1.bf16.msra.mxu0 %v8429_v52  ;;  %v8377_v51 = vld [vmem:[#allocation16 + $0x494] ss:$24 sps:$4 sm:$0xff]   ;;  %v8375_v52 = vld [vmem:[#allocation16 + $0x490] ss:$24 sps:$4 sm:$0xff]  }
 0x580   :  { %6178 = vmatprep.subr.bf16.mxu0 %v8437_v59  ;;  %v8378_v59 = vld [vmem:[#allocation16 + $0x4c0] ss:$24 sps:$4 sm:$0xff]  }
 0x582   :  { %3936 = vmatpush1.bf16.msra.mxu1 %v8321_v56  ;;  %v8380_v56 = vld [vmem:[#allocation16 + $0x4c4] ss:$24 sps:$4 sm:$0xff]  }
 0x583   :  { %3937 = vmatprep.subr.bf16.mxu1 %v8326_v60  ;;  %6179 = vmatpush1.bf16.msra.mxu0 %v8435_v61  ;;  %v8383_v60 = vld [vmem:[#allocation16 + $0x4f4] ss:$24 sps:$4 sm:$0xff]   ;;  %v8381_v61 = vld [vmem:[#allocation16 + $0x4f0] ss:$24 sps:$4 sm:$0xff]  }
 0x584   :  { %6180 = vmatprep.subr.bf16.mxu0 %v8443_v63  ;;  %v8384_v63 = vld [vmem:[#allocation16 + $0x520] ss:$24 sps:$4 sm:$0xff]  }
 0x586   :  { %3938 = vmatpush1.bf16.msra.mxu1 %v8324_v62  ;;  %v8386_v62 = vld [vmem:[#allocation16 + $0x524] ss:$24 sps:$4 sm:$0xff]  }
 0x587   :  { %3939 = vmatprep.subr.bf16.mxu1 %v8329_v0  ;;  %6181 = vmatpush1.bf16.msra.mxu0 %v8441_v1  ;;  %v8389_v0 = vld [vmem:[#allocation16 + $0x554] ss:$24 sps:$4 sm:$0xff]   ;;  %v8387_v1 = vld [vmem:[#allocation16 + $0x550] ss:$24 sps:$4 sm:$0xff]  }
 0x588   :  { %6182 = vmatprep.subr.bf16.mxu0 %v8449_v3  ;;  %v8390_v3 = vld [vmem:[#allocation16 + $0x580] ss:$24 sps:$4 sm:$0xff]  }
 0x58a   :  { %3940 = vmatpush1.bf16.msra.mxu1 %v8327_v2  ;;  %v8392_v2 = vld [vmem:[#allocation16 + $0x584] ss:$24 sps:$4 sm:$0xff]  }
 0x58b   :  { %3941 = vmatprep.subr.bf16.mxu1 %v8332_v4  ;;  %6183 = vmatpush1.bf16.msra.mxu0 %v8447_v5  ;;  %v8395_v4 = vld [vmem:[#allocation16 + $0x5b4] ss:$24 sps:$4 sm:$0xff]   ;;  %v8393_v5 = vld [vmem:[#allocation16 + $0x5b0] ss:$24 sps:$4 sm:$0xff]  }
 0x58c   :  { %6184 = vmatprep.subr.bf16.mxu0 %v8455_v8  ;;  %v8396_v8 = vld [vmem:[#allocation16 + $0x5e0] ss:$24 sps:$4 sm:$0xff]  }
 0x58e   :  { %3942 = vmatpush1.bf16.msra.mxu1 %v8330_v7  ;;  %v8398_v7 = vld [vmem:[#allocation16 + $0x5e4] ss:$24 sps:$4 sm:$0xff]  }
 0x58f   :  { %3943 = vmatprep.subr.bf16.mxu1 %v8335_v9  ;;  %6185 = vmatpush1.bf16.msra.mxu0 %v8453_v10  ;;  %v8404_v9 = vld [vmem:[#allocation19 + $0xc] ss:$28 sps:$4 sm:$0xff]  }
 0x590   :  { %6186 = vmatprep.subr.bf16.mxu0 %v8461_v11  ;;  %v8402_v10 = vld [vmem:[#allocation19 + $0x8] ss:$28 sps:$4 sm:$0xff]   ;;  %v8408_v11 = vld [vmem:[#allocation19 + $0x40] ss:$28 sps:$4 sm:$0xff]  }
 0x592   :  { %3944 = vmatpush1.bf16.msra.mxu1 %v8333_v18  ;;  %v8410_v18 = vld [vmem:[#allocation19 + $0x44] ss:$28 sps:$4 sm:$0xff]  }
 0x593   :  { %3945 = vmatprep.subr.bf16.mxu1 %v8338_v12  ;;  %6187 = vmatpush1.bf16.msra.mxu0 %v8459_v13  ;;  %v8416_v12 = vld [vmem:[#allocation19 + $0x7c] ss:$28 sps:$4 sm:$0xff]  }
 0x594   :  { %6188 = vmatprep.subr.bf16.mxu0 %v8467_v15  ;;  %v8414_v13 = vld [vmem:[#allocation19 + $0x78] ss:$28 sps:$4 sm:$0xff]   ;;  %v8420_v15 = vld [vmem:[#allocation19 + $0xb0] ss:$28 sps:$4 sm:$0xff]  }
 0x596   :  { %3946 = vmatpush1.bf16.msra.mxu1 %v8336_v14  ;;  %v8422_v14 = vld [vmem:[#allocation19 + $0xb4] ss:$28 sps:$4 sm:$0xff]  }
 0x597   :  { %3947 = vmatprep.subr.bf16.mxu1 %v8341_v16  ;;  %6189 = vmatpush1.bf16.msra.mxu0 %v8465_v19  ;;  %v8428_v16 = vld [vmem:[#allocation19 + $0xec] ss:$28 sps:$4 sm:$0xff]  }
 0x598   :  { %6190 = vmatprep.subr.bf16.mxu0 %v8473_v22  ;;  %v8426_v19 = vld [vmem:[#allocation19 + $0xe8] ss:$28 sps:$4 sm:$0xff]   ;;  %v8432_v22 = vld [vmem:[#allocation19 + $0x120] ss:$28 sps:$4 sm:$0xff]  }
 0x59a   :  { %3948 = vmatpush1.bf16.msra.mxu1 %v8339_v20  ;;  %v8434_v20 = vld [vmem:[#allocation19 + $0x124] ss:$28 sps:$4 sm:$0xff]  }
 0x59b   :  { %3949 = vmatprep.subr.bf16.mxu1 %v8344_v23  ;;  %6191 = vmatpush1.bf16.msra.mxu0 %v8471_v25  ;;  %v8438_v23 = vld [vmem:[#allocation19 + $0x158] ss:$28 sps:$4 sm:$0xff]  }
 0x59c   :  { %6192 = vmatprep.subr.bf16.mxu0 %v8479_v27  ;;  %v8446_v25 = vld [vmem:[#allocation19 + $0x194] ss:$28 sps:$4 sm:$0xff]   ;;  %v8452_v27 = vld [vmem:[#allocation19 + $0x1cc] ss:$28 sps:$4 sm:$0xff]  }
 0x59e   :  { %3950 = vmatpush1.bf16.msra.mxu1 %v8342_v26  ;;  %v8444_v26 = vld [vmem:[#allocation19 + $0x190] ss:$28 sps:$4 sm:$0xff]  }
 0x59f   :  { %3951 = vmatprep.subr.bf16.mxu1 %v8347_v28  ;;  %6193 = vmatpush1.bf16.msra.mxu0 %v8477_v29  ;;  %v8450_v28 = vld [vmem:[#allocation19 + $0x1c8] ss:$28 sps:$4 sm:$0xff]  }
 0x5a0   :  { %6194 = vmatprep.subr.bf16.mxu0 %v8485_v17  ;;  %v8458_v29 = vld [vmem:[#allocation19 + $0x204] ss:$28 sps:$4 sm:$0xff]  }
 0x5a2   :  { %3952 = vmatpush1.bf16.msra.mxu1 %v8345_v30  ;;  %v8456_v30 = vld [vmem:[#allocation19 + $0x200] ss:$28 sps:$4 sm:$0xff]  }
 0x5a3   :  { %3953 = vmatprep.subr.bf16.mxu1 %v8350_v32  ;;  %6195 = vmatpush1.bf16.msra.mxu0 %v8483_v44  ;;  %v8464_v32 = vld [vmem:[#allocation19 + $0x23c] ss:$28 sps:$4 sm:$0xff]  }
 0x5a4   :  { %6196 = vmatprep.subr.bf16.mxu0 %v8491_v46 }
 0x5a6   :  { %3954 = vmatpush1.bf16.msra.mxu1 %v8348_v33  ;;  %v8462_v33 = vld [vmem:[#allocation19 + $0x238] ss:$28 sps:$4 sm:$0xff]  }
 0x5a7   :  { %3964 = vmatprep.subr.bf16.mxu1 %v8353_v34  ;;  %6197 = vmatpush1.bf16.msra.mxu0 %v8489_v48  ;;  %v8470_v34 = vld [vmem:[#allocation19 + $0x274] ss:$28 sps:$4 sm:$0xff]  }
 0x5a8   :  { %6207 = vmatprep.subr.bf16.mxu0 %v8497_v50 }
 0x5a9   :  { %3956 = vmatmul.mubr.bf16.vlgmr.msra.gmra.mrb[16].mxu1 %v9496_v21  ;;  %v8366_v21 = vld [vmem:[#allocation16 + $0x400] ss:$24 sps:$4 sm:$0xff]  }
 0x5aa   :  { %3965 = vmatpush1.bf16.msra.mxu1 %v8351_v6  ;;  %3996 = vmatprep.mubr.bf16.mxu1 %v9500_v24  ;;  %v8371_v24 = vld [vmem:[#allocation16 + $0x434] ss:$24 sps:$4 sm:$0xff]  }
 0x5ab   :  { %3966 = vmatprep.subr.bf16.mxu1 %v8356_v35  ;;  %v8468_v6 = vld [vmem:[#allocation19 + $0x270] ss:$28 sps:$4 sm:$0xff]  }
 0x5ac   :  { %v8476_v35 = vld [vmem:[#allocation19 + $0x2ac] ss:$28 sps:$4 sm:$0xff]  }
 0x5ae   :  { %3967 = vmatpush1.bf16.msra.mxu1 %v8354_v36  ;;  %v8474_v36 = vld [vmem:[#allocation19 + $0x2a8] ss:$28 sps:$4 sm:$0xff]  }
 0x5af   :  { %3968 = vmatprep.subr.bf16.mxu1 %v8359_v37  ;;  %v8482_v37 = vld [vmem:[#allocation19 + $0x2e4] ss:$28 sps:$4 sm:$0xff]  }
 0x5b2   :  { %3969 = vmatpush1.bf16.msra.mxu1 %v8357_v38  ;;  %v8480_v38 = vld [vmem:[#allocation19 + $0x2e0] ss:$28 sps:$4 sm:$0xff]  }
 0x5b3   :  { %3970 = vmatprep.subr.bf16.mxu1 %v8362_v39  ;;  %v8488_v39 = vld [vmem:[#allocation19 + $0x31c] ss:$28 sps:$4 sm:$0xff]  }
 0x5b6   :  { %3971 = vmatpush1.bf16.msra.mxu1 %v8360_v40  ;;  %v8486_v40 = vld [vmem:[#allocation19 + $0x318] ss:$28 sps:$4 sm:$0xff]  }
 0x5b7   :  { %3972 = vmatprep.subr.bf16.mxu1 %v8365_v41  ;;  %v8494_v41 = vld [vmem:[#allocation19 + $0x354] ss:$28 sps:$4 sm:$0xff]  }
 0x5ba   :  { %3973 = vmatpush1.bf16.msra.mxu1 %v8363_v42  ;;  %v8492_v42 = vld [vmem:[#allocation19 + $0x350] ss:$28 sps:$4 sm:$0xff]  }
 0x5bb   :  { %3974 = vmatprep.subr.bf16.mxu1 %v8368_v43  ;;  %v8500_v43 = vld [vmem:[#allocation19 + $0x38c] ss:$28 sps:$4 sm:$0xff]  }
 0x5be   :  { %3975 = vmatpush1.bf16.msra.mxu1 %v8366_v21  ;;  %v9515_v21 = vld [vmem:[#allocation17] sm:$0x3f] }
 0x5bf   :  { %3976 = vmatprep.subr.bf16.mxu1 %v8371_v24  ;;  %v2772_v17 = vrot.slane %v9515_v21, %v9465_v54  ;;  %v2776_v24 = vrot.slane %v9515_v21, %v9471_v57  ;;  %v2784_v44 = vrot.slane %v9515_v21, %v9474_v58 }
 0x5c2   :  { %3977 = vmatpush1.bf16.msra.mxu1 %v8369_v45 }
 0x5c3   :  { %3978 = vmatprep.subr.bf16.mxu1 %v8374_v47 }
 0x5c6   :  { %3979 = vmatpush1.bf16.msra.mxu1 %v8372_v49 }
 0x5c7   :  { %3980 = vmatprep.subr.bf16.mxu1 %v8377_v51 }
 0x5ca   :  { %3981 = vmatpush1.bf16.msra.mxu1 %v8375_v52 }
 0x5cb   :  { %3982 = vmatprep.subr.bf16.mxu1 %v8380_v56 }
 0x5ce   :  { %3983 = vmatpush1.bf16.msra.mxu1 %v8378_v59 }
 0x5cf   :  { %3984 = vmatprep.subr.bf16.mxu1 %v8383_v60 }
 0x5d2   :  { %3985 = vmatpush1.bf16.msra.mxu1 %v8381_v61 }
 0x5d3   :  { %3986 = vmatprep.subr.bf16.mxu1 %v8386_v62 }
 0x5d6   :  { %3987 = vmatpush1.bf16.msra.mxu1 %v8384_v63 }
 0x5d7   :  { %3988 = vmatprep.subr.bf16.mxu1 %v8389_v0 }
 0x5da   :  { %3989 = vmatpush1.bf16.msra.mxu1 %v8387_v1  ;;  %v8495_v1 = vld [vmem:[#allocation19 + $0x380] ss:$28 sps:$4 sm:$0xff]  }
 0x5db   :  { %3990 = vmatprep.subr.bf16.mxu1 %v8392_v2  ;;  %v8498_v2 = vld [vmem:[#allocation19 + $0x388] ss:$28 sps:$4 sm:$0xff]  }
 0x5de   :  { %3991 = vmatpush1.bf16.msra.mxu1 %v8390_v3 }
 0x5df   :  { %3992 = vmatprep.subr.bf16.mxu1 %v8395_v4  ;;  %v8503_v4 = vld [vmem:[#allocation19 + $0x3bc] ss:$28 sps:$4 sm:$0xff]  }
 0x5e2   :  { %3993 = vmatpush1.bf16.msra.mxu1 %v8393_v5  ;;  %v8506_v5 = vld [vmem:[#allocation19 + $0x3c4] ss:$28 sps:$4 sm:$0xff]  }
 0x5e3   :  { %3994 = vmatprep.subr.bf16.mxu1 %v8398_v7 }
 0x5e6   :  { %3995 = vmatpush1.bf16.msra.mxu1 %v8396_v8  ;;  %v8501_v8 = vld [vmem:[#allocation19 + $0x3b8] ss:$28 sps:$4 sm:$0xff]  }
 0x5e7   :  { %6289 = vmatprep.subr.bf16.mxu1 %v8404_v9  ;;  %v8504_v9 = vld [vmem:[#allocation19 + $0x3c0] ss:$28 sps:$4 sm:$0xff]  }
 0x5e9   :  { %3997 = vmatmul.mubr.bf16.vlgmr.msra.gmra.mrb[16].mxu1 %v9507_v31  ;;  %v8440_v31 = vld [vmem:[#allocation19 + $0x15c] ss:$28 sps:$4 sm:$0xff]  }
 0x5ea   :  { %6290 = vmatpush1.bf16.msra.mxu1 %v8402_v10  ;;  %v8509_v10 = vld [vmem:[#allocation19 + $0x3f4] ss:$28 sps:$4 sm:$0xff]  }
 0x5eb   :  { %6291 = vmatprep.subr.bf16.mxu1 %v8410_v18  ;;  %v8512_v18 = vld [vmem:[#allocation19 + $0x3fc] ss:$28 sps:$4 sm:$0xff]  }
 0x5ee   :  { %6292 = vmatpush1.bf16.msra.mxu1 %v8408_v11  ;;  %v8507_v11 = vld [vmem:[#allocation19 + $0x3f0] ss:$28 sps:$4 sm:$0xff]  }
 0x5ef   :  { %6293 = vmatprep.subr.bf16.mxu1 %v8416_v12  ;;  %v8510_v12 = vld [vmem:[#allocation19 + $0x3f8] ss:$28 sps:$4 sm:$0xff]  }
 0x5f2   :  { %6294 = vmatpush1.bf16.msra.mxu1 %v8414_v13  ;;  %v8515_v13 = vld [vmem:[#allocation19 + $0x42c] ss:$28 sps:$4 sm:$0xff]  }
 0x5f3   :  { %6295 = vmatprep.subr.bf16.mxu1 %v8422_v14  ;;  %v8518_v14 = vld [vmem:[#allocation19 + $0x434] ss:$28 sps:$4 sm:$0xff]  }
 0x5f6   :  { %6296 = vmatpush1.bf16.msra.mxu1 %v8420_v15  ;;  %v8513_v15 = vld [vmem:[#allocation19 + $0x428] ss:$28 sps:$4 sm:$0xff]  }
 0x5f7   :  { %6297 = vmatprep.subr.bf16.mxu1 %v8428_v16  ;;  %v8516_v16 = vld [vmem:[#allocation19 + $0x430] ss:$28 sps:$4 sm:$0xff]  }
 0x5fa   :  { %6298 = vmatpush1.bf16.msra.mxu1 %v8426_v19  ;;  %v8521_v19 = vld [vmem:[#allocation19 + $0x464] ss:$28 sps:$4 sm:$0xff]  }
 0x5fb   :  { %6299 = vmatprep.subr.bf16.mxu1 %v8434_v20  ;;  %v8524_v20 = vld [vmem:[#allocation19 + $0x46c] ss:$28 sps:$4 sm:$0xff]  }
 0x5fe   :  { %6300 = vmatpush1.bf16.msra.mxu1 %v8432_v22  ;;  %v8519_v22 = vld [vmem:[#allocation19 + $0x460] ss:$28 sps:$4 sm:$0xff]  }
 0x5ff   :  { %6301 = vmatprep.subr.bf16.mxu1 %v8440_v31  ;;  %v8522_v31 = vld [vmem:[#allocation19 + $0x468] ss:$28 sps:$4 sm:$0xff]  }
 0x602   :  { %6302 = vmatpush1.bf16.msra.mxu1 %v8438_v23  ;;  %v8527_v23 = vld [vmem:[#allocation19 + $0x49c] ss:$28 sps:$4 sm:$0xff]  }
 0x603   :  { %6303 = vmatprep.subr.bf16.mxu1 %v8446_v25  ;;  %v8530_v25 = vld [vmem:[#allocation19 + $0x4a4] ss:$28 sps:$4 sm:$0xff]  }
 0x606   :  { %6304 = vmatpush1.bf16.msra.mxu1 %v8444_v26  ;;  %v8525_v26 = vld [vmem:[#allocation19 + $0x498] ss:$28 sps:$4 sm:$0xff]  }
 0x607   :  { %6305 = vmatprep.subr.bf16.mxu1 %v8452_v27  ;;  %v8528_v27 = vld [vmem:[#allocation19 + $0x4a0] ss:$28 sps:$4 sm:$0xff]  }
 0x60a   :  { %6306 = vmatpush1.bf16.msra.mxu1 %v8450_v28  ;;  %v8533_v28 = vld [vmem:[#allocation19 + $0x4d4] ss:$28 sps:$4 sm:$0xff]  }
 0x60b   :  { %6307 = vmatprep.subr.bf16.mxu1 %v8458_v29  ;;  %v8536_v29 = vld [vmem:[#allocation19 + $0x4dc] ss:$28 sps:$4 sm:$0xff]  }
 0x60e   :  { %6308 = vmatpush1.bf16.msra.mxu1 %v8456_v30  ;;  %v8531_v30 = vld [vmem:[#allocation19 + $0x4d0] ss:$28 sps:$4 sm:$0xff]  }
 0x60f   :  { %6309 = vmatprep.subr.bf16.mxu1 %v8464_v32  ;;  %v8534_v32 = vld [vmem:[#allocation19 + $0x4d8] ss:$28 sps:$4 sm:$0xff]  }
 0x612   :  { %6310 = vmatpush1.bf16.msra.mxu1 %v8462_v33  ;;  %v8539_v33 = vld [vmem:[#allocation19 + $0x50c] ss:$28 sps:$4 sm:$0xff]  }
 0x613   :  { %6311 = vmatprep.subr.bf16.mxu1 %v8470_v34  ;;  %v8542_v34 = vld [vmem:[#allocation19 + $0x514] ss:$28 sps:$4 sm:$0xff]  }
 0x616   :  { %6312 = vmatpush1.bf16.msra.mxu1 %v8468_v6  ;;  %v8537_v6 = vld [vmem:[#allocation19 + $0x508] ss:$28 sps:$4 sm:$0xff]  }
 0x617   :  { %6313 = vmatprep.subr.bf16.mxu1 %v8476_v35  ;;  %v8540_v35 = vld [vmem:[#allocation19 + $0x510] ss:$28 sps:$4 sm:$0xff]  }
 0x61a   :  { %6314 = vmatpush1.bf16.msra.mxu1 %v8474_v36  ;;  %v8545_v36 = vld [vmem:[#allocation19 + $0x544] ss:$28 sps:$4 sm:$0xff]  }
 0x61b   :  { %6315 = vmatprep.subr.bf16.mxu1 %v8482_v37  ;;  %v8548_v37 = vld [vmem:[#allocation19 + $0x54c] ss:$28 sps:$4 sm:$0xff]  }
 0x61e   :  { %6316 = vmatpush1.bf16.msra.mxu1 %v8480_v38  ;;  %v8543_v38 = vld [vmem:[#allocation19 + $0x540] ss:$28 sps:$4 sm:$0xff]  }
 0x61f   :  { %6317 = vmatprep.subr.bf16.mxu1 %v8488_v39  ;;  %v8546_v39 = vld [vmem:[#allocation19 + $0x548] ss:$28 sps:$4 sm:$0xff]  }
 0x622   :  { %6318 = vmatpush1.bf16.msra.mxu1 %v8486_v40  ;;  %v8551_v40 = vld [vmem:[#allocation19 + $0x57c] ss:$28 sps:$4 sm:$0xff]  }
 0x623   :  { %6319 = vmatprep.subr.bf16.mxu1 %v8494_v41  ;;  %v8554_v41 = vld [vmem:[#allocation19 + $0x584] ss:$28 sps:$4 sm:$0xff]  }
 0x626   :  { %6320 = vmatpush1.bf16.msra.mxu1 %v8492_v42  ;;  %v8549_v42 = vld [vmem:[#allocation19 + $0x578] ss:$28 sps:$4 sm:$0xff]  }
 0x627   :  { %6330 = vmatprep.subr.bf16.mxu1 %v8500_v43  ;;  %v8552_v43 = vld [vmem:[#allocation19 + $0x580] ss:$28 sps:$4 sm:$0xff]  }
 0x63c   :  { %v3834_v45 = vpop.f32.mrb[12].mxu1  ;;  %v9523_v46 = vpop.f32.mrb[16].mxu0 }
 0x63d   :  { %v7615_v47 = vadd.f32 %v3834_v45, %v2772_v17  ;;  %v3836_v48 = vpop.f32.mrb[13].mxu1  ;;  %v3918_v49 = vpop.f32.mrb[17].mxu0  ;;  %v8557_v17 = vld [vmem:[#allocation19 + $0x5b4] ss:$28 sps:$4 sm:$0xff]  }
 0x63e   :  { %v7616_v50 = vadd.f32 %v3836_v48, %v2776_v24  ;;  %v7618_v51 = vadd.f32 %v3918_v49, %v2784_v44  ;;  %v3838_v52 = vpop.f32.mrb[14].mxu1  ;;  %v3920_v56 = vpop.f32.mrb[18].mxu0  ;;  %v8560_v24 = vld [vmem:[#allocation19 + $0x5bc] ss:$28 sps:$4 sm:$0xff]   ;;  %v8555_v44 = vld [vmem:[#allocation19 + $0x5b0] ss:$28 sps:$4 sm:$0xff]  }
 0x63f   :  { %v4005_v59 = vmax.f32 %v7615_v47, 0.0  ;;  %v3839_v60 = vpop.f32.mrb[15].mxu1  ;;  %v3921_v61 = vpop.f32.mrb[19].mxu0  ;;  %v8558_v45 = vld [vmem:[#allocation19 + $0x5b8] ss:$28 sps:$4 sm:$0xff]  }
 0x640   :  { %v4006_v62 = vmax.f32 %v7616_v50, 0.0  ;;  %v4008_v63 = vmax.f32 %v7618_v51, 0.0  ;;  %v8563_v47 = vld [vmem:[#allocation19 + $0x5ec] ss:$28 sps:$4 sm:$0xff]   ;;  %v8566_v48 = vld [vmem:[#allocation19 + $0x5f4] ss:$28 sps:$4 sm:$0xff]  }
 0x641   :  { %v9527_v3 = vpack.c.bf16 %v4005_v59, %v4005_v59  ;;  %v8561_v49 = vld [vmem:[#allocation19 + $0x5e8] ss:$28 sps:$4 sm:$0xff]   ;;  %v8564_v50 = vld [vmem:[#allocation19 + $0x5f0] ss:$28 sps:$4 sm:$0xff]   ;;  %v8567_v56 = vld [vmem:[#allocation19 + $0x620] ss:$28 sps:$4 sm:$0xff]  }
 0x642   :  { %v9525_v0 = vpack.c.bf16 %v4006_v62, %v4006_v62  ;;  %v9531_v7 = vpack.c.bf16 %v4008_v63, %v4008_v63  ;;  %v8569_v51 = vld [vmem:[#allocation19 + $0x624] ss:$28 sps:$4 sm:$0xff]   ;;  %v8572_v52 = vld [vmem:[#allocation19 + $0x62c] ss:$28 sps:$4 sm:$0xff]   ;;  %v8575_v60 = vld [vmem:[#allocation19 + $0x65c] ss:$28 sps:$4 sm:$0xff]  }
 0x643   :  { %v8570_v59 = vld [vmem:[#allocation19 + $0x628] ss:$28 sps:$4 sm:$0xff]   ;;  %v8573_v62 = vld [vmem:[#allocation19 + $0x658] ss:$28 sps:$4 sm:$0xff]   ;;  %v8576_v63 = vld [vmem:[#allocation19 + $0x660] ss:$28 sps:$4 sm:$0xff]  }
 0x644   :  { %6198 = vmatprep.mubr.bf16.mxu0 %v9525_v0  ;;  %6321 = vmatprep.mubr.bf16.mxu1 %v9525_v0  ;;  %v8578_v61 = vld [vmem:[#allocation19 + $0x664] ss:$28 sps:$4 sm:$0xff]  }
 0x645   :  { %6199 = vmatmul.mubr.bf16.vlgmr.msra.gmra.mrb[20].mxu0 %v9527_v3  ;;  %6322 = vmatmul.mubr.bf16.vlgmr.msra.gmra.mrb[20].mxu1 %v9527_v3 }
 0x646   :  { %6208 = vmatpush1.bf16.msra.mxu0 %v8495_v1  ;;  %6331 = vmatpush1.bf16.msra.mxu1 %v8498_v2  ;;  %v2780_v1 = vrot.slane %v9515_v21, %v9468_v55  ;;  %v8581_v2 = vld [vmem:[#allocation19 + $0x694] ss:$28 sps:$4 sm:$0xff]  }
 0x647   :  { %6239 = vmatprep.mubr.bf16.mxu0 %v9531_v7  ;;  %6362 = vmatprep.mubr.bf16.mxu1 %v9531_v7 }
 0x648   :  { %6209 = vmatprep.subr.bf16.mxu0 %v8503_v4  ;;  %6332 = vmatprep.subr.bf16.mxu1 %v8506_v5  ;;  %v8584_v4 = vld [vmem:[#allocation19 + $0x69c] ss:$28 sps:$4 sm:$0xff]   ;;  %v8579_v5 = vld [vmem:[#allocation19 + $0x690] ss:$28 sps:$4 sm:$0xff]  }
 0x64a   :  { %6210 = vmatpush1.bf16.msra.mxu0 %v8501_v8  ;;  %6333 = vmatpush1.bf16.msra.mxu1 %v8504_v9  ;;  %v8582_v8 = vld [vmem:[#allocation19 + $0x698] ss:$28 sps:$4 sm:$0xff]   ;;  %v7617_v9 = vadd.f32 %v9523_v46, %v2780_v1 }
 0x64b   :  { %6211 = vmatprep.subr.bf16.mxu0 %v8509_v10  ;;  %6334 = vmatprep.subr.bf16.mxu1 %v8512_v18  ;;  %v8587_v10 = vld [vmem:[#allocation19 + $0x6cc] ss:$28 sps:$4 sm:$0xff]   ;;  %v8590_v18 = vld [vmem:[#allocation19 + $0x6d4] ss:$28 sps:$4 sm:$0xff]   ;;  %v8599_v46 = vld [vmem:[#allocation19 + $0x73c] ss:$28 sps:$4 sm:$0xff]  }
 0x64c   :  { %v8654_v1 = vld [vmem:[#allocation19 + $0x938] ss:$28 sps:$4 sm:$0xff]  }
 0x64e   :  { %6212 = vmatpush1.bf16.msra.mxu0 %v8507_v11  ;;  %6335 = vmatpush1.bf16.msra.mxu1 %v8510_v12  ;;  %v8585_v11 = vld [vmem:[#allocation19 + $0x6c8] ss:$28 sps:$4 sm:$0xff]   ;;  %v8588_v12 = vld [vmem:[#allocation19 + $0x6d0] ss:$28 sps:$4 sm:$0xff]  }
 0x64f   :  { %6213 = vmatprep.subr.bf16.mxu0 %v8515_v13  ;;  %6336 = vmatprep.subr.bf16.mxu1 %v8518_v14  ;;  %v4007_v13 = vmax.f32 %v7617_v9, 0.0  ;;  %v8593_v14 = vld [vmem:[#allocation19 + $0x704] ss:$28 sps:$4 sm:$0xff]  }
 0x650   :  { %v8665_v9 = vld [vmem:[#allocation19 + $0x9a4] ss:$28 sps:$4 sm:$0xff]  }
 0x652   :  { %6214 = vmatpush1.bf16.msra.mxu0 %v8513_v15  ;;  %6337 = vmatpush1.bf16.msra.mxu1 %v8516_v16  ;;  %v8596_v15 = vld [vmem:[#allocation19 + $0x70c] ss:$28 sps:$4 sm:$0xff]   ;;  %v8591_v16 = vld [vmem:[#allocation19 + $0x700] ss:$28 sps:$4 sm:$0xff]  }
 0x653   :  { %6215 = vmatprep.subr.bf16.mxu0 %v8521_v19  ;;  %6338 = vmatprep.subr.bf16.mxu1 %v8524_v20  ;;  %v8594_v19 = vld [vmem:[#allocation19 + $0x708] ss:$28 sps:$4 sm:$0xff]   ;;  %v9540_v20 = vpack.c.bf16 %v4007_v13, %v4007_v13 }
 0x654   :  { %v8674_v13 = vld [vmem:[#allocation19 + $0x9e4] ss:$28 sps:$4 sm:$0xff]  }
 0x656   :  { %6216 = vmatpush1.bf16.msra.mxu0 %v8519_v22  ;;  %6339 = vmatpush1.bf16.msra.mxu1 %v8522_v31  ;;  %v8602_v22 = vld [vmem:[#allocation19 + $0x744] ss:$28 sps:$4 sm:$0xff]   ;;  %v8597_v31 = vld [vmem:[#allocation19 + $0x738] ss:$28 sps:$4 sm:$0xff]  }
 0x657   :  { %6217 = vmatprep.subr.bf16.mxu0 %v8527_v23  ;;  %6340 = vmatprep.subr.bf16.mxu1 %v8530_v25  ;;  %v8600_v23 = vld [vmem:[#allocation19 + $0x740] ss:$28 sps:$4 sm:$0xff]   ;;  %v8605_v25 = vld [vmem:[#allocation19 + $0x774] ss:$28 sps:$4 sm:$0xff]  }
 0x65a   :  { %6218 = vmatpush1.bf16.msra.mxu0 %v8525_v26  ;;  %6341 = vmatpush1.bf16.msra.mxu1 %v8528_v27  ;;  %v8608_v26 = vld [vmem:[#allocation19 + $0x77c] ss:$28 sps:$4 sm:$0xff]   ;;  %v8603_v27 = vld [vmem:[#allocation19 + $0x770] ss:$28 sps:$4 sm:$0xff]  }
 0x65b   :  { %6219 = vmatprep.subr.bf16.mxu0 %v8533_v28  ;;  %6342 = vmatprep.subr.bf16.mxu1 %v8536_v29  ;;  %v8606_v28 = vld [vmem:[#allocation19 + $0x778] ss:$28 sps:$4 sm:$0xff]   ;;  %v8611_v29 = vld [vmem:[#allocation19 + $0x7ac] ss:$28 sps:$4 sm:$0xff]  }
 0x65e   :  { %6220 = vmatpush1.bf16.msra.mxu0 %v8531_v30  ;;  %6343 = vmatpush1.bf16.msra.mxu1 %v8534_v32  ;;  %v8614_v30 = vld [vmem:[#allocation19 + $0x7b4] ss:$28 sps:$4 sm:$0xff]   ;;  %v8609_v32 = vld [vmem:[#allocation19 + $0x7a8] ss:$28 sps:$4 sm:$0xff]  }
 0x65f   :  { %6221 = vmatprep.subr.bf16.mxu0 %v8539_v33  ;;  %6344 = vmatprep.subr.bf16.mxu1 %v8542_v34  ;;  %v8612_v33 = vld [vmem:[#allocation19 + $0x7b0] ss:$28 sps:$4 sm:$0xff]   ;;  %v8617_v34 = vld [vmem:[#allocation19 + $0x7e4] ss:$28 sps:$4 sm:$0xff]  }
 0x662   :  { %6222 = vmatpush1.bf16.msra.mxu0 %v8537_v6  ;;  %6345 = vmatpush1.bf16.msra.mxu1 %v8540_v35  ;;  %v8620_v6 = vld [vmem:[#allocation19 + $0x7ec] ss:$28 sps:$4 sm:$0xff]   ;;  %v8615_v35 = vld [vmem:[#allocation19 + $0x7e0] ss:$28 sps:$4 sm:$0xff]  }
 0x663   :  { %6223 = vmatprep.subr.bf16.mxu0 %v8545_v36  ;;  %6346 = vmatprep.subr.bf16.mxu1 %v8548_v37  ;;  %v8618_v36 = vld [vmem:[#allocation19 + $0x7e8] ss:$28 sps:$4 sm:$0xff]   ;;  %v8623_v37 = vld [vmem:[#allocation19 + $0x81c] ss:$28 sps:$4 sm:$0xff]  }
 0x666   :  { %6224 = vmatpush1.bf16.msra.mxu0 %v8543_v38  ;;  %6347 = vmatpush1.bf16.msra.mxu1 %v8546_v39  ;;  %v8626_v38 = vld [vmem:[#allocation19 + $0x824] ss:$28 sps:$4 sm:$0xff]   ;;  %v8621_v39 = vld [vmem:[#allocation19 + $0x818] ss:$28 sps:$4 sm:$0xff]  }
 0x667   :  { %6225 = vmatprep.subr.bf16.mxu0 %v8551_v40  ;;  %6348 = vmatprep.subr.bf16.mxu1 %v8554_v41  ;;  %v8624_v40 = vld [vmem:[#allocation19 + $0x820] ss:$28 sps:$4 sm:$0xff]   ;;  %v8629_v41 = vld [vmem:[#allocation19 + $0x854] ss:$28 sps:$4 sm:$0xff]  }
 0x66a   :  { %6226 = vmatpush1.bf16.msra.mxu0 %v8549_v42  ;;  %6349 = vmatpush1.bf16.msra.mxu1 %v8552_v43  ;;  %v8632_v42 = vld [vmem:[#allocation19 + $0x85c] ss:$28 sps:$4 sm:$0xff]   ;;  %v8627_v43 = vld [vmem:[#allocation19 + $0x850] ss:$28 sps:$4 sm:$0xff]  }
 0x66b   :  { %6227 = vmatprep.subr.bf16.mxu0 %v8557_v17  ;;  %6350 = vmatprep.subr.bf16.mxu1 %v8560_v24  ;;  %v8630_v17 = vld [vmem:[#allocation19 + $0x858] ss:$28 sps:$4 sm:$0xff]   ;;  %v8635_v24 = vld [vmem:[#allocation19 + $0x88c] ss:$28 sps:$4 sm:$0xff]  }
 0x66e   :  { %6228 = vmatpush1.bf16.msra.mxu0 %v8555_v44  ;;  %6351 = vmatpush1.bf16.msra.mxu1 %v8558_v45  ;;  %v8638_v44 = vld [vmem:[#allocation19 + $0x894] ss:$28 sps:$4 sm:$0xff]   ;;  %v8633_v45 = vld [vmem:[#allocation19 + $0x888] ss:$28 sps:$4 sm:$0xff]  }
 0x66f   :  { %6229 = vmatprep.subr.bf16.mxu0 %v8563_v47  ;;  %6352 = vmatprep.subr.bf16.mxu1 %v8566_v48  ;;  %v8636_v47 = vld [vmem:[#allocation19 + $0x890] ss:$28 sps:$4 sm:$0xff]   ;;  %v8641_v48 = vld [vmem:[#allocation19 + $0x8c4] ss:$28 sps:$4 sm:$0xff]  }
 0x672   :  { %6230 = vmatpush1.bf16.msra.mxu0 %v8561_v49  ;;  %6353 = vmatpush1.bf16.msra.mxu1 %v8564_v50  ;;  %v8644_v49 = vld [vmem:[#allocation19 + $0x8cc] ss:$28 sps:$4 sm:$0xff]   ;;  %v8639_v50 = vld [vmem:[#allocation19 + $0x8c0] ss:$28 sps:$4 sm:$0xff]  }
 0x673   :  { %6231 = vmatprep.subr.bf16.mxu0 %v8569_v51  ;;  %6354 = vmatprep.subr.bf16.mxu1 %v8572_v52  ;;  %v8642_v51 = vld [vmem:[#allocation19 + $0x8c8] ss:$28 sps:$4 sm:$0xff]   ;;  %v8647_v52 = vld [vmem:[#allocation19 + $0x8fc] ss:$28 sps:$4 sm:$0xff]  }
 0x676   :  { %6232 = vmatpush1.bf16.msra.mxu0 %v8567_v56  ;;  %6355 = vmatpush1.bf16.msra.mxu1 %v8570_v59  ;;  %v8650_v56 = vld [vmem:[#allocation19 + $0x904] ss:$28 sps:$4 sm:$0xff]   ;;  %v8645_v59 = vld [vmem:[#allocation19 + $0x8f8] ss:$28 sps:$4 sm:$0xff]  }
 0x677   :  { %6233 = vmatprep.subr.bf16.mxu0 %v8575_v60  ;;  %6356 = vmatprep.subr.bf16.mxu1 %v8578_v61  ;;  %v8648_v60 = vld [vmem:[#allocation19 + $0x900] ss:$28 sps:$4 sm:$0xff]   ;;  %v8653_v61 = vld [vmem:[#allocation19 + $0x934] ss:$28 sps:$4 sm:$0xff]  }
 0x67a   :  { %6234 = vmatpush1.bf16.msra.mxu0 %v8573_v62  ;;  %6357 = vmatpush1.bf16.msra.mxu1 %v8576_v63  ;;  %v8656_v62 = vld [vmem:[#allocation19 + $0x93c] ss:$28 sps:$4 sm:$0xff]   ;;  %v8651_v63 = vld [vmem:[#allocation19 + $0x930] ss:$28 sps:$4 sm:$0xff]  }
 0x67b   :  { %6235 = vmatprep.subr.bf16.mxu0 %v8581_v2  ;;  %6358 = vmatprep.subr.bf16.mxu1 %v8584_v4  ;;  %v8659_v2 = vld [vmem:[#allocation19 + $0x96c] ss:$28 sps:$4 sm:$0xff]   ;;  %v8662_v4 = vld [vmem:[#allocation19 + $0x974] ss:$28 sps:$4 sm:$0xff]  }
 0x67e   :  { %6236 = vmatpush1.bf16.msra.mxu0 %v8579_v5  ;;  %6359 = vmatpush1.bf16.msra.mxu1 %v8582_v8  ;;  %v8657_v5 = vld [vmem:[#allocation19 + $0x968] ss:$28 sps:$4 sm:$0xff]   ;;  %v8660_v8 = vld [vmem:[#allocation19 + $0x970] ss:$28 sps:$4 sm:$0xff]  }
 0x67f   :  { %6237 = vmatprep.subr.bf16.mxu0 %v8587_v10  ;;  %6360 = vmatprep.subr.bf16.mxu1 %v8590_v18  ;;  %v8668_v10 = vld [vmem:[#allocation19 + $0x9ac] ss:$28 sps:$4 sm:$0xff]   ;;  %v8663_v18 = vld [vmem:[#allocation19 + $0x9a0] ss:$28 sps:$4 sm:$0xff]  }
 0x682   :  { %6238 = vmatpush1.bf16.msra.mxu0 %v8585_v11  ;;  %6361 = vmatpush1.bf16.msra.mxu1 %v8588_v12  ;;  %v8666_v11 = vld [vmem:[#allocation19 + $0x9a8] ss:$28 sps:$4 sm:$0xff]   ;;  %v8671_v12 = vld [vmem:[#allocation19 + $0x9dc] ss:$28 sps:$4 sm:$0xff]  }
 0x683   :  { %6248 = vmatprep.subr.bf16.mxu0 %v8593_v14  ;;  %6371 = vmatprep.subr.bf16.mxu1 %v8596_v15  ;;  %v2787_v14 = vsub.s32 4, %v9462_v53  ;;  %v8669_v15 = vld [vmem:[#allocation19 + $0x9d8] ss:$28 sps:$4 sm:$0xff]  }
 0x685   :  { %6240 = vmatmul.mubr.bf16.vlgmr.msra.gmra.mrb[20].mxu0 %v9540_v20  ;;  %6363 = vmatmul.mubr.bf16.vlgmr.msra.gmra.mrb[20].mxu1 %v9540_v20 }
 0x686   :  { %6249 = vmatpush1.bf16.msra.mxu0 %v8591_v16  ;;  %6372 = vmatpush1.bf16.msra.mxu1 %v8594_v19  ;;  %v8672_v16 = vld [vmem:[#allocation19 + $0x9e0] ss:$28 sps:$4 sm:$0xff]   ;;  %v2791_v19 = vsub.s32 5, %v9462_v53 }
 0x687   :  { %6250 = vmatprep.subr.bf16.mxu0 %v8599_v46  ;;  %6373 = vmatprep.subr.bf16.mxu1 %v8602_v22  ;;  %v8677_v46 = vld [vmem:[#allocation19 + $0xa14] ss:$28 sps:$4 sm:$0xff]   ;;  %v8680_v22 = vld [vmem:[#allocation19 + $0xa1c] ss:$28 sps:$4 sm:$0xff]  }
 0x68a   :  { %6251 = vmatpush1.bf16.msra.mxu0 %v8597_v31  ;;  %6374 = vmatpush1.bf16.msra.mxu1 %v8600_v23  ;;  %v2788_v31 = vrot.slane %v9515_v21, %v2787_v14  ;;  %v8675_v23 = vld [vmem:[#allocation19 + $0xa10] ss:$28 sps:$4 sm:$0xff]  }
 0x68b   :  { %6252 = vmatprep.subr.bf16.mxu0 %v8605_v25  ;;  %6375 = vmatprep.subr.bf16.mxu1 %v8608_v26  ;;  %v8678_v25 = vld [vmem:[#allocation19 + $0xa18] ss:$28 sps:$4 sm:$0xff]   ;;  %v2792_v26 = vrot.slane %v9515_v21, %v2791_v19 }
 0x68e   :  { %6253 = vmatpush1.bf16.msra.mxu0 %v8603_v27  ;;  %6376 = vmatpush1.bf16.msra.mxu1 %v8606_v28  ;;  %v8683_v27 = vld [vmem:[#allocation19 + $0xa4c] ss:$28 sps:$4 sm:$0xff]   ;;  %v8686_v28 = vld [vmem:[#allocation19 + $0xa54] ss:$28 sps:$4 sm:$0xff]  }
 0x68f   :  { %6254 = vmatprep.subr.bf16.mxu0 %v8611_v29  ;;  %6377 = vmatprep.subr.bf16.mxu1 %v8614_v30 }
 0x692   :  { %6255 = vmatpush1.bf16.msra.mxu0 %v8609_v32  ;;  %6378 = vmatpush1.bf16.msra.mxu1 %v8612_v33 }
 0x693   :  { %6256 = vmatprep.subr.bf16.mxu0 %v8617_v34  ;;  %6379 = vmatprep.subr.bf16.mxu1 %v8620_v6  ;;  %v8681_v6 = vld [vmem:[#allocation19 + $0xa48] ss:$28 sps:$4 sm:$0xff]  }
 0x696   :  { %6257 = vmatpush1.bf16.msra.mxu0 %v8615_v35  ;;  %6380 = vmatpush1.bf16.msra.mxu1 %v8618_v36  ;;  %v8684_v35 = vld [vmem:[#allocation19 + $0xa50] ss:$28 sps:$4 sm:$0xff]  }
 0x697   :  { %6258 = vmatprep.subr.bf16.mxu0 %v8623_v37  ;;  %6381 = vmatprep.subr.bf16.mxu1 %v8626_v38  ;;  %v8689_v38 = vld [vmem:[#allocation19 + $0x14] ss:$28 sps:$4 sm:$0xff]  }
 0x69a   :  { %6259 = vmatpush1.bf16.msra.mxu0 %v8621_v39  ;;  %6382 = vmatpush1.bf16.msra.mxu1 %v8624_v40  ;;  %v8690_v39 = vld [vmem:[#allocation19 + $0x1d8] ss:$28 sps:$4 sm:$0xff]  }
 0x69b   :  { %6260 = vmatprep.subr.bf16.mxu0 %v8629_v41  ;;  %6383 = vmatprep.subr.bf16.mxu1 %v8632_v42  ;;  %v8687_v41 = vld [vmem:[#allocation19 + $0x10] ss:$28 sps:$4 sm:$0xff]   ;;  %v8691_v42 = vld [vmem:[#allocation19 + $0x18] ss:$28 sps:$4 sm:$0xff]  }
 0x69e   :  { %6261 = vmatpush1.bf16.msra.mxu0 %v8627_v43  ;;  %6384 = vmatpush1.bf16.msra.mxu1 %v8630_v17  ;;  %v8694_v17 = vld [vmem:[#allocation19 + $0x4c] ss:$28 sps:$4 sm:$0xff]  }
 0x69f   :  { %6262 = vmatprep.subr.bf16.mxu0 %v8635_v24  ;;  %6385 = vmatprep.subr.bf16.mxu1 %v8638_v44  ;;  %v8695_v24 = vld [vmem:[#allocation19 + $0x210] ss:$28 sps:$4 sm:$0xff]   ;;  %v8692_v44 = vld [vmem:[#allocation19 + $0x48] ss:$28 sps:$4 sm:$0xff]  }
 0x6a2   :  { %6263 = vmatpush1.bf16.msra.mxu0 %v8633_v45  ;;  %6386 = vmatpush1.bf16.msra.mxu1 %v8636_v47  ;;  %v8696_v45 = vld [vmem:[#allocation19 + $0x50] ss:$28 sps:$4 sm:$0xff]   ;;  %v8699_v47 = vld [vmem:[#allocation19 + $0x84] ss:$28 sps:$4 sm:$0xff]  }
 0x6a3   :  { %6264 = vmatprep.subr.bf16.mxu0 %v8641_v48  ;;  %6387 = vmatprep.subr.bf16.mxu1 %v8644_v49  ;;  %v8700_v48 = vld [vmem:[#allocation19 + $0x248] ss:$28 sps:$4 sm:$0xff]   ;;  %v8697_v49 = vld [vmem:[#allocation19 + $0x80] ss:$28 sps:$4 sm:$0xff]  }
 0x6a6   :  { %6265 = vmatpush1.bf16.msra.mxu0 %v8639_v50  ;;  %6388 = vmatpush1.bf16.msra.mxu1 %v8642_v51  ;;  %v8701_v50 = vld [vmem:[#allocation19 + $0x88] ss:$28 sps:$4 sm:$0xff]   ;;  %v8704_v51 = vld [vmem:[#allocation19 + $0xbc] ss:$28 sps:$4 sm:$0xff]  }
 0x6a7   :  { %6266 = vmatprep.subr.bf16.mxu0 %v8647_v52  ;;  %6389 = vmatprep.subr.bf16.mxu1 %v8650_v56  ;;  %v8705_v52 = vld [vmem:[#allocation19 + $0x280] ss:$28 sps:$4 sm:$0xff]   ;;  %v8702_v56 = vld [vmem:[#allocation19 + $0xb8] ss:$28 sps:$4 sm:$0xff]  }
 0x6aa   :  { %6267 = vmatpush1.bf16.msra.mxu0 %v8645_v59  ;;  %6390 = vmatpush1.bf16.msra.mxu1 %v8648_v60  ;;  %v8706_v59 = vld [vmem:[#allocation19 + $0xc0] ss:$28 sps:$4 sm:$0xff]   ;;  %v8709_v60 = vld [vmem:[#allocation19 + $0xf4] ss:$28 sps:$4 sm:$0xff]  }
 0x6ab   :  { %6268 = vmatprep.subr.bf16.mxu0 %v8653_v61  ;;  %6391 = vmatprep.subr.bf16.mxu1 %v8656_v62  ;;  %v8707_v61 = vld [vmem:[#allocation19 + $0xf0] ss:$28 sps:$4 sm:$0xff]   ;;  %v8711_v62 = vld [vmem:[#allocation19 + $0xf8] ss:$28 sps:$4 sm:$0xff]  }
 0x6ae   :  { %6269 = vmatpush1.bf16.msra.mxu0 %v8651_v63  ;;  %6392 = vmatpush1.bf16.msra.mxu1 %v8654_v1  ;;  %v8714_v63 = vld [vmem:[#allocation19 + $0x12c] ss:$28 sps:$4 sm:$0xff]  }
 0x6af   :  { %6270 = vmatprep.subr.bf16.mxu0 %v8659_v2  ;;  %6393 = vmatprep.subr.bf16.mxu1 %v8662_v4  ;;  %v8715_v1 = vld [vmem:[#allocation19 + $0x2f0] ss:$28 sps:$4 sm:$0xff]   ;;  %v8712_v2 = vld [vmem:[#allocation19 + $0x128] ss:$28 sps:$4 sm:$0xff]  }
 0x6b0   :  { %v8716_v4 = vld [vmem:[#allocation19 + $0x130] ss:$28 sps:$4 sm:$0xff]  }
 0x6b2   :  { %6271 = vmatpush1.bf16.msra.mxu0 %v8657_v5  ;;  %6394 = vmatpush1.bf16.msra.mxu1 %v8660_v8  ;;  %v8719_v5 = vld [vmem:[#allocation19 + $0x164] ss:$28 sps:$4 sm:$0xff]  }
 0x6b3   :  { %6272 = vmatprep.subr.bf16.mxu0 %v8665_v9  ;;  %6395 = vmatprep.subr.bf16.mxu1 %v8668_v10  ;;  %v8720_v8 = vld [vmem:[#allocation19 + $0x328] ss:$28 sps:$4 sm:$0xff]   ;;  %v8717_v9 = vld [vmem:[#allocation19 + $0x160] ss:$28 sps:$4 sm:$0xff]  }
 0x6b4   :  { %v8721_v10 = vld [vmem:[#allocation19 + $0x168] ss:$28 sps:$4 sm:$0xff]  }
 0x6b6   :  { %6273 = vmatpush1.bf16.msra.mxu0 %v8663_v18  ;;  %6396 = vmatpush1.bf16.msra.mxu1 %v8666_v11  ;;  %v8724_v18 = vld [vmem:[#allocation19 + $0x19c] ss:$28 sps:$4 sm:$0xff]  }
 0x6b7   :  { %6274 = vmatprep.subr.bf16.mxu0 %v8671_v12  ;;  %6397 = vmatprep.subr.bf16.mxu1 %v8674_v13  ;;  %v8725_v11 = vld [vmem:[#allocation19 + $0x360] ss:$28 sps:$4 sm:$0xff]   ;;  %v8722_v12 = vld [vmem:[#allocation19 + $0x198] ss:$28 sps:$4 sm:$0xff]  }
 0x6b8   :  { %v8726_v13 = vld [vmem:[#allocation19 + $0x1a0] ss:$28 sps:$4 sm:$0xff]  }
 0x6ba   :  { %6275 = vmatpush1.bf16.msra.mxu0 %v8669_v15  ;;  %6398 = vmatpush1.bf16.msra.mxu1 %v8672_v16  ;;  %v8729_v15 = vld [vmem:[#allocation19 + $0x1d4] ss:$28 sps:$4 sm:$0xff]  }
 0x6bb   :  { %6276 = vmatprep.subr.bf16.mxu0 %v8677_v46  ;;  %6399 = vmatprep.subr.bf16.mxu1 %v8680_v22  ;;  %v8730_v16 = vld [vmem:[#allocation19 + $0x558] ss:$28 sps:$4 sm:$0xff]   ;;  %v8727_v46 = vld [vmem:[#allocation19 + $0x1d0] ss:$28 sps:$4 sm:$0xff]  }
 0x6bc   :  { %v3998_v29 = vpop.f32.mrb[16].mxu1  ;;  %v8731_v22 = vld [vmem:[#allocation19 + $0x398] ss:$28 sps:$4 sm:$0xff]  }
 0x6bd   :  { %v7619_v30 = vadd.f32 %v3998_v29, %v2788_v31  ;;  %v4000_v32 = vpop.f32.mrb[17].mxu1  ;;  %v8734_v31 = vld [vmem:[#allocation19 + $0x20c] ss:$28 sps:$4 sm:$0xff]   ;;  %v8737_v29 = vld [vmem:[#allocation19 + $0x240] ss:$28 sps:$4 sm:$0xff]  }
 0x6be   :  { %v7620_v33 = vadd.f32 %v4000_v32, %v2792_v26  ;;  %6277 = vmatpush1.bf16.msra.mxu0 %v8675_v23  ;;  %6400 = vmatpush1.bf16.msra.mxu1 %v8678_v25  ;;  %v4002_v34 = vpop.f32.mrb[18].mxu1  ;;  %v8735_v23 = vld [vmem:[#allocation19 + $0x590] ss:$28 sps:$4 sm:$0xff]   ;;  %v8732_v25 = vld [vmem:[#allocation19 + $0x208] ss:$28 sps:$4 sm:$0xff]  }
 0x6bf   :  { %v4009_v36 = vmax.f32 %v7619_v30, 0.0  ;;  %v4003_v37 = vpop.f32.mrb[19].mxu1  ;;  %6278 = vmatprep.subr.bf16.mxu0 %v8683_v27  ;;  %6401 = vmatprep.subr.bf16.mxu1 %v8686_v28  ;;  %v8736_v26 = vld [vmem:[#allocation19 + $0x3d0] ss:$28 sps:$4 sm:$0xff]   ;;  %v8739_v27 = vld [vmem:[#allocation19 + $0x244] ss:$28 sps:$4 sm:$0xff]  }
 0x6c0   :  { %v4010_v21 = vmax.f32 %v7620_v33, 0.0  ;;  %v8740_v28 = vld [vmem:[#allocation19 + $0x5c8] ss:$28 sps:$4 sm:$0xff]   ;;  %v8744_v32 = vld [vmem:[#allocation19 + $0x27c] ss:$28 sps:$4 sm:$0xff]  }
 0x6c1   :  { %v9554_v43 = vpack.c.bf16 %v4009_v36, %v4009_v36  ;;  %v8741_v30 = vld [vmem:[#allocation19 + $0x408] ss:$28 sps:$4 sm:$0xff]   ;;  %v8745_v33 = vld [vmem:[#allocation19 + $0x600] ss:$28 sps:$4 sm:$0xff]   ;;  %v8742_v34 = vld [vmem:[#allocation19 + $0x278] ss:$28 sps:$4 sm:$0xff]  }
 0x6c2   :  { %v9552_v40 = vpack.c.bf16 %v4010_v21, %v4010_v21  ;;  %6279 = vmatpush1.bf16.msra.mxu0 %v8681_v6  ;;  %6402 = vmatpush1.bf16.msra.mxu1 %v8684_v35  ;;  %v8746_v6 = vld [vmem:[#allocation19 + $0x440] ss:$28 sps:$4 sm:$0xff]   ;;  %v8749_v35 = vld [vmem:[#allocation19 + $0x2b4] ss:$28 sps:$4 sm:$0xff]  }
 0x6c3   :  { %6412 = vmatprep.subr.bf16.mxu0 %v8689_v38  ;;  %7545 = vmatprep.subr.bf16.mxu1 %v8690_v39  ;;  %v8750_v36 = vld [vmem:[#allocation19 + $0x638] ss:$28 sps:$4 sm:$0xff]   ;;  %v8747_v37 = vld [vmem:[#allocation19 + $0x2b0] ss:$28 sps:$4 sm:$0xff]  }
 0x6c4   :  { %6280 = vmatprep.mubr.bf16.mxu0 %v9552_v40  ;;  %6403 = vmatprep.mubr.bf16.mxu1 %v9552_v40  ;;  %v8751_v38 = vld [vmem:[#allocation19 + $0x478] ss:$28 sps:$4 sm:$0xff]   ;;  %v8754_v39 = vld [vmem:[#allocation19 + $0x2ec] ss:$28 sps:$4 sm:$0xff]  }
 0x6c5   :  { %6281 = vmatmul.mubr.bf16.vlgmr.msra.gmra.mrb[20].mxu0 %v9554_v43  ;;  %6404 = vmatmul.mubr.bf16.vlgmr.msra.gmra.mrb[20].mxu1 %v9554_v43  ;;  %v8755_v21 = vld [vmem:[#allocation19 + $0x670] ss:$28 sps:$4 sm:$0xff]  }
 0x6c6   :  { %6413 = vmatpush1.bf16.msra.mxu0 %v8687_v41  ;;  %7546 = vmatpush3.bf16.msra.mxu1 %v8691_v42  ;;  %v8752_v41 = vld [vmem:[#allocation19 + $0x2e8] ss:$28 sps:$4 sm:$0xff]   ;;  %v8756_v42 = vld [vmem:[#allocation19 + $0x4b0] ss:$28 sps:$4 sm:$0xff]  }
 0x6c7   :  { %6444 = vmatprep.mubr.bf16.mxu0 %v9525_v0  ;;  %6567 = vmatprep.mubr.bf16.mxu1 %v9525_v0  ;;  %v8710_v0 = vld [vmem:[#allocation19 + $0x2b8] ss:$28 sps:$4 sm:$0xff]  }
 0x6c8   :  { %6414 = vmatprep.subr.bf16.mxu0 %v8694_v17  ;;  %7547 = vmatprep.subr.bf16.mxu1 %v8695_v24  ;;  %v8759_v17 = vld [vmem:[#allocation19 + $0x324] ss:$28 sps:$4 sm:$0xff]  }
 0x6c9   :  { %v8760_v24 = vld [vmem:[#allocation19 + $0x6a8] ss:$28 sps:$4 sm:$0xff]  }
 0x6ca   :  { %6415 = vmatpush1.bf16.msra.mxu0 %v8692_v44  ;;  %7548 = vmatpush3.bf16.msra.mxu1 %v8696_v45  ;;  %v8757_v44 = vld [vmem:[#allocation19 + $0x320] ss:$28 sps:$4 sm:$0xff]   ;;  %v8761_v45 = vld [vmem:[#allocation19 + $0x4e8] ss:$28 sps:$4 sm:$0xff]  }
 0x6cb   :  { %6416 = vmatprep.subr.bf16.mxu0 %v8699_v47  ;;  %7549 = vmatprep.subr.bf16.mxu1 %v8700_v48  ;;  %v8764_v47 = vld [vmem:[#allocation19 + $0x35c] ss:$28 sps:$4 sm:$0xff]  }
 0x6cc   :  { %v8765_v48 = vld [vmem:[#allocation19 + $0x6e0] ss:$28 sps:$4 sm:$0xff]  }
 0x6ce   :  { %6417 = vmatpush1.bf16.msra.mxu0 %v8697_v49  ;;  %7550 = vmatpush3.bf16.msra.mxu1 %v8701_v50  ;;  %v8762_v49 = vld [vmem:[#allocation19 + $0x358] ss:$28 sps:$4 sm:$0xff]   ;;  %v8766_v50 = vld [vmem:[#allocation19 + $0x520] ss:$28 sps:$4 sm:$0xff]  }
 0x6cf   :  { %6418 = vmatprep.subr.bf16.mxu0 %v8704_v51  ;;  %7551 = vmatprep.subr.bf16.mxu1 %v8705_v52  ;;  %v8769_v51 = vld [vmem:[#allocation19 + $0x394] ss:$28 sps:$4 sm:$0xff]  }
 0x6d0   :  { %v8770_v52 = vld [vmem:[#allocation19 + $0x8d8] ss:$28 sps:$4 sm:$0xff]  }
 0x6d2   :  { %6419 = vmatpush1.bf16.msra.mxu0 %v8702_v56  ;;  %7552 = vmatpush3.bf16.msra.mxu1 %v8706_v59  ;;  %v8767_v56 = vld [vmem:[#allocation19 + $0x390] ss:$28 sps:$4 sm:$0xff]   ;;  %v8771_v59 = vld [vmem:[#allocation19 + $0x718] ss:$28 sps:$4 sm:$0xff]  }
 0x6d3   :  { %6420 = vmatprep.subr.bf16.mxu0 %v8709_v60  ;;  %7553 = vmatprep.subr.bf16.mxu1 %v8710_v0  ;;  %v8774_v60 = vld [vmem:[#allocation19 + $0x3cc] ss:$28 sps:$4 sm:$0xff]  }
 0x6d4   :  { %v8775_v0 = vld [vmem:[#allocation19 + $0x910] ss:$28 sps:$4 sm:$0xff]  }
 0x6d6   :  { %6421 = vmatpush1.bf16.msra.mxu0 %v8707_v61  ;;  %7554 = vmatpush3.bf16.msra.mxu1 %v8711_v62  ;;  %v8772_v61 = vld [vmem:[#allocation19 + $0x3c8] ss:$28 sps:$4 sm:$0xff]   ;;  %v8776_v62 = vld [vmem:[#allocation19 + $0x750] ss:$28 sps:$4 sm:$0xff]  }
 0x6d7   :  { %6422 = vmatprep.subr.bf16.mxu0 %v8714_v63  ;;  %7555 = vmatprep.subr.bf16.mxu1 %v8715_v1  ;;  %v8779_v63 = vld [vmem:[#allocation19 + $0x404] ss:$28 sps:$4 sm:$0xff]  }
 0x6d8   :  { %v8780_v1 = vld [vmem:[#allocation19 + $0x948] ss:$28 sps:$4 sm:$0xff]  }
 0x6da   :  { %6423 = vmatpush1.bf16.msra.mxu0 %v8712_v2  ;;  %7556 = vmatpush3.bf16.msra.mxu1 %v8716_v4  ;;  %v8777_v2 = vld [vmem:[#allocation19 + $0x400] ss:$28 sps:$4 sm:$0xff]   ;;  %v8781_v4 = vld [vmem:[#allocation19 + $0x788] ss:$28 sps:$4 sm:$0xff]  }
 0x6db   :  { %6424 = vmatprep.subr.bf16.mxu0 %v8719_v5  ;;  %7557 = vmatprep.subr.bf16.mxu1 %v8720_v8  ;;  %v8785_v5 = vld [vmem:[#allocation19 + $0x980] ss:$28 sps:$4 sm:$0xff]   ;;  %v8782_v8 = vld [vmem:[#allocation19 + $0x438] ss:$28 sps:$4 sm:$0xff]  }
 0x6de   :  { %6425 = vmatpush1.bf16.msra.mxu0 %v8717_v9  ;;  %7558 = vmatpush3.bf16.msra.mxu1 %v8721_v10  ;;  %v8789_v9 = vld [vmem:[#allocation19 + $0x474] ss:$28 sps:$4 sm:$0xff]  }
 0x6df   :  { %6426 = vmatprep.subr.bf16.mxu0 %v8724_v18  ;;  %7559 = vmatprep.subr.bf16.mxu1 %v8725_v11  ;;  %v8790_v10 = vld [vmem:[#allocation19 + $0x9b8] ss:$28 sps:$4 sm:$0xff]   ;;  %v8787_v18 = vld [vmem:[#allocation19 + $0x470] ss:$28 sps:$4 sm:$0xff]  }
 0x6e0   :  { %v8791_v11 = vld [vmem:[#allocation19 + $0x7f8] ss:$28 sps:$4 sm:$0xff]  }
 0x6e2   :  { %6427 = vmatpush1.bf16.msra.mxu0 %v8722_v12  ;;  %7560 = vmatpush3.bf16.msra.mxu1 %v8726_v13  ;;  %v8794_v12 = vld [vmem:[#allocation19 + $0x4ac] ss:$28 sps:$4 sm:$0xff]  }
 0x6e3   :  { %6428 = vmatprep.subr.bf16.mxu0 %v8729_v15  ;;  %7567 = vmatprep.subr.bf16.mxu1 %v8730_v16  ;;  %v8795_v13 = vld [vmem:[#allocation19 + $0x9f0] ss:$28 sps:$4 sm:$0xff]   ;;  %v8792_v15 = vld [vmem:[#allocation19 + $0x4a8] ss:$28 sps:$4 sm:$0xff]  }
 0x6e4   :  { %v8796_v16 = vld [vmem:[#allocation19 + $0x830] ss:$28 sps:$4 sm:$0xff]  }
 0x6e5   :  { %6568 = vmatmul.mubr.bf16.vlgmr.msra.gmra.mrb[24].mxu1 %v9527_v3 }
 0x6e6   :  { %6429 = vmatpush1.bf16.msra.mxu0 %v8727_v46  ;;  %7568 = vmatpush3.bf16.msra.mxu1 %v8731_v22  ;;  %v8799_v46 = vld [vmem:[#allocation19 + $0x4e4] ss:$28 sps:$4 sm:$0xff]  }
 0x6e7   :  { %6607 = vmatprep.mubr.bf16.mxu1 %v9531_v7  ;;  %6430 = vmatprep.subr.bf16.mxu0 %v8734_v31  ;;  %v8800_v22 = vld [vmem:[#allocation19 + $0xa28] ss:$28 sps:$4 sm:$0xff]   ;;  %v8797_v31 = vld [vmem:[#allocation19 + $0x4e0] ss:$28 sps:$4 sm:$0xff]  }
 0x6e8   :  { %7569 = vmatprep.subr.bf16.mxu1 %v8735_v23  ;;  %v8801_v23 = vld [vmem:[#allocation19 + $0x868] ss:$28 sps:$4 sm:$0xff]  }
 0x6ea   :  { %6431 = vmatpush1.bf16.msra.mxu0 %v8732_v25  ;;  %7570 = vmatpush3.bf16.msra.mxu1 %v8736_v26  ;;  %v8804_v25 = vld [vmem:[#allocation19 + $0x51c] ss:$28 sps:$4 sm:$0xff]  }
 0x6eb   :  { %6432 = vmatprep.subr.bf16.mxu0 %v8739_v27  ;;  %7571 = vmatprep.subr.bf16.mxu1 %v8740_v28  ;;  %v8805_v26 = vld [vmem:[#allocation19 + $0xa60] ss:$28 sps:$4 sm:$0xff]   ;;  %v8802_v27 = vld [vmem:[#allocation19 + $0x518] ss:$28 sps:$4 sm:$0xff]  }
 0x6ec   :  { %v8806_v28 = vld [vmem:[#allocation19 + $0x8a0] ss:$28 sps:$4 sm:$0xff]  }
 0x6ee   :  { %6433 = vmatpush1.bf16.msra.mxu0 %v8737_v29  ;;  %7572 = vmatpush3.bf16.msra.mxu1 %v8741_v30  ;;  %v8809_v29 = vld [vmem:[#allocation19 + $0x554] ss:$28 sps:$4 sm:$0xff]  }
 0x6ef   :  { %6434 = vmatprep.subr.bf16.mxu0 %v8744_v32  ;;  %7573 = vmatprep.subr.bf16.mxu1 %v8745_v33  ;;  %v8807_v30 = vld [vmem:[#allocation19 + $0x550] ss:$28 sps:$4 sm:$0xff]   ;;  %v8810_v33 = vld [vmem:[#allocation19 + $0x588] ss:$28 sps:$4 sm:$0xff]  }
 0x6f0   :  { %v8812_v32 = vld [vmem:[#allocation19 + $0x58c] ss:$28 sps:$4 sm:$0xff]  }
 0x6f2   :  { %6435 = vmatpush1.bf16.msra.mxu0 %v8742_v34  ;;  %7574 = vmatpush3.bf16.msra.mxu1 %v8746_v6  ;;  %v8815_v34 = vld [vmem:[#allocation19 + $0x5c4] ss:$28 sps:$4 sm:$0xff]  }
 0x6f3   :  { %6436 = vmatprep.subr.bf16.mxu0 %v8749_v35  ;;  %7575 = vmatprep.subr.bf16.mxu1 %v8750_v36  ;;  %v8813_v6 = vld [vmem:[#allocation19 + $0x5c0] ss:$28 sps:$4 sm:$0xff]   ;;  %v8816_v36 = vld [vmem:[#allocation19 + $0x5f8] ss:$28 sps:$4 sm:$0xff]  }
 0x6f4   :  { %v8818_v35 = vld [vmem:[#allocation19 + $0x5fc] ss:$28 sps:$4 sm:$0xff]  }
 0x6f6   :  { %6437 = vmatpush1.bf16.msra.mxu0 %v8747_v37  ;;  %7576 = vmatpush3.bf16.msra.mxu1 %v8751_v38  ;;  %v8821_v37 = vld [vmem:[#allocation19 + $0x634] ss:$28 sps:$4 sm:$0xff]  }
 0x6f7   :  { %6438 = vmatprep.subr.bf16.mxu0 %v8754_v39  ;;  %7577 = vmatprep.subr.bf16.mxu1 %v8755_v21  ;;  %v8819_v38 = vld [vmem:[#allocation19 + $0x630] ss:$28 sps:$4 sm:$0xff]   ;;  %v8822_v21 = vld [vmem:[#allocation19 + $0x668] ss:$28 sps:$4 sm:$0xff]  }
 0x6f8   :  { %v8824_v39 = vld [vmem:[#allocation19 + $0x66c] ss:$28 sps:$4 sm:$0xff]  }
 0x6fa   :  { %6439 = vmatpush1.bf16.msra.mxu0 %v8752_v41  ;;  %7578 = vmatpush3.bf16.msra.mxu1 %v8756_v42  ;;  %v8827_v41 = vld [vmem:[#allocation19 + $0x6a4] ss:$28 sps:$4 sm:$0xff]  }
 0x6fb   :  { %6440 = vmatprep.subr.bf16.mxu0 %v8759_v17  ;;  %7579 = vmatprep.subr.bf16.mxu1 %v8760_v24  ;;  %v8825_v42 = vld [vmem:[#allocation19 + $0x6a0] ss:$28 sps:$4 sm:$0xff]   ;;  %v8828_v24 = vld [vmem:[#allocation19 + $0x6d8] ss:$28 sps:$4 sm:$0xff]  }
 0x6fc   :  { %v8830_v17 = vld [vmem:[#allocation19 + $0x6dc] ss:$28 sps:$4 sm:$0xff]  }
 0x6fe   :  { %6441 = vmatpush1.bf16.msra.mxu0 %v8757_v44  ;;  %7580 = vmatpush3.bf16.msra.mxu1 %v8761_v45  ;;  %v8833_v44 = vld [vmem:[#allocation19 + $0x714] ss:$28 sps:$4 sm:$0xff]  }
 0x6ff   :  { %6442 = vmatprep.subr.bf16.mxu0 %v8764_v47  ;;  %7581 = vmatprep.subr.bf16.mxu1 %v8765_v48  ;;  %v8831_v45 = vld [vmem:[#allocation19 + $0x710] ss:$28 sps:$4 sm:$0xff]   ;;  %v8834_v48 = vld [vmem:[#allocation19 + $0x748] ss:$28 sps:$4 sm:$0xff]  }
 0x700   :  { %v8836_v47 = vld [vmem:[#allocation19 + $0x74c] ss:$28 sps:$4 sm:$0xff]  }
 0x702   :  { %6443 = vmatpush1.bf16.msra.mxu0 %v8762_v49  ;;  %7582 = vmatpush3.bf16.msra.mxu1 %v8766_v50  ;;  %v8839_v49 = vld [vmem:[#allocation19 + $0x784] ss:$28 sps:$4 sm:$0xff]  }
 0x703   :  { %6453 = vmatprep.subr.bf16.mxu0 %v8769_v51  ;;  %7589 = vmatprep.subr.bf16.mxu1 %v8770_v52  ;;  %v8837_v50 = vld [vmem:[#allocation19 + $0x780] ss:$28 sps:$4 sm:$0xff]   ;;  %v8840_v52 = vld [vmem:[#allocation19 + $0x7b8] ss:$28 sps:$4 sm:$0xff]  }
 0x704   :  { %v8842_v51 = vld [vmem:[#allocation19 + $0x7bc] ss:$28 sps:$4 sm:$0xff]  }
 0x705   :  { %6445 = vmatmul.mubr.bf16.vlgmr.msra.gmra.mrb[24].mxu0 %v9527_v3  ;;  %6608 = vmatmul.mubr.bf16.vlgmr.msra.gmra.mrb[28].mxu1 %v9540_v20  ;;  %v8784_v3 = vld [vmem:[#allocation19 + $0x43c] ss:$28 sps:$4 sm:$0xff]  }
 0x706   :  { %6454 = vmatpush1.bf16.msra.mxu0 %v8767_v56  ;;  %6485 = vmatprep.mubr.bf16.mxu0 %v9531_v7  ;;  %v8786_v7 = vld [vmem:[#allocation19 + $0x7c0] ss:$28 sps:$4 sm:$0xff]   ;;  %v8845_v56 = vld [vmem:[#allocation19 + $0x7f4] ss:$28 sps:$4 sm:$0xff]  }
 0x707   :  { %7590 = vmatpush3.bf16.msra.mxu1 %v8771_v59  ;;  %6647 = vmatprep.mubr.bf16.mxu1 %v9552_v40  ;;  %v8843_v59 = vld [vmem:[#allocation19 + $0x7f0] ss:$28 sps:$4 sm:$0xff]  }
 0x708   :  { %6455 = vmatprep.subr.bf16.mxu0 %v8774_v60  ;;  %7591 = vmatprep.subr.bf16.mxu1 %v8775_v0  ;;  %v8848_v60 = vld [vmem:[#allocation19 + $0x82c] ss:$28 sps:$4 sm:$0xff]   ;;  %v8851_v0 = vld [vmem:[#allocation19 + $0x864] ss:$28 sps:$4 sm:$0xff]  }
 0x70a   :  { %6456 = vmatpush1.bf16.msra.mxu0 %v8772_v61  ;;  %v8854_v61 = vld [vmem:[#allocation19 + $0x89c] ss:$28 sps:$4 sm:$0xff]  }
 0x70b   :  { %7592 = vmatpush3.bf16.msra.mxu1 %v8776_v62  ;;  %6457 = vmatprep.subr.bf16.mxu0 %v8779_v63  ;;  %v8852_v62 = vld [vmem:[#allocation19 + $0x898] ss:$28 sps:$4 sm:$0xff]  }
 0x70c   :  { %7593 = vmatprep.subr.bf16.mxu1 %v8780_v1  ;;  %v8857_v63 = vld [vmem:[#allocation19 + $0x8d4] ss:$28 sps:$4 sm:$0xff]  }
 0x70d   :  { %v8855_v1 = vld [vmem:[#allocation19 + $0x8d0] ss:$28 sps:$4 sm:$0xff]  }
 0x70e   :  { %6458 = vmatpush1.bf16.msra.mxu0 %v8777_v2  ;;  %v8860_v2 = vld [vmem:[#allocation19 + $0x90c] ss:$28 sps:$4 sm:$0xff]  }
 0x70f   :  { %7594 = vmatpush3.bf16.msra.mxu1 %v8781_v4  ;;  %6459 = vmatprep.subr.bf16.mxu0 %v8784_v3  ;;  %v8858_v4 = vld [vmem:[#allocation19 + $0x908] ss:$28 sps:$4 sm:$0xff]  }
 0x710   :  { %7595 = vmatprep.subr.bf16.mxu1 %v8785_v5  ;;  %v8863_v3 = vld [vmem:[#allocation19 + $0x944] ss:$28 sps:$4 sm:$0xff]  }
 0x711   :  { %v8861_v5 = vld [vmem:[#allocation19 + $0x940] ss:$28 sps:$4 sm:$0xff]  }
 0x712   :  { %6460 = vmatpush1.bf16.msra.mxu0 %v8782_v8  ;;  %v8866_v8 = vld [vmem:[#allocation19 + $0x97c] ss:$28 sps:$4 sm:$0xff]  }
 0x713   :  { %7596 = vmatpush3.bf16.msra.mxu1 %v8786_v7  ;;  %6461 = vmatprep.subr.bf16.mxu0 %v8789_v9  ;;  %v8864_v7 = vld [vmem:[#allocation19 + $0x978] ss:$28 sps:$4 sm:$0xff]  }
 0x714   :  { %7597 = vmatprep.subr.bf16.mxu1 %v8790_v10  ;;  %v8869_v9 = vld [vmem:[#allocation19 + $0x9b4] ss:$28 sps:$4 sm:$0xff]  }
 0x715   :  { %v8867_v10 = vld [vmem:[#allocation19 + $0x9b0] ss:$28 sps:$4 sm:$0xff]  }
 0x716   :  { %6462 = vmatpush1.bf16.msra.mxu0 %v8787_v18  ;;  %v8872_v18 = vld [vmem:[#allocation19 + $0x9ec] ss:$28 sps:$4 sm:$0xff]  }
 0x717   :  { %7598 = vmatpush3.bf16.msra.mxu1 %v8791_v11  ;;  %6463 = vmatprep.subr.bf16.mxu0 %v8794_v12  ;;  %v8870_v11 = vld [vmem:[#allocation19 + $0x9e8] ss:$28 sps:$4 sm:$0xff]  }
 0x718   :  { %7599 = vmatprep.subr.bf16.mxu1 %v8795_v13  ;;  %v8875_v12 = vld [vmem:[#allocation19 + $0xa24] ss:$28 sps:$4 sm:$0xff]  }
 0x719   :  { %v8873_v13 = vld [vmem:[#allocation19 + $0xa20] ss:$28 sps:$4 sm:$0xff]  }
 0x71a   :  { %6464 = vmatpush1.bf16.msra.mxu0 %v8792_v15  ;;  %v8878_v15 = vld [vmem:[#allocation19 + $0xa5c] ss:$28 sps:$4 sm:$0xff]  }
 0x71b   :  { %7600 = vmatpush3.bf16.msra.mxu1 %v8796_v16  ;;  %6465 = vmatprep.subr.bf16.mxu0 %v8799_v46  ;;  %v8876_v16 = vld [vmem:[#allocation19 + $0xa58] ss:$28 sps:$4 sm:$0xff]   ;;  %v4401_v46 = vld [vmem:[#allocation20] sm:$0xff] }
 0x71c   :  { %7601 = vmatprep.subr.bf16.mxu1 %v8800_v22  ;;  %v4406_v22 = vrot.slane %v4401_v46, %v9465_v54 }
 0x71e   :  { %6466 = vmatpush1.bf16.msra.mxu0 %v8797_v31  ;;  %v4414_v31 = vrot.slane %v4401_v46, %v9468_v55 }
 0x71f   :  { %7602 = vmatpush3.bf16.msra.mxu1 %v8801_v23  ;;  %6467 = vmatprep.subr.bf16.mxu0 %v8804_v25  ;;  %v4410_v23 = vrot.slane %v4401_v46, %v9471_v57  ;;  %v4418_v25 = vrot.slane %v4401_v46, %v9474_v58 }
 0x720   :  { %7603 = vmatprep.subr.bf16.mxu1 %v8805_v26 }
 0x722   :  { %6468 = vmatpush1.bf16.msra.mxu0 %v8802_v27 }
 0x723   :  { %7604 = vmatpush3.bf16.msra.mxu1 %v8806_v28  ;;  %6469 = vmatprep.subr.bf16.mxu0 %v8809_v29 }
 0x726   :  { %6648 = vmatmul.mubr.bf16.vlgmr.msra.gmra.mrb[32].mxu1 %v9554_v43  ;;  %6470 = vmatpush1.bf16.msra.mxu0 %v8807_v30 }
 0x727   :  { %6471 = vmatprep.subr.bf16.mxu0 %v8812_v32 }
 0x72a   :  { %6472 = vmatpush1.bf16.msra.mxu0 %v8810_v33 }
 0x72b   :  { %6473 = vmatprep.subr.bf16.mxu0 %v8815_v34 }
 0x72e   :  { %6474 = vmatpush1.bf16.msra.mxu0 %v8813_v6 }
 0x72f   :  { %6475 = vmatprep.subr.bf16.mxu0 %v8818_v35 }
 0x732   :  { %6476 = vmatpush1.bf16.msra.mxu0 %v8816_v36 }
 0x733   :  { %6477 = vmatprep.subr.bf16.mxu0 %v8821_v37 }
 0x736   :  { %6478 = vmatpush1.bf16.msra.mxu0 %v8819_v38 }
 0x737   :  { %6479 = vmatprep.subr.bf16.mxu0 %v8824_v39 }
 0x73a   :  { %6480 = vmatpush1.bf16.msra.mxu0 %v8822_v21 }
 0x73b   :  { %6481 = vmatprep.subr.bf16.mxu0 %v8827_v41 }
 0x73e   :  { %6482 = vmatpush1.bf16.msra.mxu0 %v8825_v42  ;;  %v4429_v42 = vsub.s32 6, %v9462_v53 }
 0x73f   :  { %6483 = vmatprep.subr.bf16.mxu0 %v8830_v17 }
 0x740   :  { %v4430_v17 = vrot.slane %v4401_v46, %v4429_v42 }
 0x742   :  { %6484 = vmatpush1.bf16.msra.mxu0 %v8828_v24 }
 0x743   :  { %6494 = vmatprep.subr.bf16.mxu0 %v8833_v44 }
 0x745   :  { %6486 = vmatmul.mubr.bf16.vlgmr.msra.gmra.mrb[24].mxu0 %v9540_v20  ;;  %v8846_v20 = vld [vmem:[#allocation19 + $0x828] ss:$28 sps:$4 sm:$0xff]  }
 0x746   :  { %6495 = vmatpush1.bf16.msra.mxu0 %v8831_v45  ;;  %6526 = vmatprep.mubr.bf16.mxu0 %v9552_v40  ;;  %v8849_v40 = vld [vmem:[#allocation19 + $0x860] ss:$28 sps:$4 sm:$0xff]  }
 0x747   :  { %6496 = vmatprep.subr.bf16.mxu0 %v8836_v47 }
 0x74a   :  { %6497 = vmatpush1.bf16.msra.mxu0 %v8834_v48 }
 0x74b   :  { %6498 = vmatprep.subr.bf16.mxu0 %v8839_v49 }
 0x74e   :  { %6499 = vmatpush1.bf16.msra.mxu0 %v8837_v50 }
 0x74f   :  { %6500 = vmatprep.subr.bf16.mxu0 %v8842_v51 }
 0x752   :  { %6501 = vmatpush1.bf16.msra.mxu0 %v8840_v52 }
 0x753   :  { %6502 = vmatprep.subr.bf16.mxu0 %v8845_v56 }
 0x756   :  { %6503 = vmatpush1.bf16.msra.mxu0 %v8843_v59 }
 0x757   :  { %6504 = vmatprep.subr.bf16.mxu0 %v8848_v60 }
 0x75a   :  { %6505 = vmatpush1.bf16.msra.mxu0 %v8846_v20 }
 0x75b   :  { %6506 = vmatprep.subr.bf16.mxu0 %v8851_v0 }
 0x75e   :  { %6507 = vmatpush1.bf16.msra.mxu0 %v8849_v40 }
 0x75f   :  { %6508 = vmatprep.subr.bf16.mxu0 %v8854_v61 }
 0x762   :  { %6509 = vmatpush1.bf16.msra.mxu0 %v8852_v62 }
 0x763   :  { %6510 = vmatprep.subr.bf16.mxu0 %v8857_v63 }
 0x766   :  { %6511 = vmatpush1.bf16.msra.mxu0 %v8855_v1 }
 0x767   :  { %6512 = vmatprep.subr.bf16.mxu0 %v8860_v2 }
 0x76a   :  { %6513 = vmatpush1.bf16.msra.mxu0 %v8858_v4 }
 0x76b   :  { %6514 = vmatprep.subr.bf16.mxu0 %v8863_v3 }
 0x76e   :  { %6515 = vmatpush1.bf16.msra.mxu0 %v8861_v5 }
 0x76f   :  { %6516 = vmatprep.subr.bf16.mxu0 %v8866_v8 }
 0x772   :  { %6517 = vmatpush1.bf16.msra.mxu0 %v8864_v7 }
 0x773   :  { %6518 = vmatprep.subr.bf16.mxu0 %v8869_v9 }
 0x776   :  { %6519 = vmatpush1.bf16.msra.mxu0 %v8867_v10 }
 0x777   :  { %6520 = vmatprep.subr.bf16.mxu0 %v8872_v18 }
 0x77a   :  { %6521 = vmatpush1.bf16.msra.mxu0 %v8870_v11 }
 0x77b   :  { %6522 = vmatprep.subr.bf16.mxu0 %v8875_v12 }
 0x77e   :  { %6523 = vmatpush1.bf16.msra.mxu0 %v8873_v13 }
 0x77f   :  { %6524 = vmatprep.subr.bf16.mxu0 %v8878_v15 }
 0x782   :  { %6525 = vmatpush1.bf16.msra.mxu0 %v8876_v16 }
 0x785   :  { %6527 = vmatmul.mubr.bf16.vlgmr.msra.gmra.mrb[24].mxu0 %v9554_v43 }
 0x798   :  { %v6282_v26 = vpop.f32.mrb[20].mxu0  ;;  %v6405_v27 = vpop.f32.mrb[20].mxu1 }
 0x799   :  { %v7621_v28 = vadd.f32 %v6282_v26, %v4406_v22  ;;  %v7623_v29 = vadd.f32 %v6405_v27, %v4414_v31  ;;  %v6284_v30 = vpop.f32.mrb[21].mxu0  ;;  %v6407_v32 = vpop.f32.mrb[21].mxu1 }
 0x79a   :  { %v7622_v33 = vadd.f32 %v6284_v30, %v4410_v23  ;;  %v7624_v34 = vadd.f32 %v6407_v32, %v4418_v25  ;;  %v6286_v6 = vpop.f32.mrb[22].mxu0  ;;  %v6409_v35 = vpop.f32.mrb[22].mxu1 }
 0x79b   :  { %v6655_v43 = vmax.f32 %v7621_v28, 0.0  ;;  %v6657_v36 = vmax.f32 %v7623_v29, 0.0  ;;  %v6287_v37 = vpop.f32.mrb[23].mxu0  ;;  %v6410_v54 = vpop.f32.mrb[23].mxu1 }
 0x79c   :  { %v6656_v38 = vmax.f32 %v7622_v33, 0.0  ;;  %v6658_v55 = vmax.f32 %v7624_v34, 0.0 }
 0x79d   :  { %6662 = vst [vmem:[%s9628_s14] sm:$0xff] %v6655_v43  ;;  %6664 = vst [vmem:[%s9628_s14 + $0x10] sm:$0xff] %v6657_v36 }
 0x79e   :  { %6663 = vst [vmem:[%s9628_s14 + $0x8] sm:$0xff] %v6656_v38  ;;  %6665 = vst [vmem:[%s9628_s14 + $0x18] sm:$0xff] %v6658_v55 }
 0x7b8   :  { %v7561_v57 = vpop.f32.mrb[24].mxu1 }
 0x7b9   :  { %v7562_v58 = vpop.f32.mrb[25].mxu1 }
 0x7ba   :  { %v7563_v39 = vadd.f32 %v7562_v58, %v7561_v57  ;;  %v7564_v21 = vpop.f32.mrb[26].mxu1 }
 0x7bb   :  { %v7565_v41 = vpop.f32.mrb[27].mxu1 }
 0x7bc   :  { %v6570_v45 = vadd.f32 %v7563_v39, %v4430_v17 }
 0x7d8   :  { %v7583_v24 = vpop.f32.mrb[28].mxu1 }
 0x7d9   :  { %v7584_v44 = vpop.f32.mrb[29].mxu1 }
 0x7da   :  { %v7585_v47 = vadd.f32 %v7584_v44, %v7583_v24  ;;  %v7586_v48 = vpop.f32.mrb[30].mxu1 }
 0x7db   :  { %v7587_v49 = vpop.f32.mrb[31].mxu1 }
 0x7dc   :  { %v6610_v50 = vadd.f32 %v7585_v47, %v6570_v45 }
 0x7dd   :  { %9154 = shalt.err (!%p9151_p0)
}
 0x7de   :  { %s9194_s5 = smov [#allocation22]   ;;  %v4422_v40 = vrot.slane %v4401_v46, %v2787_v14  ;;  %v4426_v61 = vrot.slane %v4401_v46, %v2791_v19 }
 0x7df   :  { %6678 = dma.smem_to_hbm %s9194_s5, 16, %s9629_s15, [#allocation4]  }
 0x7f9   :  { %v7605_v51 = vpop.f32.mrb[32].mxu1 }
 0x7fa   :  { %v7606_v52 = vpop.f32.mrb[33].mxu1 }
 0x7fb   :  { %v7607_v56 = vadd.f32 %v7606_v52, %v7605_v51  ;;  %v7608_v59 = vpop.f32.mrb[34].mxu1 }
 0x7fc   :  { %v7609_v60 = vpop.f32.mrb[35].mxu1 }
 0x7fd   :  { %v6650_v20 = vadd.f32 %v7607_v56, %v6610_v50 }
 0x7ff   :  { %v6661_v0 = vmax.f32 %v6650_v20, 0.0 }
 0x801   :  { %6668 = vst [vmem:[%s9628_s14 + $0x30] sm:$0xff] %v6661_v0 }
 0x858   :  { %v6528_v62 = vpop.f32.mrb[24].mxu0 }
 0x859   :  { %v7625_v63 = vadd.f32 %v6528_v62, %v4422_v40  ;;  %v6530_v1 = vpop.f32.mrb[25].mxu0 }
 0x85a   :  { %v7626_v2 = vadd.f32 %v6530_v1, %v4426_v61  ;;  %v6532_v4 = vpop.f32.mrb[26].mxu0 }
 0x85b   :  { %v6659_v3 = vmax.f32 %v7625_v63, 0.0  ;;  %v6533_v5 = vpop.f32.mrb[27].mxu0 }
 0x85c   :  { %v6660_v8 = vmax.f32 %v7626_v2, 0.0 }
 0x85d   :  { %6666 = vst [vmem:[%s9628_s14 + $0x20] sm:$0xff] %v6659_v3 }
 0x85e   :  { %6667 = vst [vmem:[%s9628_s14 + $0x28] sm:$0xff] %v6660_v8 }
 0x85f   :  { %9169 = dma.done.wait [#allocation4], 16  }
 0x860   :  { %9170 = vsyncadd [#allocation4], 4294967280 }
 0x861   :  { %6684 = sfence }
 0x862   :  { %6685 = vsyncpa [#allocation3], 1 }
 0x863   :  { %6686 = vsyncpa [#allocation6], 1 }
 0x864   :  { %6687 = vsyncpa [#allocation9], 1 }
 0x865   :  { %6688 = vsyncpa [#allocation12], 1 }
 0x866   :  { %6689 = vsyncpa [#allocation15], 1 }
 0x867   :  { %6690 = vsyncpa [#allocation18], 1 }
 0x868   :  { %6691 = vsyncpa [#allocation21], 1 }
 0x869   :  { %6692 = vsyncpa [#allocation4], 1 }

</bundles_post_ra>
